<compile_context>
chip_gen: v6e
topology: v6e:2x2x1
jax: 0.10.0
libtpu: 0.0.40
codegen_flags: <defaults>
</compile_context>

<pallas_src>
import functools

import jax
import jax.numpy as jnp
from jax.experimental import pallas as pl
from jax.experimental.pallas import tpu as pltpu


# (oy, ox) offsets of the 9 taps, ordered (dy, dx) row-major to match the
# (tap, cout) column ordering of the flattened weights.
_TAPS = tuple((dy - 1, dx - 1) for dy in range(3) for dx in range(3))


def _num_groups(batch):
    """Grid size: 2 parallel steps when possible (v7x megacore), else 1."""
    return 2 if (batch % 2 == 0 and batch >= 2) else 1


# -----------------------------------------------------------------------------
# Pallas kernels
# -----------------------------------------------------------------------------
def _shift_rows(z, d):
    """zs[m] = z[m + d] if 0 <= m + d < M else 0 (shift along the sublane axis)."""
    if d == 0:
        return z
    m = z.shape[0]
    pad = jnp.zeros((abs(d), z.shape[1]), z.dtype)
    if d > 0:
        return jnp.concatenate([z[d:, :], pad], axis=0)
    return jnp.concatenate([pad, z[:m + d, :]], axis=0)


def _conv3x3_kernel(*refs, n_in, S, relu):
    """Fused 3x3 'same' conv (+bias, +ReLU) over flattened (row-major) pixels.

    refs = x_0..x_{n-1}  (1, Mb, Cin_i)  bf16   flattened pixels of Bg images
           w_0..w_{n-1}  (Cin_i, 9*Cout) bf16   columns ordered (tap, cout)
           mask          (Mb, 9)         f32    1.0 where tap t is in-bounds
           bias          (1, Cout)       f32
           out           (1, Mb, Cout)

    All 9 taps share the same (un-shifted) LHS, so each (fused-concat) input
    needs only ONE MXU matmul; the spatial shift is applied to the matmul
    result and the conv's zero padding is realised by the border mask.
    """
    x_refs = refs[:n_in]
    w_refs = refs[n_in:2 * n_in]
    m_ref = refs[2 * n_in]
    b_ref = refs[2 * n_in + 1]
    o_ref = refs[2 * n_in + 2]

    mb = o_ref.shape[1]
    cout = o_ref.shape[2]

    z_all = None
    for k in range(n_in):
        x = x_refs[k][0]                       # (Mb, Cin_k) bf16
        w = w_refs[k][...]                     # (Cin_k, 9*Cout) bf16
        if x.shape[1] == 1:
            # conv1: Cin == 1 -> VPU broadcast multiply, skip a K=1 MXU matmul.
            zk = x.astype(jnp.float32) * w.astype(jnp.float32)
        else:
            zk = jnp.dot(x, w, preferred_element_type=jnp.float32)
        z_all = zk if z_all is None else z_all + zk   # (Mb, 9*Cout) f32

    masks = m_ref[...]                                # (Mb, 9) f32
    acc = jnp.zeros((mb, cout), jnp.float32)
    for t, (oy, ox) in enumerate(_TAPS):
        zt = _shift_rows(z_all[:, t * cout:(t + 1) * cout], oy * S + ox)
        if (oy, ox) != (0, 0):
            zt = zt * masks[:, t:t + 1]
        acc = acc + zt
    acc = acc + b_ref[...]
    if relu:
        acc = jnp.maximum(acc, 0.0)
    o_ref[0] = acc.astype(o_ref.dtype)


def _maxpool2x2_kernel(x_ref, o_ref):
    # x_ref: (1, Bg*R//2, 2, S//2, 2*C)  (row pairs on axis 2, column pairs in lanes)
    # o_ref: (1, Bg*R//2, S//2, C)
    c = o_ref.shape[3]
    m = jnp.maximum(x_ref[0, :, 0], x_ref[0, :, 1])       # max over row pair
    o_ref[0] = jnp.maximum(m[:, :, :c], m[:, :, c:])      # max over column pair


def _deconv2x2_kernel(x_ref, w_ref, b_ref, o_ref, *, relu):
    # ConvTranspose k=(2,2), stride=(2,2): out[2r+di, 2s+dj] = relu(x[r,s] @ W[di,dj] + b)
    # x_ref: (1, R, S, Cin); w_ref: (Cin, 4*Cout) columns ordered (di, dj, cout)
    # b_ref: (1, 4*Cout);    o_ref: (1, R, 2, S, 2*Cout)  (interleaved directly)
    r_dim = x_ref.shape[1]
    c2 = o_ref.shape[4]                 # 2 * Cout
    w = w_ref[...]
    bias = b_ref[...]
    for r in range(r_dim):
        z = jnp.dot(x_ref[0, r], w, preferred_element_type=jnp.float32) + bias
        if relu:
            z = jnp.maximum(z, 0.0)
        z = z.astype(o_ref.dtype)
        o_ref[0, r, 0] = z[:, :c2]
        o_ref[0, r, 1] = z[:, c2:]


def _upsample2x_kernel(x_ref, o_ref):
    # Exact 2x bilinear (trilinear with unchanged Z), align_corners=False.
    # x_ref: (1, R, S, C) bf16; o_ref: (1, R, 2, S, 2*C) bf16 (interleaved directly)
    r_dim = x_ref.shape[1]
    c = x_ref.shape[3]
    for r in range(r_dim):
        xr = x_ref[0, r].astype(jnp.float32)
        xm = x_ref[0, max(r - 1, 0)].astype(jnp.float32)
        xp = x_ref[0, min(r + 1, r_dim - 1)].astype(jnp.float32)
        rows = (0.25 * xm + 0.75 * xr,          # even output row 2r
                0.75 * xr + 0.25 * xp)          # odd output row 2r+1
        for di in (0, 1):
            v = rows[di]                        # (S, C)
            vprev = jnp.concatenate([v[:1], v[:-1]], axis=0)
            vnext = jnp.concatenate([v[1:], v[-1:]], axis=0)
            even = (0.25 * vprev + 0.75 * v).astype(o_ref.dtype)
            odd = (0.75 * v + 0.25 * vnext).astype(o_ref.dtype)
            o_ref[0, r, di, :, 0:c] = even
            o_ref[0, r, di, :, c:2 * c] = odd


# -----------------------------------------------------------------------------
# Pallas wrappers
# -----------------------------------------------------------------------------
def _conv_masks(bg, R, S):
    """(Bg*R*S, 9) f32: 1.0 where tap t reads an in-bounds pixel of its image."""
    m_total = bg * R * S
    n = jnp.arange(m_total, dtype=jnp.int32)
    m = n % (R * S)
    i = m // S
    j = m % S
    cols = [((i + oy >= 0) & (i + oy < R) & (j + ox >= 0) & (j + ox < S))
            for (oy, ox) in _TAPS]
    return jnp.stack(cols, axis=1).astype(jnp.float32)


def conv_block(inputs, w, b, R, S, *, relu=True, out_dtype=jnp.bfloat16):
    """3x3 'same' conv (+BN folded as identity) (+ReLU) over a fused channel concat.

    inputs: list of flattened activations (B, R*S, Cin_i) (bf16); the conv is
            applied to their channel concatenation without materialising it.
    w: (3, 3, sum(Cin_i), Cout) f32;  b: (Cout,) f32.
    Returns (B, R*S, Cout) in out_dtype.
    """
    batch = inputs[0].shape[0]
    m_img = R * S
    cout = w.shape[-1]
    grp = _num_groups(batch)
    bg = batch // grp
    mb = bg * m_img

    cins = [int(t.shape[-1]) for t in inputs]
    ws = []
    off = 0
    for cin in cins:
        wi = jnp.transpose(w[:, :, off:off + cin, :], (2, 0, 1, 3))
        ws.append(wi.reshape(cin, 9 * cout).astype(jnp.bfloat16))
        off += cin

    xs = [t.reshape(grp, mb, t.shape[-1]) for t in inputs]
    masks = _conv_masks(bg, R, S)
    b2 = b.reshape(1, cout).astype(jnp.float32)

    in_specs = (
        [pl.BlockSpec((1, mb, cin), lambda g: (g, 0, 0)) for cin in cins]
        + [pl.BlockSpec((cin, 9 * cout), lambda g: (0, 0)) for cin in cins]
        + [pl.BlockSpec((mb, 9), lambda g: (0, 0)),
           pl.BlockSpec((1, cout), lambda g: (0, 0))]
    )
    out = pl.pallas_call(
        functools.partial(_conv3x3_kernel, n_in=len(inputs), S=S, relu=relu),
        out_shape=jax.ShapeDtypeStruct((grp, mb, cout), out_dtype),
        grid=(grp,),
        in_specs=in_specs,
        out_specs=pl.BlockSpec((1, mb, cout), lambda g: (g, 0, 0)),
        compiler_params=pltpu.CompilerParams(dimension_semantics=("parallel",)),
    )(*xs, *ws, masks, b2)
    return out.reshape(batch, m_img, cout)


def max_pool_2x2(x_flat, R, S):
    """MaxPool3d((2,2,1)) on the flattened layout.  x_flat: (B, R*S, C)."""
    batch, _, c = x_flat.shape
    grp = _num_groups(batch)
    bg = batch // grp
    q = bg * R // 2
    s2 = S // 2
    # free reshape: row pairs -> axis 2, column pairs folded into lanes
    x5 = x_flat.reshape(grp, q, 2, s2, 2 * c)
    out = pl.pallas_call(
        _maxpool2x2_kernel,
        out_shape=jax.ShapeDtypeStruct((grp, q, s2, c), x_flat.dtype),
        grid=(grp,),
        in_specs=[pl.BlockSpec((1, q, 2, s2, 2 * c), lambda g: (g, 0, 0, 0, 0))],
        out_specs=pl.BlockSpec((1, q, s2, c), lambda g: (g, 0, 0, 0)),
        compiler_params=pltpu.CompilerParams(dimension_semantics=("parallel",)),
    )(x5)
    return out.reshape(batch, (R // 2) * s2, c)


def deconv_block(x_flat, w, b, R, S, *, relu=True):
    """ConvTranspose k=(2,2), stride=(2,2) (+BN identity) (+ReLU).

    x_flat: (B, R*S, Cin); w: (2, 2, Cin, Cout).  Returns (B, 4*R*S, Cout)
    already interleaved (out[2r+di, 2s+dj] semantics) -- no XLA transpose.
    """
    batch, _, cin = x_flat.shape
    cout = w.shape[-1]
    x4 = x_flat.reshape(batch, R, S, cin)
    w_flat = jnp.transpose(w, (2, 0, 1, 3)).reshape(cin, 4 * cout).astype(jnp.bfloat16)
    b4 = jnp.tile(b, 4).reshape(1, 4 * cout).astype(jnp.float32)
    out = pl.pallas_call(
        functools.partial(_deconv2x2_kernel, relu=relu),
        out_shape=jax.ShapeDtypeStruct((batch, R, 2, S, 2 * cout), jnp.bfloat16),
        grid=(batch,),
        in_specs=[
            pl.BlockSpec((1, R, S, cin), lambda i: (i, 0, 0, 0)),
            pl.BlockSpec((cin, 4 * cout), lambda i: (0, 0)),
            pl.BlockSpec((1, 4 * cout), lambda i: (0, 0)),
        ],
        out_specs=pl.BlockSpec((1, R, 2, S, 2 * cout), lambda i: (i, 0, 0, 0, 0)),
        compiler_params=pltpu.CompilerParams(dimension_semantics=("parallel",)),
    )(x4, w_flat, b4)
    # (B, R, 2, S, 2, Cout) row-major == (B, 2R, 2S, Cout): free reshape.
    return out.reshape(batch, 4 * R * S, cout)


def upsample2x(x_flat, R, S):
    """Exact-2x bilinear upsample over (W, H), align_corners=False semantics."""
    batch, _, c = x_flat.shape
    x4 = x_flat.reshape(batch, R, S, c)
    out = pl.pallas_call(
        _upsample2x_kernel,
        out_shape=jax.ShapeDtypeStruct((batch, R, 2, S, 2 * c), jnp.bfloat16),
        grid=(batch,),
        in_specs=[pl.BlockSpec((1, R, S, c), lambda i: (i, 0, 0, 0))],
        out_specs=pl.BlockSpec((1, R, 2, S, 2 * c), lambda i: (i, 0, 0, 0, 0)),
        compiler_params=pltpu.CompilerParams(dimension_semantics=("parallel",)),
    )(x4)
    return out.reshape(batch, 4 * R * S, c)


# -----------------------------------------------------------------------------
# Parameters (deterministic, synthetic)
# -----------------------------------------------------------------------------
_LAYERS = {
    "conv1": (3, 3, 1, 32),
    "conv2": (3, 3, 32, 64),
    "conv3_1": (3, 3, 64, 128),
    "conv3_2": (3, 3, 128, 128),
    "conv4_1": (3, 3, 128, 128),
    "conv4_2": (3, 3, 128, 128),
    "conv5_1": (3, 3, 128, 128),
    "conv5_2": (3, 3, 128, 128),
    "deconv0_1": (2, 2, 128, 128),
    "deconv0_2": (3, 3, 128 + 128, 128),
    "deconv1_1": (2, 2, 128, 64),
    "deconv1_2": (3, 3, 64 + 128 + 128, 64),
    "deconv2_1": (2, 2, 64, 32),
    "deconv2_2": (3, 3, 32 + 64 + 128, 64),
    "deconv3_1": (2, 2, 64, 16),
    "deconv3_2": (3, 3, 16 + 32 + 64, 16),
    "conv8": (3, 3, 16, 1),
}


def init_params(key):
    params = {}
    keys = jax.random.split(key, len(_LAYERS))
    for k, (name, (kh, kw, cin, cout)) in zip(keys, sorted(_LAYERS.items())):
        kw_key, kb_key = jax.random.split(k)
        fan_in = kh * kw * cin
        w = jax.random.normal(kw_key, (kh, kw, cin, cout), jnp.float32) * (2.0 / fan_in) ** 0.5
        b = jax.random.normal(kb_key, (cout,), jnp.float32) * 0.01
        params[name] = (w, b)
    return params


# -----------------------------------------------------------------------------
# Forward pass (mirrors DensePspUnetV4.forward)
# -----------------------------------------------------------------------------
@jax.jit
def dense_psp_unet_v4_forward(params, x_ncwhz, spacing):
    del spacing  # accepted for signature parity; unused by the reference too.
    N, C, W, H, Z = x_ncwhz.shape
    batch = N * Z
    # (N, C, W, H, Z) -> flattened channels-last (N*Z, W*H, C), bf16 activations.
    x = jnp.transpose(x_ncwhz, (0, 4, 2, 3, 1)).reshape(batch, W * H, C)
    x = x.astype(jnp.bfloat16)

    W2, W4, W8, W16 = W // 2, W // 4, W // 8, W // 16
    H2, H4, H8, H16 = H // 2, H // 4, H // 8, H // 16

    conv1 = conv_block([x], *params["conv1"], W, H)
    pool1 = max_pool_2x2(conv1, W, H)
    conv2 = conv_block([pool1], *params["conv2"], W2, H2)
    pool2 = max_pool_2x2(conv2, W2, H2)
    conv3_1 = conv_block([pool2], *params["conv3_1"], W4, H4)
    conv3_2 = conv_block([conv3_1], *params["conv3_2"], W4, H4)
    pool3 = max_pool_2x2(conv3_2, W4, H4)
    conv4_1 = conv_block([pool3], *params["conv4_1"], W8, H8)
    conv4_2 = conv_block([conv4_1], *params["conv4_2"], W8, H8)
    pool4 = max_pool_2x2(conv4_2, W8, H8)
    conv5_1 = conv_block([pool4], *params["conv5_1"], W16, H16)
    conv5_2 = conv_block([conv5_1], *params["conv5_2"], W16, H16)

    # decoder: concats are fused into the conv kernels (split-K accumulation).
    deconv0_1 = deconv_block(conv5_2, *params["deconv0_1"], W16, H16)          # -> W8 x H8
    deconv0_2 = conv_block([deconv0_1, conv4_2], *params["deconv0_2"], W8, H8)

    deconv1_1 = deconv_block(deconv0_2, *params["deconv1_1"], W8, H8)          # -> W4 x H4
    up4 = upsample2x(conv4_2, W8, H8)
    deconv1_2 = conv_block([deconv1_1, conv3_2, up4], *params["deconv1_2"], W4, H4)

    deconv2_1 = deconv_block(deconv1_2, *params["deconv2_1"], W4, H4)          # -> W2 x H2
    up3 = upsample2x(conv3_2, W4, H4)
    deconv2_2 = conv_block([deconv2_1, conv2, up3], *params["deconv2_2"], W2, H2)

    deconv3_1 = deconv_block(deconv2_2, *params["deconv3_1"], W2, H2)          # -> W x H
    up2 = upsample2x(conv2, W2, H2)
    deconv3_2 = conv_block([deconv3_1, conv1, up2], *params["deconv3_2"], W, H)

    # conv8 is a plain Conv3d: no BN, no ReLU; keep the final output in f32.
    out = conv_block([deconv3_2], *params["conv8"], W, H,
                     relu=False, out_dtype=jnp.float32)
    nc = out.shape[-1]
    # (N*Z, W*H, nc) -> (N, W, H, Z, nc)  == torch permute(0, 2, 3, 4, 1)
    out = out.reshape(N, Z, W, H, nc).transpose(0, 2, 3, 1, 4)
    return out


# -----------------------------------------------------------------------------
# Lightweight correctness checks of each kernel against pure-JAX references
# -----------------------------------------------------------------------------
def _ref_upsample2x(x):
    B, R, S, C = x.shape
    xp = jnp.pad(x, ((0, 0), (1, 1), (1, 1), (0, 0)), mode="edge")
    a = 0.25 * xp[:, 0:R] + 0.75 * xp[:, 1:R + 1]
    bb = 0.75 * xp[:, 1:R + 1] + 0.25 * xp[:, 2:R + 2]
    rows = jnp.stack([a, bb], axis=2)                          # (B, R, 2, S+2, C)
    ee = 0.25 * rows[:, :, :, 0:S] + 0.75 * rows[:, :, :, 1:S + 1]
    oo = 0.75 * rows[:, :, :, 1:S + 1] + 0.25 * rows[:, :, :, 2:S + 2]
    return jnp.stack([ee, oo], axis=4).reshape(B, 2 * R, 2 * S, C)


def _self_test(key):
    kx1, kx2, kx3, kw, kb, kd = jax.random.split(key, 6)
    B, R, S = 4, 8, 8

    # fused multi-input 3x3 conv (includes the Cin=1 VPU path) vs XLA conv
    cins, cout = (1, 16, 48), 64
    xs = [jax.random.normal(k, (B, R, S, c), jnp.float32)
          for k, c in zip((kx1, kx2, kx3), cins)]
    w = jax.random.normal(kw, (3, 3, sum(cins), cout), jnp.float32) * 0.05
    b = jax.random.normal(kb, (cout,), jnp.float32) * 0.01
    xs_b = [x.astype(jnp.bfloat16) for x in xs]
    got = conv_block([x.reshape(B, R * S, x.shape[-1]) for x in xs_b], w, b, R, S)
    got = got.astype(jnp.float32).reshape(B, R, S, cout)
    xc = jnp.concatenate(xs_b, axis=-1).astype(jnp.float32)
    wf = w.astype(jnp.bfloat16).astype(jnp.float32)
    ref = jax.lax.conv_general_dilated(
        xc, wf, (1, 1), "SAME", dimension_numbers=("NHWC", "HWIO", "NHWC")) + b
    ref = jnp.maximum(ref, 0.0)
    assert float(jnp.max(jnp.abs(got - ref))) < 5e-2, "conv3x3 kernel mismatch"

    # max pool
    pooled = max_pool_2x2(got.astype(jnp.bfloat16).reshape(B, R * S, cout), R, S)
    pooled = pooled.astype(jnp.float32).reshape(B, R // 2, S // 2, cout)
    pref = got.astype(jnp.bfloat16).astype(jnp.float32).reshape(
        B, R // 2, 2, S // 2, 2, cout).max(axis=(2, 4))
    assert float(jnp.max(jnp.abs(pooled - pref))) < 1e-2, "maxpool kernel mismatch"

    # deconv (checks the interleaved output layout)
    ci, co2, Rd, Sd = 32, 16, 4, 4
    xd = jax.random.normal(kd, (B, Rd, Sd, ci), jnp.float32)
    wd = jax.random.normal(kw, (2, 2, ci, co2), jnp.float32) * 0.1
    bd = jax.random.normal(kb, (co2,), jnp.float32) * 0.01
    gd = deconv_block(xd.astype(jnp.bfloat16).reshape(B, Rd * Sd, ci), wd, bd, Rd, Sd)
    gd = gd.astype(jnp.float32).reshape(B, 2 * Rd, 2 * Sd, co2)
    xdf = xd.astype(jnp.bfloat16).astype(jnp.float32)
    wdf = wd.astype(jnp.bfloat16).astype(jnp.float32)
    t = jnp.einsum("bijc,deco->bijdeo", xdf, wdf)
    dref = t.transpose(0, 1, 3, 2, 4, 5).reshape(B, 2 * Rd, 2 * Sd, co2) + bd
    dref = jnp.maximum(dref, 0.0)
    assert float(jnp.max(jnp.abs(gd - dref))) < 5e-2, "deconv kernel mismatch"

    # bilinear upsample
    xu = jax.random.normal(kx2, (B, Rd, Sd, 24), jnp.float32).astype(jnp.bfloat16)
    gu = upsample2x(xu.reshape(B, Rd * Sd, 24), Rd, Sd)
    gu = gu.astype(jnp.float32).reshape(B, 2 * Rd, 2 * Sd, 24)
    uref = _ref_upsample2x(xu.astype(jnp.float32))
    assert float(jnp.max(jnp.abs(gu - uref))) < 2e-2, "upsample kernel mismatch"


# -----------------------------------------------------------------------------
# Main
# -----------------------------------------------------------------------------
if __name__ == "__main__":
    key = jax.random.PRNGKey(0)
    kx, ks, kp, kt = jax.random.split(key, 4)

    _self_test(kt)

    # Small TRAIN_PATCH_SIZE = (W, H, Z) = (32, 32, 2), batch N = 2, 1 input channel.
    N, Cin, W, H, Z = 2, 1, 32, 32, 2
    x = jax.random.normal(kx, (N, Cin, W, H, Z), jnp.float32)
    spacing = jax.random.uniform(ks, (N, 3), jnp.float32)  # unused by the forward pass

    params = init_params(kp)

    out = dense_psp_unet_v4_forward(params, x, spacing)
    out = jax.block_until_ready(out)

    assert out.shape == (N, W, H, Z, 1), out.shape
    assert bool(jnp.all(jnp.isfinite(out)))
    print("KERNEL_OK")
</pallas_src>

<mosaic_0001>
module attributes {stable_mosaic.version = 11 : i64} {
  func.func @_conv3x3_kernel(%arg0: i32, %arg1: memref<1x128x1xbf16, #tpu.memory_space<vmem>>, %arg2: memref<1x128x16xbf16, #tpu.memory_space<vmem>>, %arg3: memref<1x128x48xbf16, #tpu.memory_space<vmem>>, %arg4: memref<1x576xbf16, #tpu.memory_space<vmem>>, %arg5: memref<16x576xbf16, #tpu.memory_space<vmem>>, %arg6: memref<48x576xbf16, #tpu.memory_space<vmem>>, %arg7: memref<128x9xf32, #tpu.memory_space<vmem>>, %arg8: memref<1x64xf32, #tpu.memory_space<vmem>>, %arg9: memref<1x128x64xbf16, #tpu.memory_space<vmem>>) attributes {dimension_semantics = [#tpu.dimension_semantics<parallel>], iteration_bounds = array<i64: 2>, scalar_prefetch = 0 : i64, scratch_operands = 0 : i64, tpu.core_type = #tpu.core_type<tc>, window_params = [{transform_indices = @transform_0, window_bounds = array<i64: 1, 128, 1>}, {transform_indices = @transform_1, window_bounds = array<i64: 1, 128, 16>}, {transform_indices = @transform_2, window_bounds = array<i64: 1, 128, 48>}, {pipeline_mode = #tpu.pipeline_mode<synchronous>, transform_indices = @transform_3, window_bounds = array<i64: 1, 576>}, {pipeline_mode = #tpu.pipeline_mode<synchronous>, transform_indices = @transform_4, window_bounds = array<i64: 16, 576>}, {pipeline_mode = #tpu.pipeline_mode<synchronous>, transform_indices = @transform_5, window_bounds = array<i64: 48, 576>}, {pipeline_mode = #tpu.pipeline_mode<synchronous>, transform_indices = @transform_6, window_bounds = array<i64: 128, 9>}, {pipeline_mode = #tpu.pipeline_mode<synchronous>, transform_indices = @transform_7, window_bounds = array<i64: 1, 64>}, {transform_indices = @transform_8, window_bounds = array<i64: 1, 128, 64>}]} {
    %c0 = arith.constant 0 : index
    %c0_0 = arith.constant 0 : index
    %c0_1 = arith.constant 0 : index
    %0 = vector.load %arg1[%c0, %c0_0, %c0_1] : memref<1x128x1xbf16, #tpu.memory_space<vmem>>, vector<1x128x1xbf16>
    %1 = vector.shape_cast %0 : vector<1x128x1xbf16> to vector<128x1xbf16>
    %c0_2 = arith.constant 0 : index
    %c0_3 = arith.constant 0 : index
    %2 = vector.load %arg4[%c0_2, %c0_3] : memref<1x576xbf16, #tpu.memory_space<vmem>>, vector<1x576xbf16>
    %3 = arith.extf %1 : vector<128x1xbf16> to vector<128x1xf32>
    %4 = arith.extf %2 : vector<1x576xbf16> to vector<1x576xf32>
    %5 = vector.broadcast %3 : vector<128x1xf32> to vector<128x576xf32>
    %6 = vector.broadcast %4 : vector<1x576xf32> to vector<128x576xf32>
    %7 = arith.mulf %5, %6 : vector<128x576xf32>
    %c0_4 = arith.constant 0 : index
    %c0_5 = arith.constant 0 : index
    %c0_6 = arith.constant 0 : index
    %8 = vector.load %arg2[%c0_4, %c0_5, %c0_6] : memref<1x128x16xbf16, #tpu.memory_space<vmem>>, vector<1x128x16xbf16>
    %9 = vector.shape_cast %8 : vector<1x128x16xbf16> to vector<128x16xbf16>
    %c0_7 = arith.constant 0 : index
    %c0_8 = arith.constant 0 : index
    %10 = vector.load %arg5[%c0_7, %c0_8] : memref<16x576xbf16, #tpu.memory_space<vmem>>, vector<16x576xbf16>
    %cst = arith.constant dense<0.000000e+00> : vector<128x576xf32>
    %11 = tpu.matmul %9, %10, %cst {dimension_numbers = #tpu.dot_dimension_numbers<[1], [0], [0], [1], [0, 0, 1, 1], [], []>} : vector<128x16xbf16>, vector<16x576xbf16>, vector<128x576xf32> -> vector<128x576xf32>
    %12 = arith.addf %7, %11 : vector<128x576xf32>
    %c0_9 = arith.constant 0 : index
    %c0_10 = arith.constant 0 : index
    %c0_11 = arith.constant 0 : index
    %13 = vector.load %arg3[%c0_9, %c0_10, %c0_11] : memref<1x128x48xbf16, #tpu.memory_space<vmem>>, vector<1x128x48xbf16>
    %14 = vector.shape_cast %13 : vector<1x128x48xbf16> to vector<128x48xbf16>
    %c0_12 = arith.constant 0 : index
    %c0_13 = arith.constant 0 : index
    %15 = vector.load %arg6[%c0_12, %c0_13] : memref<48x576xbf16, #tpu.memory_space<vmem>>, vector<48x576xbf16>
    %cst_14 = arith.constant dense<0.000000e+00> : vector<128x576xf32>
    %16 = tpu.matmul %14, %15, %cst_14 {dimension_numbers = #tpu.dot_dimension_numbers<[1], [0], [0], [1], [0, 0, 1, 1], [], []>} : vector<128x48xbf16>, vector<48x576xbf16>, vector<128x576xf32> -> vector<128x576xf32>
    %17 = arith.addf %12, %16 : vector<128x576xf32>
    %c0_15 = arith.constant 0 : index
    %c0_16 = arith.constant 0 : index
    %18 = vector.load %arg7[%c0_15, %c0_16] : memref<128x9xf32, #tpu.memory_space<vmem>>, vector<128x9xf32>
    %cst_17 = arith.constant 0.000000e+00 : f32
    %19 = vector.broadcast %cst_17 : f32 to vector<128x64xf32>
    %20 = vector.extract_strided_slice %17 {offsets = [0, 0], sizes = [128, 64], strides = [1, 1]} : vector<128x576xf32> to vector<128x64xf32>
    %cst_18 = arith.constant 0.000000e+00 : f32
    %21 = vector.broadcast %cst_18 : f32 to vector<9x64xf32>
    %22 = vector.extract_strided_slice %20 {offsets = [0, 0], sizes = [119, 64], strides = [1, 1]} : vector<128x64xf32> to vector<119x64xf32>
    %23 = tpu.concatenate %21, %22 in 0 : vector<9x64xf32>, vector<119x64xf32> -> vector<128x64xf32>
    %24 = vector.extract_strided_slice %18 {offsets = [0, 0], sizes = [128, 1], strides = [1, 1]} : vector<128x9xf32> to vector<128x1xf32>
    %25 = vector.broadcast %24 : vector<128x1xf32> to vector<128x64xf32>
    %26 = arith.mulf %23, %25 : vector<128x64xf32>
    %27 = arith.addf %19, %26 : vector<128x64xf32>
    %28 = vector.extract_strided_slice %17 {offsets = [0, 64], sizes = [128, 64], strides = [1, 1]} : vector<128x576xf32> to vector<128x64xf32>
    %cst_19 = arith.constant 0.000000e+00 : f32
    %29 = vector.broadcast %cst_19 : f32 to vector<8x64xf32>
    %30 = vector.extract_strided_slice %28 {offsets = [0, 0], sizes = [120, 64], strides = [1, 1]} : vector<128x64xf32> to vector<120x64xf32>
    %31 = tpu.concatenate %29, %30 in 0 : vector<8x64xf32>, vector<120x64xf32> -> vector<128x64xf32>
    %32 = vector.extract_strided_slice %18 {offsets = [0, 1], sizes = [128, 1], strides = [1, 1]} : vector<128x9xf32> to vector<128x1xf32>
    %33 = vector.broadcast %32 : vector<128x1xf32> to vector<128x64xf32>
    %34 = arith.mulf %31, %33 : vector<128x64xf32>
    %35 = arith.addf %27, %34 : vector<128x64xf32>
    %36 = vector.extract_strided_slice %17 {offsets = [0, 128], sizes = [128, 64], strides = [1, 1]} : vector<128x576xf32> to vector<128x64xf32>
    %cst_20 = arith.constant 0.000000e+00 : f32
    %37 = vector.broadcast %cst_20 : f32 to vector<7x64xf32>
    %38 = vector.extract_strided_slice %36 {offsets = [0, 0], sizes = [121, 64], strides = [1, 1]} : vector<128x64xf32> to vector<121x64xf32>
    %39 = tpu.concatenate %37, %38 in 0 : vector<7x64xf32>, vector<121x64xf32> -> vector<128x64xf32>
    %40 = vector.extract_strided_slice %18 {offsets = [0, 2], sizes = [128, 1], strides = [1, 1]} : vector<128x9xf32> to vector<128x1xf32>
    %41 = vector.broadcast %40 : vector<128x1xf32> to vector<128x64xf32>
    %42 = arith.mulf %39, %41 : vector<128x64xf32>
    %43 = arith.addf %35, %42 : vector<128x64xf32>
    %44 = vector.extract_strided_slice %17 {offsets = [0, 192], sizes = [128, 64], strides = [1, 1]} : vector<128x576xf32> to vector<128x64xf32>
    %cst_21 = arith.constant 0.000000e+00 : f32
    %45 = vector.broadcast %cst_21 : f32 to vector<1x64xf32>
    %46 = vector.extract_strided_slice %44 {offsets = [0, 0], sizes = [127, 64], strides = [1, 1]} : vector<128x64xf32> to vector<127x64xf32>
    %47 = tpu.concatenate %45, %46 in 0 : vector<1x64xf32>, vector<127x64xf32> -> vector<128x64xf32>
    %48 = vector.extract_strided_slice %18 {offsets = [0, 3], sizes = [128, 1], strides = [1, 1]} : vector<128x9xf32> to vector<128x1xf32>
    %49 = vector.broadcast %48 : vector<128x1xf32> to vector<128x64xf32>
    %50 = arith.mulf %47, %49 : vector<128x64xf32>
    %51 = arith.addf %43, %50 : vector<128x64xf32>
    %52 = vector.extract_strided_slice %17 {offsets = [0, 256], sizes = [128, 64], strides = [1, 1]} : vector<128x576xf32> to vector<128x64xf32>
    %53 = arith.addf %51, %52 : vector<128x64xf32>
    %54 = vector.extract_strided_slice %17 {offsets = [0, 320], sizes = [128, 64], strides = [1, 1]} : vector<128x576xf32> to vector<128x64xf32>
    %cst_22 = arith.constant 0.000000e+00 : f32
    %55 = vector.broadcast %cst_22 : f32 to vector<1x64xf32>
    %56 = vector.extract_strided_slice %54 {offsets = [1, 0], sizes = [127, 64], strides = [1, 1]} : vector<128x64xf32> to vector<127x64xf32>
    %57 = tpu.concatenate %56, %55 in 0 : vector<127x64xf32>, vector<1x64xf32> -> vector<128x64xf32>
    %58 = vector.extract_strided_slice %18 {offsets = [0, 5], sizes = [128, 1], strides = [1, 1]} : vector<128x9xf32> to vector<128x1xf32>
    %59 = vector.broadcast %58 : vector<128x1xf32> to vector<128x64xf32>
    %60 = arith.mulf %57, %59 : vector<128x64xf32>
    %61 = arith.addf %53, %60 : vector<128x64xf32>
    %62 = vector.extract_strided_slice %17 {offsets = [0, 384], sizes = [128, 64], strides = [1, 1]} : vector<128x576xf32> to vector<128x64xf32>
    %cst_23 = arith.constant 0.000000e+00 : f32
    %63 = vector.broadcast %cst_23 : f32 to vector<7x64xf32>
    %64 = vector.extract_strided_slice %62 {offsets = [7, 0], sizes = [121, 64], strides = [1, 1]} : vector<128x64xf32> to vector<121x64xf32>
    %65 = tpu.concatenate %64, %63 in 0 : vector<121x64xf32>, vector<7x64xf32> -> vector<128x64xf32>
    %66 = vector.extract_strided_slice %18 {offsets = [0, 6], sizes = [128, 1], strides = [1, 1]} : vector<128x9xf32> to vector<128x1xf32>
    %67 = vector.broadcast %66 : vector<128x1xf32> to vector<128x64xf32>
    %68 = arith.mulf %65, %67 : vector<128x64xf32>
    %69 = arith.addf %61, %68 : vector<128x64xf32>
    %70 = vector.extract_strided_slice %17 {offsets = [0, 448], sizes = [128, 64], strides = [1, 1]} : vector<128x576xf32> to vector<128x64xf32>
    %cst_24 = arith.constant 0.000000e+00 : f32
    %71 = vector.broadcast %cst_24 : f32 to vector<8x64xf32>
    %72 = vector.extract_strided_slice %70 {offsets = [8, 0], sizes = [120, 64], strides = [1, 1]} : vector<128x64xf32> to vector<120x64xf32>
    %73 = tpu.concatenate %72, %71 in 0 : vector<120x64xf32>, vector<8x64xf32> -> vector<128x64xf32>
    %74 = vector.extract_strided_slice %18 {offsets = [0, 7], sizes = [128, 1], strides = [1, 1]} : vector<128x9xf32> to vector<128x1xf32>
    %75 = vector.broadcast %74 : vector<128x1xf32> to vector<128x64xf32>
    %76 = arith.mulf %73, %75 : vector<128x64xf32>
    %77 = arith.addf %69, %76 : vector<128x64xf32>
    %78 = vector.extract_strided_slice %17 {offsets = [0, 512], sizes = [128, 64], strides = [1, 1]} : vector<128x576xf32> to vector<128x64xf32>
    %cst_25 = arith.constant 0.000000e+00 : f32
    %79 = vector.broadcast %cst_25 : f32 to vector<9x64xf32>
    %80 = vector.extract_strided_slice %78 {offsets = [9, 0], sizes = [119, 64], strides = [1, 1]} : vector<128x64xf32> to vector<119x64xf32>
    %81 = tpu.concatenate %80, %79 in 0 : vector<119x64xf32>, vector<9x64xf32> -> vector<128x64xf32>
    %82 = vector.extract_strided_slice %18 {offsets = [0, 8], sizes = [128, 1], strides = [1, 1]} : vector<128x9xf32> to vector<128x1xf32>
    %83 = vector.broadcast %82 : vector<128x1xf32> to vector<128x64xf32>
    %84 = arith.mulf %81, %83 : vector<128x64xf32>
    %85 = arith.addf %77, %84 : vector<128x64xf32>
    %c0_26 = arith.constant 0 : index
    %c0_27 = arith.constant 0 : index
    %86 = vector.load %arg8[%c0_26, %c0_27] : memref<1x64xf32, #tpu.memory_space<vmem>>, vector<1x64xf32>
    %87 = vector.broadcast %86 : vector<1x64xf32> to vector<128x64xf32>
    %88 = arith.addf %85, %87 : vector<128x64xf32>
    %cst_28 = arith.constant 0.000000e+00 : f32
    %89 = vector.broadcast %cst_28 : f32 to vector<128x64xf32>
    %90 = arith.maximumf %88, %89 : vector<128x64xf32>
    %91 = arith.truncf %90 : vector<128x64xf32> to vector<128x64xbf16>
    %c0_29 = arith.constant 0 : index
    %c0_30 = arith.constant 0 : index
    %c0_31 = arith.constant 0 : index
    %92 = vector.load %arg9[%c0_29, %c0_30, %c0_31] : memref<1x128x64xbf16, #tpu.memory_space<vmem>>, vector<1x128x64xbf16>
    %93 = vector.shape_cast %92 : vector<1x128x64xbf16> to vector<128x64xbf16>
    %94 = vector.shape_cast %91 : vector<128x64xbf16> to vector<1x128x64xbf16>
    tpu.vector_store %arg9[%c0_29, %c0_30, %c0_31], %94 {strides = array<i32>} : memref<1x128x64xbf16, #tpu.memory_space<vmem>>, vector<1x128x64xbf16>,
    return
  }
  func.func @transform_0(%arg0: i32) -> (i32, i32, i32) {
    %c0_i32 = arith.constant 0 : i32
    %c0_i32_0 = arith.constant 0 : i32
    %c0_i32_1 = arith.constant 0 : i32
    return %arg0, %c0_i32, %c0_i32_0 : i32, i32, i32
  }
  func.func @transform_1(%arg0: i32) -> (i32, i32, i32) {
    %c0_i32 = arith.constant 0 : i32
    %c0_i32_0 = arith.constant 0 : i32
    %c0_i32_1 = arith.constant 0 : i32
    return %arg0, %c0_i32, %c0_i32_0 : i32, i32, i32
  }
  func.func @transform_2(%arg0: i32) -> (i32, i32, i32) {
    %c0_i32 = arith.constant 0 : i32
    %c0_i32_0 = arith.constant 0 : i32
    %c0_i32_1 = arith.constant 0 : i32
    return %arg0, %c0_i32, %c0_i32_0 : i32, i32, i32
  }
  func.func @transform_3(%arg0: i32) -> (i32, i32) {
    %c0_i32 = arith.constant 0 : i32
    %c0_i32_0 = arith.constant 0 : i32
    %c0_i32_1 = arith.constant 0 : i32
    return %c0_i32, %c0_i32_0 : i32, i32
  }
  func.func @transform_4(%arg0: i32) -> (i32, i32) {
    %c0_i32 = arith.constant 0 : i32
    %c0_i32_0 = arith.constant 0 : i32
    %c0_i32_1 = arith.constant 0 : i32
    return %c0_i32, %c0_i32_0 : i32, i32
  }
  func.func @transform_5(%arg0: i32) -> (i32, i32) {
    %c0_i32 = arith.constant 0 : i32
    %c0_i32_0 = arith.constant 0 : i32
    %c0_i32_1 = arith.constant 0 : i32
    return %c0_i32, %c0_i32_0 : i32, i32
  }
  func.func @transform_6(%arg0: i32) -> (i32, i32) {
    %c0_i32 = arith.constant 0 : i32
    %c0_i32_0 = arith.constant 0 : i32
    %c0_i32_1 = arith.constant 0 : i32
    return %c0_i32, %c0_i32_0 : i32, i32
  }
  func.func @transform_7(%arg0: i32) -> (i32, i32) {
    %c0_i32 = arith.constant 0 : i32
    %c0_i32_0 = arith.constant 0 : i32
    %c0_i32_1 = arith.constant 0 : i32
    return %c0_i32, %c0_i32_0 : i32, i32
  }
  func.func @transform_8(%arg0: i32) -> (i32, i32, i32) {
    %c0_i32 = arith.constant 0 : i32
    %c0_i32_0 = arith.constant 0 : i32
    %c0_i32_1 = arith.constant 0 : i32
    return %arg0, %c0_i32, %c0_i32_0 : i32, i32, i32
  }
}

</mosaic_0001>

<bundles_post_ra>
// kernel: tpu_custom_call.1
= control target key start
LH: loop header
LB: loop body
LE: loop exit
PB: predicated region body
PF: predicated region fallthrough
CT: control target
= control target key end

     0   :  { %s3687_s27 = smov 0   ;;  %s5851_s0 = inlined_call_operand.vmem [shape: bf16[2,128,1], index: 0, kind: input, shape index: {}]   ;;  %s5852_s1 = inlined_call_operand.vmem [shape: bf16[2,128,16], index: 1, kind: input, shape index: {}]   ;;  %s5853_s2 = inlined_call_operand.vmem [shape: bf16[2,128,48], index: 2, kind: input, shape index: {}]   ;;  %s5854_s3 = inlined_call_operand.vmem [shape: bf16[1,576], index: 3, kind: input, shape index: {}]   ;;  %s5855_s4 = inlined_call_operand.vmem [shape: bf16[16,576], index: 4, kind: input, shape index: {}]   ;;  %s5856_s5 = inlined_call_operand.vmem [shape: bf16[48,576], index: 5, kind: input, shape index: {}]   ;;  %s5857_s6 = inlined_call_operand.vmem [shape: f32[128,9], index: 6, kind: input, shape index: {}]   ;;  %s5858_s7 = inlined_call_operand.vmem [shape: f32[1,64], index: 7, kind: input, shape index: {}]   ;;  %s5859_s8 = inlined_call_operand.vmem [shape: bf16[2,128,64], index: 8, kind: output, shape index: {}]  }
   0x1 LB: > { %s3257_s28 = sadd.s32 4294967295, %s3631_s27   ;;  %p3261_p0 = scmp.ge.s32.totalorder %s3631_s27, 1  ;;  %s3631_s27 = sphi %s3687_s27, %s18_s27  }
   0x2   : > { %p282_p1 = scmp.lt.s32.totalorder %s3631_s27, 3 }
   0x4   : > { %p283_p2 = pnand %p3261_p0, %p282_p1 }
   0x6   : > { %286 = sbr.rel (%p283_p2) target bundleno = 617 (0x269), region = 52 }
   0xb   : > { %v3565_v0 = vld [vmem:[%s5855_s4 + $0x4] ss:$20 sps:$4 sm:$0xff]   ;;  %p326_p3 = scmp.lt.s32.totalorder %s3257_s28, 1  ;;  %v3567_v1 = vld [vmem:[%s5855_s4 + $0xc] ss:$20 sps:$4 sm:$0xff]   ;;  %v5860_v2 = vmov 0   ;;  %v464_v52 = vlaneseq }
   0xc   : > { %732 = vmatprep.mubr.bf16.mxu0 %v5860_v2  ;;  %844 = vmatprep.mubr.bf16.mxu1 %v5860_v2  ;;  %v3569_v3 = vld [vmem:[%s5855_s4] ss:$20 sps:$4 sm:$0xff]   ;;  %v3570_v4 = vld [vmem:[%s5855_s4 + $0x8] ss:$20 sps:$4 sm:$0xff]   ;;  %vm675_vm0 = vcmask 130048   ;;  %vm1251_vm1 = vcmask 392192  }
   0xd   : > { %714 = vmatprep.subr.bf16.mxu0 %v3565_v0  ;;  %s6325_s28 = smov (!%p326_p3, %s3257_s28), 1  ;;  %3520 = vset.pattern.permute.xlu1 %v5860_v2  ;;  %v3579_v37 = vld [vmem:[%s5856_s5 + $0x54] ss:$20 sps:$4 sm:$0xff]   ;;  %v3577_v38 = vld [vmem:[%s5856_s5 + $0x50] ss:$20 sps:$4 sm:$0xff]   ;;  %v3797_v48 = vld [vmem:[%s5857_s6 + $0x18] sm:$0xff] }
   0xe   : > { %826 = vmatprep.subr.bf16.mxu1 %v3567_v1  ;;  %3509 = vset.pattern.permute.xlu0 %v5860_v2  ;;  %s3711_s15 = sshll.u32 %s6325_s28, 6  ;;  %v3580_v39 = vld [vmem:[%s5855_s4 + $0x10] ss:$20 sps:$4 sm:$0xff]   ;;  %v3772_v43 = vld [vmem:[%s5857_s6 + $0x8] sm:$0xff]  ;;  %v3586_v53 = vld [vmem:[%s5856_s5] ss:$20 sps:$4 sm:$0xff]  }
   0xf   : > { %715 = vmatpush1.bf16.msra.mxu0 %v3569_v3  ;;  %827 = vmatpush1.bf16.msra.mxu1 %v3570_v4  ;;  %s3717_s18 = scalar_lea.vmem %s5852_s1, %s3711_s15  ;;  %s3726_s21 = scalar_lea.vmem %s5851_s0, %s3711_s15  ;;  %v3585_v44 = vld [vmem:[%s5856_s5 + $0x2c] ss:$20 sps:$4 sm:$0xff]   ;;  %v3583_v46 = vld [vmem:[%s5856_s5 + $0x28] ss:$20 sps:$4 sm:$0xff]   ;;  %v3588_v47 = vld [vmem:[%s5856_s5 + $0x4] ss:$20 sps:$4 sm:$0xff]  }
  0x10   : > { %v3720_v5 = vld [vmem:[%s3717_s18] sm:$0xff]   ;;  %v3426_v6 = vld [vmem:[%s3726_s21 + $0x10] sm:$0xff]   ;;  %v3427_v8 = vld [vmem:[%s3726_s21 + $0x18] sm:$0xff]   ;;  %1286 = vmatprep.subr.bf16.mxu1 %v3579_v37  ;;  %3452 = vmatprep.subr.bf16.mxu0 %v3580_v39  ;;  %s3767_s9 = scalar_lea.vmem %s5853_s2, %s3711_s15  ;;  %v3831_v56 = vshrl.u32 %v464_v52, 7  ;;  %v3636_v37 = vmov 3   ;;  %vm1706_vm2 = vcmask 1040384   ;;  %s5765_s12 = scalar_lea.vmem %s5859_s8, %s3711_s15 }
  0x11   : > { %v3394_v7 = vld [vmem:[%s3726_s21] sm:$0xff]   ;;  %v3403_v9 = vunpack.c.l.bf16 %v3426_v6  ;;  %v3404_v10 = vunpack.c.h.bf16 %v3426_v6  ;;  %v3425_v13 = vld [vmem:[%s3726_s21 + $0x8] sm:$0xff]   ;;  %v3407_v14 = vunpack.c.l.bf16 %v3427_v8  ;;  %v3408_v15 = vunpack.c.h.bf16 %v3427_v8  ;;  %v3431_v28 = vld [vmem:[%s3726_s21 + $0x38] sm:$0xff]  }
  0x12   : > { %3283 = vmatmul.mubr.msk.bf16.vlgmr.msra.gmra.mxu0 %vm675_vm0, %v3720_v5  ;;  %3291 = vmatmul.mubr.msk.bf16.vlgmr.msra.gmra.mxu1 %vm675_vm0, %v3720_v5  ;;  %v3395_v11 = vunpack.c.l.bf16 %v3394_v7  ;;  %v3396_v12 = vunpack.c.h.bf16 %v3394_v7  ;;  %v3399_v16 = vunpack.c.l.bf16 %v3425_v13  ;;  %v3400_v17 = vunpack.c.h.bf16 %v3425_v13  ;;  %v3429_v18 = vld [vmem:[%s3726_s21 + $0x28] sm:$0xff]   ;;  %v3428_v19 = vld [vmem:[%s3726_s21 + $0x20] sm:$0xff]   ;;  %v3430_v30 = vld [vmem:[%s3726_s21 + $0x30] sm:$0xff]  }
  0x13   : > { %742 = vmatprep.mubr.bf16.mxu0 %v5860_v2  ;;  %854 = vmatprep.mubr.bf16.mxu1 %v5860_v2  ;;  %v3521_v20 = vpack.i.bf16 %v3404_v10, %v3403_v9  ;;  %v3415_v22 = vunpack.c.l.bf16 %v3429_v18  ;;  %v3416_v23 = vunpack.c.h.bf16 %v3429_v18  ;;  %v3526_v24 = vpack.i.bf16 %v3408_v15, %v3407_v14  ;;  %v3742_v29 = vld [vmem:[%s3717_s18 + $0x8] sm:$0xff]   ;;  %v3761_v42 = vld [vmem:[%s3717_s18 + $0x10] sm:$0xff]   ;;  %v3780_v45 = vld [vmem:[%s5857_s6] sm:$0xff] }
  0x14   : > { %v3510_v21 = vpack.i.bf16 %v3396_v12, %v3395_v11  ;;  %v3515_v25 = vpack.i.bf16 %v3400_v17, %v3399_v16  ;;  %v3411_v26 = vunpack.c.l.bf16 %v3428_v19  ;;  %v3412_v27 = vunpack.c.h.bf16 %v3428_v19  ;;  %1287 = vmatpush1.bf16.msra.mxu1 %v3577_v38  ;;  %3453 = vmatpush3.bf16.msra.mxu0 %v3580_v39  ;;  %v3594_v49 = vld [vmem:[%s5856_s5 + $0x5c] ss:$20 sps:$4 sm:$0xff]   ;;  %v3820_v54 = vld [vmem:[%s5857_s6 + $0x28] sm:$0xff]  ;;  %v3829_v55 = vld [vmem:[%s5857_s6 + $0x20] sm:$0xff] }
  0x15   : > { %3522 = vperm.xlu1 %3520, %v3521_v20   ;;  %v3536_v31 = vpack.i.bf16 %v3416_v23, %v3415_v22  ;;  %v3423_v32 = vunpack.c.l.bf16 %v3431_v28  ;;  %v3424_v34 = vunpack.c.h.bf16 %v3431_v28  ;;  %v3419_v35 = vunpack.c.l.bf16 %v3430_v30  ;;  %1288 = vmatprep.subr.bf16.mxu1 %v3585_v44  ;;  %v3807_v50 = vld [vmem:[%s5857_s6 + $0x10] sm:$0xff]  ;;  %v3810_v51 = vld [vmem:[%s3717_s18 + $0x18] sm:$0xff]   ;;  %v3853_v60 = vld [vmem:[%s3717_s18 + $0x20] sm:$0xff]  }
  0x16   : > { %3511 = vperm.xlu0 %3509, %v3510_v21   ;;  %v3531_v33 = vpack.i.bf16 %v3412_v27, %v3411_v26  ;;  %v3420_v36 = vunpack.c.h.bf16 %v3430_v30  ;;  %1398 = vmatprep.subr.bf16.mxu0 %v3594_v49  ;;  %v3838_v57 = vld [vmem:[%s5857_s6 + $0x38] sm:$0xff]  ;;  %v3843_v58 = vld [vmem:[%s5856_s5 + $0x60] ss:$20 sps:$4 sm:$0xff]   ;;  %v474_v61 = vsub.s32 4, %v3831_v56  ;;  %v3861_v63 = vsub.s32 0, %v3831_v56  ;;  %v3875_v4 = vld [vmem:[%s5857_s6 + $0x48] sm:$0xff] }
  0x17   : > { %v3546_v40 = vpack.i.bf16 %v3424_v34, %v3423_v32  ;;  %v3850_v59 = vld [vmem:[%s5857_s6 + $0x30] sm:$0xff]  ;;  %v363_v62 = vld [vmem:[%s5854_s3] sm:$0x1f]  ;;  %v478_v0 = vsub.s32 6, %v3831_v56  ;;  %v3901_v13 = vld [vmem:[%s5857_s6 + $0x58] sm:$0xff]  ;;  %v3634_v21 = vmov 1  }
  0x18   : > { %v3541_v41 = vpack.i.bf16 %v3420_v36, %v3419_v35  ;;  %1289 = vmatpush1.bf16.msra.mxu1 %v3583_v46  ;;  %v3864_v1 = vunpack.c.l.bf16 %v363_v62  ;;  %v381_v3 = vunpack.c.h.bf16 %v363_v62  ;;  %v3880_v6 = vld [vmem:[%s5857_s6 + $0x40] sm:$0xff]  ;;  %v3906_v14 = vld [vmem:[%s5857_s6 + $0x50] sm:$0xff]  ;;  %v3909_v15 = vld [vmem:[%s3717_s18 + $0x28] sm:$0xff]   ;;  %v3635_v32 = vmov 2  }
  0x19   : > { %3527 = vperm.xlu1 %3520, %v3526_v24   ;;  %1290 = vmatprep.subr.bf16.mxu1 %v3588_v47  ;;  %v3920_v16 = vld [vmem:[%s5857_s6 + $0x68] sm:$0xff]  ;;  %v3925_v17 = vld [vmem:[%s5857_s6 + $0x60] sm:$0xff]  ;;  %v3934_v18 = vld [vmem:[%s5857_s6 + $0x78] sm:$0xff]  ;;  %vm2021_vm3 = vcmask 1046528   ;;  %vm3161_vm4 = vcmask 519168  }
  0x1a   : > { %3516 = vperm.xlu0 %3509, %v3515_v25   ;;  %3284 = vmatmul.mubr.msk.bf16.gmra.mxu0 %vm675_vm0, %v3742_v29  ;;  %v475_v7 = vrot.slane %v3864_v1, %v474_v61  ;;  %v479_v8 = vrot.slane %v3864_v1, %v478_v0  ;;  %v483_v9 = vrot.slane %v381_v3, %v3861_v63  ;;  %v3939_v19 = vld [vmem:[%s5857_s6 + $0x70] sm:$0xff]  ;;  %v3582_v22 = vld [vmem:[%s3717_s18 + $0x38] sm:$0xff]   ;;  %v3965_v23 = vld [vmem:[%s3767_s9] sm:$0xff]  }
  0x1b   : > { %3292 = vmatmul.mubr.msk.bf16.gmra.mxu1 %vm675_vm0, %v3742_v29  ;;  %752 = vmatprep.mubr.bf16.mxu0 %v5860_v2  ;;  %v3942_v20 = vld [vmem:[%s3717_s18 + $0x30] sm:$0xff]   ;;  %v3592_v24 = vld [vmem:[%s5856_s5 + $0x58] ss:$20 sps:$4 sm:$0xff]   ;;  %v3599_v30 = vld [vmem:[%s5856_s5 + $0x8] ss:$20 sps:$4 sm:$0xff]  }
  0x1c   : > { %864 = vmatprep.mubr.bf16.mxu1 %v5860_v2  ;;  %1291 = vmatpush1.bf16.msra.mxu1 %v3586_v53  ;;  %v3888_v10 = vrot.slane %v475_v7, %v3861_v63  ;;  %v3893_v11 = vrot.slane %v479_v8, %v3861_v63  ;;  %v3896_v12 = vrot.slane %v483_v9, %v3861_v63  ;;  %v3607_v25 = vld [vmem:[%s5856_s5 + $0x38] ss:$20 sps:$4 sm:$0xff]   ;;  %v3596_v26 = vld [vmem:[%s5856_s5 + $0x30] ss:$20 sps:$4 sm:$0xff]  }
  0x1d   : > { %3537 = vperm.xlu1 %3520, %v3536_v31   ;;  %3470 = vmatprep.subr.bf16.mxu1 %v3843_v58  ;;  %v3992_v27 = vld [vmem:[%s3767_s9 + $0x8] sm:$0xff]   ;;  %v4015_v31 = vld [vmem:[%s3767_s9 + $0x10] sm:$0xff]   ;;  %v4039_v34 = vld [vmem:[%s3767_s9 + $0x20] sm:$0xff]  }
  0x1e   : > { %3532 = vperm.xlu0 %3509, %v3531_v33   ;;  %5895 = vst [vmem:[#allocation2_spill] sm:$0xff] %v3888_v10  ;;  %v3601_v28 = vld [vmem:[%s5856_s5 + $0xc] ss:$20 sps:$4 sm:$0xff]   ;;  %v4028_v33 = vld [vmem:[%s3767_s9 + $0x18] sm:$0xff]   ;;  %v4065_v36 = vld [vmem:[%s3767_s9 + $0x30] sm:$0xff]  }
  0x1f   : > { %v4052_v35 = vld [vmem:[%s3767_s9 + $0x28] sm:$0xff]   ;;  %v4078_v38 = vld [vmem:[%s3767_s9 + $0x38] sm:$0xff]   ;;  %s3640_s9 = smov 64  }
  0x21   : > { %3547 = vperm.xlu1 %3520, %v3546_v40  }
  0x22   : > { %3542 = vperm.xlu0 %3509, %v3541_v41   ;;  %3285 = vmatmul.mubr.msk.bf16.gmra.mxu0 %vm675_vm0, %v3761_v42 }
  0x23   : > { %3293 = vmatmul.mubr.msk.bf16.gmra.mxu1 %vm675_vm0, %v3761_v42  ;;  %762 = vmatprep.mubr.bf16.mxu0 %v5860_v2 }
  0x24   : > { %874 = vmatprep.mubr.bf16.mxu1 %v5860_v2 }
  0x25   : > { %1759 = vperm.xlu1 %3520, %v3772_v43  }
  0x26   : > { %1754 = vperm.xlu0 %3509, %v3780_v45  }
  0x29   : > { %1769 = vperm.xlu1 %3520, %v3797_v48  }
  0x2a   : > { %1764 = vperm.xlu0 %3509, %v3807_v50   ;;  %3286 = vmatmul.mubr.msk.bf16.gmra.mxu0 %vm675_vm0, %v3810_v51 }
  0x2b   : > { %3294 = vmatmul.mubr.msk.bf16.gmra.mxu1 %vm675_vm0, %v3810_v51  ;;  %772 = vmatprep.mubr.bf16.mxu0 %v5860_v2 }
  0x2c   : > { %884 = vmatprep.mubr.bf16.mxu1 %v5860_v2 }
  0x2d   : > { %1779 = vperm.xlu1 %3520, %v3820_v54  }
  0x2e   : > { %1774 = vperm.xlu0 %3509, %v3829_v55  }
  0x31   : > { %1789 = vperm.xlu1 %3520, %v3838_v57  }
  0x32   : > { %1784 = vperm.xlu0 %3509, %v3850_v59   ;;  %3287 = vmatmul.mubr.msk.bf16.gmra.mxu0 %vm675_vm0, %v3853_v60 }
  0x33   : > { %3295 = vmatmul.mubr.msk.bf16.gmra.mxu1 %vm675_vm0, %v3853_v60  ;;  %782 = vmatprep.mubr.bf16.mxu0 %v5860_v2 }
  0x34   : > { %894 = vmatprep.mubr.bf16.mxu1 %v5860_v2 }
  0x35   : > { %1799 = vperm.xlu1 %3520, %v3875_v4  }
  0x36   : > { %1794 = vperm.xlu0 %3509, %v3880_v6  }
  0x39   : > { %1809 = vperm.xlu1 %3520, %v3901_v13  }
  0x3a   : > { %1804 = vperm.xlu0 %3509, %v3906_v14   ;;  %3288 = vmatmul.mubr.msk.bf16.gmra.mxu0 %vm675_vm0, %v3909_v15 }
  0x3b   : > { %3296 = vmatmul.mubr.msk.bf16.gmra.mxu1 %vm675_vm0, %v3909_v15  ;;  %792 = vmatprep.mubr.bf16.mxu0 %v5860_v2 }
  0x3c   : > { %904 = vmatprep.mubr.bf16.mxu1 %v5860_v2 }
  0x3d   : > { %1819 = vperm.xlu1 %3520, %v3920_v16  }
  0x3e   : > { %1814 = vperm.xlu0 %3509, %v3925_v17  }
  0x41   : > { %1829 = vperm.xlu1 %3520, %v3934_v18  }
  0x42   : > { %1824 = vperm.xlu0 %3509, %v3939_v19   ;;  %3289 = vmatmul.mubr.msk.bf16.gmra.mxu0 %vm675_vm0, %v3942_v20 }
  0x43   : > { %3297 = vmatmul.mubr.msk.bf16.gmra.mxu1 %vm675_vm0, %v3942_v20  ;;  %802 = vmatprep.mubr.bf16.mxu0 %v5860_v2 }
  0x44   : > { %914 = vmatprep.mubr.bf16.mxu1 %v5860_v2 }
  0x45   : > { %3551 = vset.pattern.permute.xlu1 %v3634_v21 }
  0x46   : > { %3552 = vset.pattern.permute.xlu0 %v3634_v21  ;;  %1910 = vperm.xlu1 %3551, %v3780_v45  }
  0x47   : > { %1914 = vperm.xlu0 %3552, %v3772_v43  }
  0x4a   : > { %1918 = vperm.xlu1 %3551, %v3807_v50   ;;  %3290 = vmatmul.mubr.msk.bf16.gmra.mxu0 %vm675_vm0, %v3582_v22 }
  0x4b   : > { %1926 = vperm.xlu0 %3552, %v3829_v55   ;;  %3298 = vmatmul.mubr.msk.bf16.gmra.mxu1 %vm675_vm0, %v3582_v22 }
  0x4c   : > { %3454 = vmatprep.mubr.msk.bf16.mxu0 %vm675_vm0, %v3720_v5  ;;  %1308 = vmatprep.mubr.bf16.mxu1 %v5860_v2  ;;  %v3598_v5 = vld [vmem:[%s5856_s5 + $0x34] ss:$20 sps:$4 sm:$0xff]  }
  0x4e   : > { %1922 = vperm.xlu1 %3551, %v3797_v48  }
  0x4f   : > { %1934 = vperm.xlu0 %3552, %v3850_v59  }
  0x52   : > { %1930 = vperm.xlu1 %3551, %v3820_v54   ;;  %3455 = vmatmul.mubr.msk.bf16.vlgmr.msra.gmra.mxu0 %vm675_vm0, %v3742_v29  ;;  %v3608_v29 = vld [vmem:[%s5856_s5 + $0x10] ss:$20 sps:$4 sm:$0xff]  }
  0x53   : > { %1942 = vperm.xlu0 %3552, %v3880_v6   ;;  %3330 = vmatmul.mubr.msk.bf16.vlgmr.msra.gmra.mxu1 %vm1251_vm1, %v3965_v23 }
  0x54   : > { %3458 = vmatprep.mubr.msk.bf16.mxu0 %vm675_vm0, %v3761_v42  ;;  %1318 = vmatprep.mubr.bf16.mxu1 %v5860_v2 }
  0x55   : > { %1399 = vmatpush1.bf16.msra.mxu0 %v3592_v24  ;;  %3471 = vmatpush3.bf16.msra.mxu1 %v3843_v58 }
  0x56   : > { %1938 = vperm.xlu1 %3551, %v3838_v57   ;;  %1400 = vmatprep.subr.bf16.mxu0 %v3598_v5 }
  0x57   : > { %1950 = vperm.xlu0 %3552, %v3906_v14   ;;  %3472 = vmatprep.subr.bf16.mxu1 %v3607_v25 }
  0x59   : > { %1401 = vmatpush1.bf16.msra.mxu0 %v3596_v26  ;;  %3473 = vmatpush3.bf16.msra.mxu1 %v3607_v25 }
  0x5a   : > { %1946 = vperm.xlu1 %3551, %v3875_v4   ;;  %3459 = vmatmul.mubr.msk.bf16.gmra.mxu0 %vm675_vm0, %v3810_v51 }
  0x5b   : > { %1958 = vperm.xlu0 %3552, %v3925_v17   ;;  %3331 = vmatmul.mubr.msk.bf16.gmra.mxu1 %vm1251_vm1, %v3992_v27 }
  0x5c   : > { %3462 = vmatprep.mubr.msk.bf16.mxu0 %vm675_vm0, %v3853_v60  ;;  %1328 = vmatprep.mubr.bf16.mxu1 %v5860_v2 }
  0x5d   : > { %1402 = vmatprep.subr.bf16.mxu0 %v3601_v28  ;;  %3474 = vmatprep.subr.bf16.mxu1 %v3608_v29 }
  0x5e   : > { %1954 = vperm.xlu1 %3551, %v3901_v13   ;;  %1403 = vmatpush1.bf16.msra.mxu0 %v3599_v30 }
  0x5f   : > { %1966 = vperm.xlu0 %3552, %v3939_v19   ;;  %3475 = vmatpush3.bf16.msra.mxu1 %v3608_v29 }
  0x62   : > { %1962 = vperm.xlu1 %3551, %v3920_v16   ;;  %3463 = vmatmul.mubr.msk.bf16.gmra.mxu0 %vm675_vm0, %v3909_v15 }
  0x63   : > { %3553 = vset.pattern.permute.xlu0 %v3635_v32  ;;  %3332 = vmatmul.mubr.msk.bf16.gmra.mxu1 %vm1251_vm1, %v4015_v31 }
  0x64   : > { %2071 = vperm.xlu0 %3553, %v3780_v45   ;;  %3466 = vmatprep.mubr.msk.bf16.mxu0 %vm675_vm0, %v3942_v20 }
  0x65   : > { %1338 = vmatprep.mubr.bf16.mxu1 %v5860_v2 }
  0x66   : > { %1970 = vperm.xlu1 %3551, %v3934_v18  }
  0x68   : > { %2083 = vperm.xlu0 %3553, %v3797_v48  }
  0x6a   : > { %3554 = vset.pattern.permute.xlu1 %v3635_v32  ;;  %3467 = vmatmul.mubr.msk.bf16.gmra.mxu0 %vm675_vm0, %v3582_v22 }
  0x6b   : > { %3333 = vmatmul.mubr.msk.bf16.gmra.mxu1 %vm1251_vm1, %v4028_v33  ;;  %2075 = vperm.xlu1 %3554, %v3772_v43  }
  0x6c   : > { %2091 = vperm.xlu0 %3553, %v3820_v54   ;;  %1348 = vmatprep.mubr.bf16.mxu1 %v5860_v2 }
  0x6d   : > { %1420 = vmatprep.mubr.bf16.mxu0 %v5860_v2 }
  0x6f   : > { %2079 = vperm.xlu1 %3554, %v3807_v50  }
  0x70   : > { %2099 = vperm.xlu0 %3553, %v3838_v57  }
  0x72   : > { %3338 = vmatmul.mubr.msk.bf16.vlgmr.msra.gmra.mxu0 %vm1251_vm1, %v3965_v23 }
  0x73   : > { %3334 = vmatmul.mubr.msk.bf16.gmra.mxu1 %vm1251_vm1, %v4039_v34  ;;  %2087 = vperm.xlu1 %3554, %v3829_v55  }
  0x74   : > { %2107 = vperm.xlu0 %3553, %v3875_v4   ;;  %1358 = vmatprep.mubr.bf16.mxu1 %v5860_v2 }
  0x75   : > { %1430 = vmatprep.mubr.bf16.mxu0 %v5860_v2 }
  0x77   : > { %2095 = vperm.xlu1 %3554, %v3850_v59  }
  0x78   : > { %2115 = vperm.xlu0 %3553, %v3901_v13  }
  0x7a   : > { %3339 = vmatmul.mubr.msk.bf16.gmra.mxu0 %vm1251_vm1, %v3992_v27 }
  0x7b   : > { %3335 = vmatmul.mubr.msk.bf16.gmra.mxu1 %vm1251_vm1, %v4052_v35  ;;  %2103 = vperm.xlu1 %3554, %v3880_v6  }
  0x7c   : > { %2123 = vperm.xlu0 %3553, %v3920_v16   ;;  %1368 = vmatprep.mubr.bf16.mxu1 %v5860_v2 }
  0x7d   : > { %1440 = vmatprep.mubr.bf16.mxu0 %v5860_v2 }
  0x7f   : > { %2111 = vperm.xlu1 %3554, %v3906_v14  }
  0x80   : > { %2131 = vperm.xlu0 %3553, %v3934_v18  }
  0x82   : > { %3340 = vmatmul.mubr.msk.bf16.gmra.mxu0 %vm1251_vm1, %v4015_v31 }
  0x83   : > { %3336 = vmatmul.mubr.msk.bf16.gmra.mxu1 %vm1251_vm1, %v4065_v36  ;;  %2119 = vperm.xlu1 %3554, %v3925_v17  }
  0x84   : > { %3556 = vset.pattern.permute.xlu0 %v3636_v37  ;;  %1378 = vmatprep.mubr.bf16.mxu1 %v5860_v2 }
  0x85   : > { %2251 = vperm.xlu0 %3556, %v3772_v43   ;;  %1450 = vmatprep.mubr.bf16.mxu0 %v5860_v2 }
  0x87   : > { %2127 = vperm.xlu1 %3554, %v3939_v19  }
  0x89   : > { %2263 = vperm.xlu0 %3556, %v3829_v55  }
  0x8a   : > { %3341 = vmatmul.mubr.msk.bf16.gmra.mxu0 %vm1251_vm1, %v4028_v33 }
  0x8b   : > { %3337 = vmatmul.mubr.msk.bf16.gmra.mxu1 %vm1251_vm1, %v4078_v38  ;;  %3555 = vset.pattern.permute.xlu1 %v3636_v37 }
  0x8c   : > { %1460 = vmatprep.mubr.bf16.mxu0 %v5860_v2  ;;  %2247 = vperm.xlu1 %3555, %v3780_v45  }
  0x8d   : > { %2271 = vperm.xlu0 %3556, %v3850_v59   ;;  %3476 = vmatprep.mubr.msk.bf16.mxu1 %vm1251_vm1, %v3965_v23 }
  0x90   : > { %v3523_v39 = vpop.permute.xlu1 %3522  ;;  %2255 = vperm.xlu1 %3555, %v3807_v50  }
  0x91   : > { %v3512_v40 = vpop.permute.xlu0 %3511  ;;  %2279 = vperm.xlu0 %3556, %v3880_v6   ;;  %v4097_v44 = vunpack.i.l.bf16 %v3523_v39  ;;  %v4124_v60 = vunpack.i.h.bf16 %v3523_v39 }
  0x92   : > { %v4093_v41 = vunpack.i.h.bf16 %v3512_v40  ;;  %v4095_v42 = vunpack.i.l.bf16 %v3512_v40  ;;  %3342 = vmatmul.mubr.msk.bf16.gmra.mxu0 %vm1251_vm1, %v4039_v34 }
  0x93   : > { %5897 = vst [vmem:[#allocation4_spill] sm:$0xff] %v4097_v44  ;;  %3477 = vmatmul.mubr.msk.bf16.vlgmr.msra.gmra.mxu1 %vm1251_vm1, %v3992_v27  ;;  %1470 = vmatprep.mubr.bf16.mxu0 %v5860_v2  ;;  %5900 = vst [vmem:[#allocation7_spill] sm:$0xff] %v4124_v60  ;;  %v4132_v62 = vmul.f32 %v4097_v44, %v3888_v10  ;;  %v4158_v22 = vmul.f32 %v4097_v44, %v3893_v11 }
  0x94   : > { %5896 = vst [vmem:[#allocation3_spill] sm:$0xff] %v4095_v42  ;;  %v4105_v46 = vmul.f32 %v4095_v42, %v3888_v10  ;;  %v3528_v47 = vpop.permute.xlu1 %3527  ;;  %3480 = vmatprep.mubr.msk.bf16.mxu1 %vm1251_vm1, %v4015_v31  ;;  %v4112_v51 = vmul.f32 %v4095_v42, %v3893_v11  ;;  %v4116_v52 = vmul.f32 %v4093_v41, %v3888_v10 }
  0x95   : > { %v3517_v49 = vpop.permute.xlu0 %3516  ;;  %2259 = vperm.xlu1 %3555, %v3797_v48   ;;  %2287 = vperm.xlu0 %3556, %v3906_v14   ;;  %v4128_v61 = vmul.f32 %v4093_v41, %v3893_v11  ;;  %v4142_v7 = vunpack.i.l.bf16 %v3528_v47  ;;  %v4154_v21 = vunpack.i.h.bf16 %v3528_v47  ;;  %v4162_v23 = vmul.f32 %v4124_v60, %v3888_v10 }
  0x96   : > { %v4120_v53 = vunpack.i.h.bf16 %v3517_v49  ;;  %v4122_v58 = vunpack.i.l.bf16 %v3517_v49  ;;  %v4172_v5 = vmul.f32 %v4124_v60, %v3893_v11 }
  0x97   : > { %5901 = vst [vmem:[#allocation8_spill] sm:$0xff] %v4142_v7  ;;  %5902 = vst [vmem:[#allocation9_spill] sm:$0xff] %v4154_v21  ;;  %v4181_v28 = vmul.f32 %v4142_v7, %v3888_v10  ;;  %v4185_v29 = vmul.f32 %v4142_v7, %v3893_v11  ;;  %v4193_v31 = vmul.f32 %v4154_v21, %v3888_v10 }
  0x98   : > { %5898 = vst [vmem:[#allocation5_spill] sm:$0xff] %v4120_v53  ;;  %5899 = vst [vmem:[#allocation6_spill] sm:$0xff] %v4122_v58  ;;  %v4136_v0 = vmul.f32 %v4122_v58, %v3888_v10  ;;  %v4140_v3 = vmul.f32 %v4122_v58, %v3893_v11  ;;  %v3538_v8 = vpop.permute.xlu1 %3537  ;;  %v4146_v15 = vmul.f32 %v4120_v53, %v3888_v10 }
  0x99   : > { %v3533_v9 = vpop.permute.xlu0 %3532  ;;  %v4150_v20 = vmul.f32 %v4120_v53, %v3893_v11  ;;  %2267 = vperm.xlu1 %3555, %v3820_v54   ;;  %2295 = vperm.xlu0 %3556, %v3925_v17   ;;  %v4187_v30 = vunpack.i.l.bf16 %v3538_v8  ;;  %v4197_v32 = vmul.f32 %v4154_v21, %v3893_v11 }
  0x9a   : > { %v4164_v24 = vunpack.i.l.bf16 %v3533_v9  ;;  %3343 = vmatmul.mubr.msk.bf16.gmra.mxu0 %vm1251_vm1, %v4052_v35  ;;  %v4174_v25 = vunpack.i.h.bf16 %v3533_v9  ;;  %v3637_v9 = vmov 5  }
  0x9b   : > { %3481 = vmatmul.mubr.msk.bf16.gmra.mxu1 %vm1251_vm1, %v4028_v33  ;;  %1480 = vmatprep.mubr.bf16.mxu0 %v5860_v2  ;;  %v4199_v33 = vunpack.i.h.bf16 %v3538_v8  ;;  %v4226_v2 = vmul.f32 %v4187_v30, %v3888_v10 }
  0x9c   : > { %5903 = vst [vmem:[#allocation10_spill] sm:$0xff] %v4164_v24  ;;  %5904 = vst [vmem:[#allocation11_spill] sm:$0xff] %v4174_v25  ;;  %v3548_v26 = vpop.permute.xlu1 %3547  ;;  %3484 = vmatprep.mubr.msk.bf16.mxu1 %vm1251_vm1, %v4039_v34  ;;  %v4203_v34 = vmul.f32 %v4164_v24, %v3888_v10  ;;  %v4207_v37 = vmul.f32 %v4164_v24, %v3893_v11  ;;  %v4215_v47 = vmul.f32 %v4174_v25, %v3888_v10 }
  0x9d   : > { %v3543_v27 = vpop.permute.xlu0 %3542  ;;  %2275 = vperm.xlu1 %3555, %v3838_v57   ;;  %2303 = vperm.xlu0 %3556, %v3939_v19   ;;  %v4219_v49 = vmul.f32 %v4174_v25, %v3893_v11  ;;  %5909 = vst [vmem:[#allocation16_spill] sm:$0xff] %v4226_v2  ;;  %v4235_v42 = vunpack.i.h.bf16 %v3548_v26  ;;  %v4243_v10 = vmul.f32 %v4199_v33, %v3893_v11 }
  0x9e   : > { %5907 = vst [vmem:[#allocation14_spill] sm:$0xff] %v4215_v47  ;;  %v4221_v8 = vunpack.i.h.bf16 %v3543_v27  ;;  %v5913_v47 = vmov 0  }
  0x9f   : > { %5908 = vst [vmem:[#allocation15_spill] sm:$0xff] %v4219_v49  ;;  %5910 = vst [vmem:[#allocation17_spill] sm:$0xff] %v4243_v10  ;;  %v4282_v10 = vmul.f32 %v4093_v41, %v3896_v12 }
  0xa0   : > { %v4209_v39 = vpop.permute.xlu1 %1759 }
  0xa1   : > { %5905 = vst [vmem:[#allocation12_spill] sm:$0xff] %v4209_v39  ;;  %v4211_v40 = vpop.permute.xlu0 %1754  ;;  %2283 = vperm.xlu1 %3555, %v3875_v4   ;;  %3557 = vset.pattern.permute.xlu0 %v3637_v9  ;;  %v4228_v39 = vunpack.i.l.bf16 %v3548_v26  ;;  %v4255_v26 = vmul.f32 %v4221_v8, %v3893_v11 }
  0xa2   : > { %5906 = vst [vmem:[#allocation13_spill] sm:$0xff] %v4211_v40  ;;  %2423 = vperm.xlu0 %3557, %v3780_v45   ;;  %v4233_v40 = vmul.f32 %v4187_v30, %v3893_v11  ;;  %3344 = vmatmul.mubr.msk.bf16.gmra.mxu0 %vm1251_vm1, %v4065_v36 }
  0xa3   : > { %3485 = vmatmul.mubr.msk.bf16.gmra.mxu1 %vm1251_vm1, %v4052_v35  ;;  %1490 = vmatprep.mubr.bf16.mxu0 %v5913_v47  ;;  %5914 = vst [vmem:[#allocation20_spill] sm:$0xff] %v4255_v26  ;;  %v4257_v35 = vunpack.i.l.bf16 %v3543_v27  ;;  %v4266_v47 = vmul.f32 %v4235_v42, %v3893_v11 }
  0xa4   : > { %v4245_v2 = vpop.permute.xlu1 %1769  ;;  %3488 = vmatprep.mubr.msk.bf16.mxu1 %vm1251_vm1, %v4065_v36  ;;  %v4270_v36 = vmul.f32 %v4122_v58, %v3896_v12  ;;  %v4290_v58 = vmul.f32 %v4097_v44, %v3896_v12  ;;  %v4311_v44 = vmul.f32 %v4199_v33, %v3896_v12 }
  0xa5   : > { %5911 = vst [vmem:[#allocation18_spill] sm:$0xff] %v4245_v2  ;;  %v4247_v49 = vpop.permute.xlu0 %1764  ;;  %2291 = vperm.xlu1 %3555, %v3901_v13   ;;  %v4262_v2 = vmul.f32 %v4228_v39, %v3893_v11 }
  0xa6   : > { %5912 = vst [vmem:[#allocation19_spill] sm:$0xff] %v4247_v49  ;;  %2435 = vperm.xlu0 %3557, %v3797_v48   ;;  %v4274_v49 = vmul.f32 %v4120_v53, %v3896_v12  ;;  %v4294_v53 = vmul.f32 %v4154_v21, %v3896_v12  ;;  %5921 = vst [vmem:[#allocation27_spill] sm:$0xff] %v4311_v44  ;;  %v4316_v21 = vmul.f32 %v4174_v25, %v3896_v12 }
  0xa7   : > { %5915 = vst [vmem:[#allocation21_spill] sm:$0xff] %v4262_v2  ;;  %v4286_v2 = vmul.f32 %v4142_v7, %v3896_v12  ;;  %v4307_v7 = vmul.f32 %v4164_v24, %v3896_v12  ;;  %v4328_v24 = vmul.f32 %v4235_v42, %v3896_v12  ;;  %v4336_v25 = vmul.f32 %v4221_v8, %v3896_v12 }
  0xa8   : > { %v4276_v27 = vpop.permute.xlu1 %1779  ;;  %5922 = vst [vmem:[#allocation28_spill] sm:$0xff] %v4316_v21 }
  0xa9   : > { %5916 = vst [vmem:[#allocation22_spill] sm:$0xff] %v4276_v27  ;;  %v4278_v26 = vpop.permute.xlu0 %1774  ;;  %2299 = vperm.xlu1 %3555, %v3920_v16   ;;  %v4303_v27 = vmul.f32 %v4187_v30, %v3896_v12  ;;  %5920 = vst [vmem:[#allocation26_spill] sm:$0xff] %v4307_v7 }
  0xaa   : > { %5917 = vst [vmem:[#allocation23_spill] sm:$0xff] %v4278_v26  ;;  %v4299_v26 = vmul.f32 %v4124_v60, %v3896_v12  ;;  %2443 = vperm.xlu0 %3557, %v3820_v54   ;;  %v4320_v60 = vmul.f32 %v4228_v39, %v3896_v12  ;;  %5925 = vst [vmem:[#allocation31_spill] sm:$0xff] %v4328_v24  ;;  %3345 = vmatmul.mubr.msk.bf16.gmra.mxu0 %vm1251_vm1, %v4078_v38 }
  0xab   : > { %5919 = vst [vmem:[#allocation25_spill] sm:$0xff] %v4303_v27  ;;  %v4324_v27 = vmul.f32 %v4257_v35, %v3896_v12  ;;  %3489 = vmatmul.mubr.msk.bf16.gmra.mxu1 %vm1251_vm1, %v4078_v38  ;;  %5926 = vst [vmem:[#allocation32_spill] sm:$0xff] %v4336_v25 }
  0xac   : > { %5918 = vst [vmem:[#allocation24_spill] sm:$0xff] %v4299_v26  ;;  %5923 = vst [vmem:[#allocation29_spill] sm:$0xff] %v4320_v60  ;;  %v4338_v21 = vpop.permute.xlu1 %1789 }
  0xad   : > { %5924 = vst [vmem:[#allocation30_spill] sm:$0xff] %v4324_v27  ;;  %5927 = vst [vmem:[#allocation33_spill] sm:$0xff] %v4338_v21  ;;  %v4340_v60 = vpop.permute.xlu0 %1784  ;;  %2307 = vperm.xlu1 %3555, %v3934_v18  }
  0xae   : > { %5928 = vst [vmem:[#allocation34_spill] sm:$0xff] %v4340_v60  ;;  %2451 = vperm.xlu0 %3557, %v3838_v57  }
  0xb0   : > { %v4344_v27 = vpop.permute.xlu1 %1799 }
  0xb1   : > { %5929 = vst [vmem:[#allocation35_spill] sm:$0xff] %v4344_v27  ;;  %v4346_v24 = vpop.permute.xlu0 %1794  ;;  %3558 = vset.pattern.permute.xlu1 %v3637_v9 }
  0xb2   : > { %5930 = vst [vmem:[#allocation36_spill] sm:$0xff] %v4346_v24  ;;  %2427 = vperm.xlu1 %3558, %v3772_v43   ;;  %2459 = vperm.xlu0 %3557, %v3875_v4  }
  0xb4   : > { %v4350_v38 = vpop.permute.xlu1 %1809 }
  0xb5   : > { %5931 = vst [vmem:[#allocation37_spill] sm:$0xff] %v4350_v38  ;;  %v4352_v12 = vpop.permute.xlu0 %1804 }
  0xb6   : > { %5932 = vst [vmem:[#allocation38_spill] sm:$0xff] %v4352_v12  ;;  %2431 = vperm.xlu1 %3558, %v3807_v50   ;;  %2467 = vperm.xlu0 %3557, %v3901_v13  }
  0xb8   : > { %v4356_v60 = vpop.permute.xlu1 %1819 }
  0xb9   : > { %5933 = vst [vmem:[#allocation39_spill] sm:$0xff] %v4356_v60  ;;  %v4358_v21 = vpop.permute.xlu0 %1814  ;;  %v3638_v60 = vmov 6  }
  0xba   : > { %5934 = vst [vmem:[#allocation40_spill] sm:$0xff] %v4358_v21  ;;  %2439 = vperm.xlu1 %3558, %v3829_v55   ;;  %2475 = vperm.xlu0 %3557, %v3920_v16  }
  0xbc   : > { %v4362_v9 = vpop.permute.xlu1 %1829 }
  0xbd   : > { %5935 = vst [vmem:[#allocation41_spill] sm:$0xff] %v4362_v9  ;;  %v4364_v24 = vpop.permute.xlu0 %1824 }
  0xbe   : > { %5936 = vst [vmem:[#allocation42_spill] sm:$0xff] %v4364_v24  ;;  %2447 = vperm.xlu1 %3558, %v3850_v59   ;;  %2483 = vperm.xlu0 %3557, %v3934_v18  }
  0xc1   : > { %v4368_v12 = vpop.permute.xlu1 %1910 }
  0xc2   : > { %5937 = vst [vmem:[#allocation43_spill] sm:$0xff] %v4368_v12  ;;  %v4370_v38 = vpop.permute.xlu0 %1914  ;;  %2455 = vperm.xlu1 %3558, %v3880_v6   ;;  %3560 = vset.pattern.permute.xlu0 %v3638_v60 }
  0xc3   : > { %5938 = vst [vmem:[#allocation44_spill] sm:$0xff] %v4370_v38  ;;  %2651 = vperm.xlu0 %3560, %v3772_v43  }
  0xc5   : > { %v4374_v21 = vpop.permute.xlu1 %1918 }
  0xc6   : > { %5939 = vst [vmem:[#allocation45_spill] sm:$0xff] %v4374_v21  ;;  %v4376_v27 = vpop.permute.xlu0 %1926  ;;  %2463 = vperm.xlu1 %3558, %v3906_v14  }
  0xc7   : > { %5940 = vst [vmem:[#allocation46_spill] sm:$0xff] %v4376_v27  ;;  %2663 = vperm.xlu0 %3560, %v3829_v55  }
  0xc9   : > { %v4380_v9 = vpop.permute.xlu1 %1922 }
  0xca   : > { %5941 = vst [vmem:[#allocation47_spill] sm:$0xff] %v4380_v9  ;;  %v4382_v24 = vpop.permute.xlu0 %1934  ;;  %2471 = vperm.xlu1 %3558, %v3925_v17  }
  0xcb   : > { %5942 = vst [vmem:[#allocation48_spill] sm:$0xff] %v4382_v24  ;;  %2671 = vperm.xlu0 %3560, %v3850_v59  }
  0xcd   : > { %v4386_v12 = vpop.permute.xlu1 %1930 }
  0xce   : > { %5943 = vst [vmem:[#allocation49_spill] sm:$0xff] %v4386_v12  ;;  %v4388_v38 = vpop.permute.xlu0 %1942  ;;  %2479 = vperm.xlu1 %3558, %v3939_v19  }
  0xcf   : > { %5944 = vst [vmem:[#allocation50_spill] sm:$0xff] %v4388_v38  ;;  %2679 = vperm.xlu0 %3560, %v3880_v6  }
  0xd1   : > { %v4392_v27 = vpop.permute.xlu1 %1938 }
  0xd2   : > { %5945 = vst [vmem:[#allocation51_spill] sm:$0xff] %v4392_v27  ;;  %v4394_v21 = vpop.permute.xlu0 %1950  ;;  %3559 = vset.pattern.permute.xlu1 %v3638_v60  ;;  %v4396_v9 = vpop.f32.mrf.mxu0 }
  0xd3   : > { %5946 = vst [vmem:[#allocation52_spill] sm:$0xff] %v4394_v21  ;;  %v846_v24 = vpop.f32.mrf.mxu1  ;;  %2647 = vperm.xlu1 %3559, %v3780_v45   ;;  %2687 = vperm.xlu0 %3560, %v3906_v14  }
  0xd4   : > { %v4401_v12 = vadd.f32 %v846_v24, %v4105_v46  ;;  %v4403_v38 = vpop.f32.mrf.mxu0 }
  0xd5   : > { %v848_v25 = vpop.f32.mrf.mxu1  ;;  %v4408_v27 = vpop.permute.xlu1 %1946 }
  0xd6   : > { %5947 = vst [vmem:[#allocation53_spill] sm:$0xff] %v4401_v12  ;;  %v4406_v44 = vadd.f32 %v848_v25, %v4112_v51  ;;  %5949 = vst [vmem:[#allocation55_spill] sm:$0xff] %v4408_v27  ;;  %v4410_v21 = vpop.permute.xlu0 %1958  ;;  %v4412_v60 = vpop.f32.mrf.mxu0 }
  0xd7   : > { %5950 = vst [vmem:[#allocation56_spill] sm:$0xff] %v4410_v21  ;;  %v850_v7 = vpop.f32.mrf.mxu1  ;;  %2655 = vperm.xlu1 %3559, %v3807_v50   ;;  %2695 = vperm.xlu0 %3560, %v3925_v17  }
  0xd8   : > { %5948 = vst [vmem:[#allocation54_spill] sm:$0xff] %v4406_v44  ;;  %v4417_v46 = vadd.f32 %v850_v7, %v4116_v52  ;;  %v4419_v24 = vpop.f32.mrf.mxu0 }
  0xd9   : > { %v852_v12 = vpop.f32.mrf.mxu1  ;;  %v4424_v25 = vpop.permute.xlu1 %1954 }
  0xda   : > { %5951 = vst [vmem:[#allocation57_spill] sm:$0xff] %v4417_v46  ;;  %v4422_v51 = vadd.f32 %v852_v12, %v4128_v61  ;;  %5953 = vst [vmem:[#allocation59_spill] sm:$0xff] %v4424_v25  ;;  %v4426_v27 = vpop.permute.xlu0 %1966  ;;  %v4428_v21 = vpop.f32.mrf.mxu0 }
  0xdb   : > { %5954 = vst [vmem:[#allocation60_spill] sm:$0xff] %v4426_v27  ;;  %v856_v44 = vpop.f32.mrf.mxu1  ;;  %2659 = vperm.xlu1 %3559, %v3797_v48   ;;  %2703 = vperm.xlu0 %3560, %v3939_v19  }
  0xdc   : > { %5952 = vst [vmem:[#allocation58_spill] sm:$0xff] %v4422_v51  ;;  %v4433_v52 = vadd.f32 %v856_v44, %v4136_v0  ;;  %v4435_v7 = vpop.f32.mrf.mxu0  ;;  %v5881_v51 = vmov 7  }
  0xdd   : > { %v858_v46 = vpop.f32.mrf.mxu1  ;;  %v4440_v12 = vpop.permute.xlu1 %1962 }
  0xde   : > { %5955 = vst [vmem:[#allocation61_spill] sm:$0xff] %v4433_v52  ;;  %v4438_v61 = vadd.f32 %v858_v46, %v4140_v3  ;;  %5957 = vst [vmem:[#allocation63_spill] sm:$0xff] %v4440_v12  ;;  %v4442_v25 = vpop.f32.mrf.mxu0 }
  0xdf   : > { %v860_v27 = vpop.f32.mrf.mxu1  ;;  %2667 = vperm.xlu1 %3559, %v3820_v54   ;;  %3561 = vset.pattern.permute.xlu0 %v5881_v51  ;;  %v4446_v26 = vpop.permute.xlu0 %2071 }
  0xe0   : > { %5956 = vst [vmem:[#allocation62_spill] sm:$0xff] %v4438_v61  ;;  %5958 = vst [vmem:[#allocation64_spill] sm:$0xff] %v4446_v26  ;;  %v4449_v44 = vadd.f32 %v860_v27, %v4146_v15  ;;  %2743 = vperm.xlu0 %3561, %v3780_v45   ;;  %v4452_v0 = vpop.f32.mrf.mxu0 }
  0xe1   : > { %v862_v3 = vpop.f32.mrf.mxu1  ;;  %v4457_v12 = vpop.permute.xlu1 %1970 }
  0xe2   : > { %5959 = vst [vmem:[#allocation65_spill] sm:$0xff] %v4449_v44  ;;  %v4455_v46 = vadd.f32 %v862_v3, %v4150_v20  ;;  %5960 = vst [vmem:[#allocation66_spill] sm:$0xff] %v4457_v12  ;;  %v4459_v52 = vpop.f32.mrf.mxu0 }
  0xe3   : > { %v866_v61 = vpop.f32.mrf.mxu1  ;;  %2675 = vperm.xlu1 %3559, %v3838_v57   ;;  %v4462_v51 = vpop.permute.xlu0 %2083 }
  0xe4   : > { %5961 = vst [vmem:[#allocation67_spill] sm:$0xff] %v4462_v51  ;;  %v4465_v15 = vadd.f32 %v866_v61, %v4132_v62  ;;  %2755 = vperm.xlu0 %3561, %v3797_v48   ;;  %v4468_v45 = vpop.f32.mrf.mxu0 }
  0xe5   : > { %v868_v27 = vpop.f32.mrf.mxu1 }
  0xe6   : > { %5962 = vst [vmem:[#allocation68_spill] sm:$0xff] %v4465_v15  ;;  %v4471_v20 = vadd.f32 %v868_v27, %v4158_v22  ;;  %v4473_v3 = vpop.f32.mrf.mxu0  ;;  %v4476_v26 = vpop.permute.xlu1 %2075 }
  0xe7   : > { %v870_v12 = vpop.f32.mrf.mxu1  ;;  %2683 = vperm.xlu1 %3559, %v3875_v4   ;;  %5963 = vst [vmem:[#allocation69_spill] sm:$0xff] %v4476_v26  ;;  %v4478_v44 = vpop.permute.xlu0 %2091 }
  0xe8   : > { %5964 = vst [vmem:[#allocation70_spill] sm:$0xff] %v4478_v44  ;;  %v4481_v62 = vadd.f32 %v870_v12, %v4162_v23  ;;  %2763 = vperm.xlu0 %3561, %v3820_v54   ;;  %v4484_v48 = vpop.f32.mrf.mxu0 }
  0xe9   : > { %v872_v61 = vpop.f32.mrf.mxu1 }
  0xea   : > { %5965 = vst [vmem:[#allocation71_spill] sm:$0xff] %v4481_v62  ;;  %v4487_v22 = vadd.f32 %v872_v61, %v4172_v5  ;;  %v4489_v27 = vpop.f32.mrf.mxu0  ;;  %v4492_v15 = vpop.permute.xlu1 %2079 }
  0xeb   : > { %v876_v51 = vpop.f32.mrf.mxu1  ;;  %2691 = vperm.xlu1 %3559, %v3901_v13   ;;  %5966 = vst [vmem:[#allocation72_spill] sm:$0xff] %v4492_v15  ;;  %v4494_v26 = vpop.permute.xlu0 %2099 }
  0xec   : > { %5967 = vst [vmem:[#allocation73_spill] sm:$0xff] %v4494_v26  ;;  %v4497_v23 = vadd.f32 %v876_v51, %v4181_v28  ;;  %2771 = vperm.xlu0 %3561, %v3838_v57   ;;  %v4500_v54 = vpop.f32.mrf.mxu0 }
  0xed   : > { %v878_v12 = vpop.f32.mrf.mxu1 }
  0xee   : > { %5968 = vst [vmem:[#allocation74_spill] sm:$0xff] %v4497_v23  ;;  %v4503_v5 = vadd.f32 %v878_v12, %v4185_v29  ;;  %v4505_v61 = vpop.f32.mrf.mxu0  ;;  %v4508_v62 = vpop.permute.xlu1 %2087  ;;  %v470_v29 = vsub.s32 2, %v3831_v56 }
  0xef   : > { %v880_v44 = vpop.f32.mrf.mxu1  ;;  %2699 = vperm.xlu1 %3559, %v3920_v16   ;;  %5969 = vst [vmem:[#allocation75_spill] sm:$0xff] %v4508_v62  ;;  %v4510_v15 = vpop.permute.xlu0 %2107 }
  0xf0   : > { %5970 = vst [vmem:[#allocation76_spill] sm:$0xff] %v4510_v15  ;;  %v4513_v28 = vadd.f32 %v880_v44, %v4193_v31  ;;  %2779 = vperm.xlu0 %3561, %v3875_v4   ;;  %v4516_v57 = vpop.f32.mrf.mxu0 }
  0xf1   : > { %v882_v51 = vpop.f32.mrf.mxu1 }
  0xf2   : > { %5971 = vst [vmem:[#allocation77_spill] sm:$0xff] %v4513_v28  ;;  %v4520_v12 = vadd.f32 %v882_v51, %v4197_v32  ;;  %v4522_v26 = vpop.f32.mrf.mxu0  ;;  %v4525_v62 = vpop.permute.xlu1 %2095  ;;  %v471_v32 = vrot.slane %v3864_v1, %v470_v29 }
  0xf3   : > { %v886_v23 = vpop.f32.mrf.mxu1  ;;  %2707 = vperm.xlu1 %3559, %v3934_v18   ;;  %5973 = vst [vmem:[#allocation79_spill] sm:$0xff] %v4525_v62  ;;  %v4527_v15 = vpop.permute.xlu0 %2115  ;;  %v467_v62 = vrot.slane %v3864_v1, %v3861_v63  ;;  %v5982_v1 = vld [vmem:[#allocation15_spill] sm:$0xff] }
  0xf4   : > { %5972 = vst [vmem:[#allocation78_spill] sm:$0xff] %v4520_v12  ;;  %5974 = vst [vmem:[#allocation80_spill] sm:$0xff] %v4527_v15  ;;  %v4530_v31 = vadd.f32 %v886_v23, %v4203_v34  ;;  %2787 = vperm.xlu0 %3561, %v3901_v13   ;;  %v4533_v4 = vpop.f32.mrf.mxu0  ;;  %v5977_v15 = vmov 7   ;;  %v5980_v13 = vld [vmem:[#allocation14_spill] sm:$0xff]  ;;  %v5993_v12 = vld [vmem:[#allocation17_spill] sm:$0xff] }
  0xf5   : > { %v888_v56 = vpop.f32.mrf.mxu1 }
  0xf6   : > { %5975 = vst [vmem:[#allocation81_spill] sm:$0xff] %v4530_v31  ;;  %v4537_v44 = vadd.f32 %v888_v56, %v4207_v37  ;;  %v4539_v51 = vpop.f32.mrf.mxu0  ;;  %v4544_v34 = vpop.permute.xlu1 %2103  ;;  %v4556_v56 = vrot.slane %v471_v32, %v3861_v63 }
  0xf7   : > { %v890_v28 = vpop.f32.mrf.mxu1  ;;  %3562 = vset.pattern.permute.xlu1 %v5977_v15  ;;  %5978 = vst [vmem:[#allocation83_spill] sm:$0xff] %v4544_v34  ;;  %v4546_v23 = vpop.permute.xlu0 %2123 }
  0xf8   : > { %5976 = vst [vmem:[#allocation82_spill] sm:$0xff] %v4537_v44  ;;  %5979 = vst [vmem:[#allocation84_spill] sm:$0xff] %v4546_v23  ;;  %v4549_v31 = vadd.f32 %v890_v28, %v5980_v13  ;;  %2747 = vperm.xlu1 %3562, %v3772_v43   ;;  %2795 = vperm.xlu0 %3561, %v3920_v16   ;;  %v4553_v37 = vpop.f32.mrf.mxu0  ;;  %v4564_v23 = vrot.slane %v467_v62, %v3861_v63  ;;  %v5986_v16 = vld [vmem:[#allocation16_spill] sm:$0xff] }
  0xf9   : > { %v892_v29 = vpop.f32.mrf.mxu1  ;;  %v559_v32 = vmul.f32 %v4187_v30, %v4556_v56 }
  0xfa   : > { %5981 = vst [vmem:[#allocation14_spill] sm:$0xff] %v4549_v31  ;;  %v4559_v44 = vadd.f32 %v892_v29, %v5982_v1  ;;  %v4561_v15 = vpop.f32.mrf.mxu0  ;;  %v4566_v28 = vpop.permute.xlu1 %2111  ;;  %v563_v62 = vmul.f32 %v4199_v33, %v4564_v23 }
  0xfb   : > { %v896_v34 = vpop.f32.mrf.mxu1  ;;  %5984 = vst [vmem:[#allocation85_spill] sm:$0xff] %v4566_v28  ;;  %v4568_v43 = vpop.permute.xlu0 %2131 }
  0xfc   : > { %5983 = vst [vmem:[#allocation15_spill] sm:$0xff] %v4559_v44  ;;  %5985 = vst [vmem:[#allocation86_spill] sm:$0xff] %v4568_v43  ;;  %v4571_v13 = vadd.f32 %v896_v34, %v5986_v16  ;;  %2751 = vperm.xlu1 %3562, %v3807_v50   ;;  %2803 = vperm.xlu0 %3561, %v3934_v18   ;;  %v786_v29 = vpop.f32.mrf.mxu0  ;;  %v5989_v43 = vld [vmem:[#allocation2_spill] sm:$0xff]  ;;  %v568_v44 = vmul.f32 %v4257_v35, %v4564_v23 }
  0xfd   : > { %v898_v1 = vpop.f32.mrf.mxu1  ;;  %v4577_v31 = vadd.f32 %v786_v29, %v559_v32  ;;  %v565_v34 = vmul.f32 %v4199_v33, %v5989_v43  ;;  %v564_v32 = vmul.f32 %v4199_v33, %v4556_v56 }
  0xfe   : > { %5987 = vst [vmem:[#allocation16_spill] sm:$0xff] %v4571_v13  ;;  %v4580_v63 = vadd.f32 %v898_v1, %v4233_v40  ;;  %v788_v16 = vpop.f32.mrf.mxu0  ;;  %v4586_v13 = vpop.permute.xlu1 %2119 }
  0xff   : > { %v900_v28 = vpop.f32.mrf.mxu1  ;;  %5990 = vst [vmem:[#allocation2_spill] sm:$0xff] %v4586_v13  ;;  %v4588_v50 = vadd.f32 %v788_v16, %v563_v62  ;;  %v569_v16 = vmul.f32 %v4257_v35, %v4556_v56 }
 0x100   : > { %5988 = vst [vmem:[#allocation87_spill] sm:$0xff] %v4580_v63  ;;  %v4590_v18 = vadd.f32 %v900_v28, %v565_v34  ;;  %2759 = vperm.xlu1 %3562, %v3829_v55   ;;  %v4595_v40 = vpop.permute.xlu0 %2251  ;;  %v790_v29 = vpop.f32.mrf.mxu0  ;;  %v570_v28 = vmul.f32 %v4257_v35, %v5989_v43 }
 0x101   : > { %5992 = vst [vmem:[#allocation89_spill] sm:$0xff] %v4595_v40  ;;  %v4597_v1 = vadd.f32 %v790_v29, %v564_v32  ;;  %v902_v63 = vpop.f32.mrf.mxu1 }
 0x102   : > { %5991 = vst [vmem:[#allocation88_spill] sm:$0xff] %v4590_v18  ;;  %v4602_v13 = vadd.f32 %v902_v63, %v5993_v12  ;;  %v794_v62 = vpop.f32.mrf.mxu0  ;;  %v4606_v34 = vpop.permute.xlu1 %2127  ;;  %v571_v63 = vmul.f32 %v4257_v35, %v3893_v11 }
 0x103   : > { %5994 = vst [vmem:[#allocation17_spill] sm:$0xff] %v4606_v34  ;;  %v4608_v33 = vadd.f32 %v794_v62, %v568_v44  ;;  %v906_v55 = vpop.f32.mrf.mxu1  ;;  %v573_v44 = vmul.f32 %v4221_v8, %v4564_v23 }
 0x104   : > { %v4612_v32 = vadd.f32 %v906_v55, %v570_v28  ;;  %2767 = vperm.xlu1 %3562, %v3850_v59   ;;  %v4615_v29 = vpop.permute.xlu0 %2263  ;;  %v796_v12 = vpop.f32.mrf.mxu0  ;;  %v575_v28 = vmul.f32 %v4221_v8, %v5989_v43 }
 0x105   : > { %5996 = vst [vmem:[#allocation91_spill] sm:$0xff] %v4615_v29  ;;  %v4619_v40 = vadd.f32 %v796_v12, %v569_v16  ;;  %v908_v18 = vpop.f32.mrf.mxu1  ;;  %v574_v16 = vmul.f32 %v4221_v8, %v4556_v56 }
 0x106   : > { %5995 = vst [vmem:[#allocation90_spill] sm:$0xff] %v4612_v32  ;;  %v4623_v62 = vadd.f32 %v908_v18, %v571_v63  ;;  %v798_v34 = vpop.f32.mrf.mxu0  ;;  %v6001_v32 = vld [vmem:[#allocation20_spill] sm:$0xff] }
 0x107   : > { %v4627_v55 = vadd.f32 %v798_v34, %v573_v44  ;;  %v910_v59 = vpop.f32.mrf.mxu1  ;;  %v4632_v11 = vpop.permute.xlu1 %2247  ;;  %v578_v34 = vmul.f32 %v4228_v39, %v4564_v23 }
 0x108   : > { %5997 = vst [vmem:[#allocation92_spill] sm:$0xff] %v4623_v62  ;;  %v4629_v29 = vadd.f32 %v910_v59, %v575_v28  ;;  %2775 = vperm.xlu1 %3562, %v3880_v6   ;;  %5999 = vst [vmem:[#allocation94_spill] sm:$0xff] %v4632_v11  ;;  %v4634_v35 = vpop.permute.xlu0 %2271  ;;  %v800_v18 = vpop.f32.mrf.mxu0  ;;  %v580_v6 = vmul.f32 %v4228_v39, %v5989_v43  ;;  %v6006_v11 = vld [vmem:[#allocation21_spill] sm:$0xff] }
 0x109   : > { %6000 = vst [vmem:[#allocation95_spill] sm:$0xff] %v4634_v35  ;;  %v912_v12 = vpop.f32.mrf.mxu1  ;;  %v4638_v63 = vadd.f32 %v800_v18, %v574_v16 }
 0x10a   : > { %5998 = vst [vmem:[#allocation93_spill] sm:$0xff] %v4629_v29  ;;  %v4641_v62 = vadd.f32 %v912_v12, %v6001_v32  ;;  %v804_v44 = vpop.f32.mrf.mxu0  ;;  %v579_v32 = vmul.f32 %v4228_v39, %v4556_v56 }
 0x10b   : > { %v916_v28 = vpop.f32.mrf.mxu1  ;;  %v4647_v59 = vadd.f32 %v804_v44, %v578_v34  ;;  %v4652_v8 = vpop.permute.xlu1 %2255  ;;  %v584_v34 = vmul.f32 %v4235_v42, %v5989_v43 }
 0x10c   : > { %6002 = vst [vmem:[#allocation20_spill] sm:$0xff] %v4641_v62  ;;  %v4649_v35 = vadd.f32 %v916_v28, %v580_v6  ;;  %2783 = vperm.xlu1 %3562, %v3906_v14   ;;  %6004 = vst [vmem:[#allocation97_spill] sm:$0xff] %v4652_v8  ;;  %v4654_v16 = vpop.permute.xlu0 %2279  ;;  %v806_v18 = vpop.f32.mrf.mxu0  ;;  %v6007_v14 = vld [vmem:[#allocation3_spill] sm:$0xff] }
 0x10d   : > { %6005 = vst [vmem:[#allocation98_spill] sm:$0xff] %v4654_v16  ;;  %v918_v12 = vpop.f32.mrf.mxu1  ;;  %v4658_v29 = vadd.f32 %v806_v18, %v579_v32  ;;  %v509_v28 = vmul.f32 %v6007_v14, %v4564_v23 }
 0x10e   : > { %6003 = vst [vmem:[#allocation96_spill] sm:$0xff] %v4649_v35  ;;  %v4661_v62 = vadd.f32 %v918_v12, %v6006_v11  ;;  %v808_v6 = vpop.f32.mrf.mxu0  ;;  %v583_v11 = vmul.f32 %v4235_v42, %v4556_v56 }
 0x10f   : > { %v920_v44 = vpop.f32.mrf.mxu1  ;;  %v1021_v43 = vadd.f32 %v4396_v9, %v509_v28 }
 0x110   : > { %v4667_v35 = vadd.f32 %v920_v44, %v584_v34  ;;  %2791 = vperm.xlu1 %3562, %v3925_v17   ;;  %v4670_v39 = vpop.permute.xlu1 %2259  ;;  %v4672_v16 = vpop.permute.xlu0 %2287  ;;  %v510_v34 = vmul.f32 %v6007_v14, %v4556_v56 }
 0x111   : > { %6009 = vst [vmem:[#allocation3_spill] sm:$0xff] %v4670_v39  ;;  %6010 = vst [vmem:[#allocation99_spill] sm:$0xff] %v4672_v16  ;;  %v809_v32 = vpop.f32.mrf.mxu0  ;;  %v922_v18 = vpop.f32.mrf.mxu1 }
 0x112   : > { %6008 = vst [vmem:[#allocation21_spill] sm:$0xff] %v4667_v35  ;;  %v4677_v12 = vadd.f32 %v809_v32, %v583_v11  ;;  %v4680_v6 = vadd.f32 %v922_v18, %v4266_v47  ;;  %v1022_v28 = vadd.f32 %v4403_v38, %v510_v34  ;;  %v513_v47 = vmul.f32 %v4093_v41, %v4564_v23  ;;  %v6015_v34 = vld [vmem:[#allocation6_spill] sm:$0xff] }
 0x113   : > { %v3456_v17 = vpop.f32.mrf.mxu0  ;;  %v1310_v44 = vpop.f32.mrf.mxu1  ;;  %v514_v32 = vmul.f32 %v4093_v41, %v4556_v56 }
 0x114   : > { %v4685_v35 = vadd.f32 %v3456_v17, %v4270_v36  ;;  %v4687_v16 = vadd.f32 %v1310_v44, %v1021_v43  ;;  %2799 = vperm.xlu1 %3562, %v3939_v19   ;;  %v4690_v42 = vpop.permute.xlu1 %2267  ;;  %v4692_v9 = vpop.permute.xlu0 %2295  ;;  %v1025_v19 = vadd.f32 %v4412_v60, %v513_v47  ;;  %v518_v17 = vmul.f32 %v6015_v34, %v4564_v23 }
 0x115   : > { %6012 = vst [vmem:[#allocation101_spill] sm:$0xff] %v4690_v42  ;;  %6013 = vst [vmem:[#allocation102_spill] sm:$0xff] %v4692_v9  ;;  %v959_v11 = vpop.f32.mrf.mxu0  ;;  %v1312_v14 = vpop.f32.mrf.mxu1  ;;  %v1026_v38 = vadd.f32 %v4419_v24, %v514_v32  ;;  %v519_v47 = vmul.f32 %v6015_v34, %v4556_v56 }
 0x116   : > { %6011 = vst [vmem:[#allocation100_spill] sm:$0xff] %v4687_v16  ;;  %1864 = vrot.lane.b32.xlu0 %v4687_v16, %s3640_s9  ;;  %v4702_v36 = vadd.f32 %v1312_v14, %v1022_v28  ;;  %v1030_v28 = vadd.f32 %v4428_v21, %v518_v17 }
 0x117   : > { %v3457_v18 = vpop.f32.mrf.mxu0  ;;  %v1314_v43 = vpop.f32.mrf.mxu1 }
 0x118   : > { %6014 = vst [vmem:[#allocation103_spill] sm:$0xff] %v4702_v36  ;;  %v4708_v44 = vadd.f32 %v3457_v18, %v4274_v49  ;;  %v4710_v11 = vpop.permute.xlu1 %2275  ;;  %v4712_v41 = vpop.permute.xlu0 %2303  ;;  %v1601_v9 = vadd.f32 %v1314_v43, %v1025_v19  ;;  %v2166_v18 = vrot.slane %v4702_v36, 7 }
 0x119   : > { %6016 = vst [vmem:[#allocation6_spill] sm:$0xff] %v4710_v11  ;;  %6017 = vst [vmem:[#allocation104_spill] sm:$0xff] %v4712_v41  ;;  %v961_v42 = vpop.f32.mrf.mxu0  ;;  %v1316_v60 = vpop.f32.mrf.mxu1 }
 0x11a   : > { %v4718_v24 = vadd.f32 %v961_v42, %v4282_v10  ;;  %v1602_v14 = vadd.f32 %v1316_v60, %v1026_v38  ;;  %v1708_v41 = vrot.slane %v1601_v9, 7  ;;  %1866 = vrot.lane.b32.xlu1 %v1601_v9, %s3640_s9  ;;  %v1031_v42 = vadd.f32 %v4435_v7, %v519_v47  ;;  %v6019_v38 = vld [vmem:[#allocation5_spill] sm:$0xff] }
 0x11b   : > { %v3460_v19 = vpop.f32.mrf.mxu0  ;;  %v1320_v43 = vpop.f32.mrf.mxu1  ;;  %v523_v60 = vmul.f32 %v6019_v38, %v4564_v23  ;;  %v6020_v9 = vrot.slane %v4687_v16, 7 }
 0x11c   : > { %v2023_v11 = vrot.slane %v1602_v14, 1  ;;  %v2167_v21 = vrot.slane %v1602_v14, 7  ;;  %v4725_v17 = vadd.f32 %v3460_v19, %v4286_v2  ;;  %v1606_v34 = vadd.f32 %v1320_v43, %v1030_v28  ;;  %v4727_v10 = vpop.permute.xlu1 %2283 }
 0x11d   : > { %6018 = vst [vmem:[#allocation105_spill] sm:$0xff] %v4727_v10  ;;  %v4732_v32 = vpop.permute.xlu0 %2423  ;;  %v974_v49 = vpop.f32.mrf.mxu0  ;;  %v4737_v8 = vsel %vm1706_vm2, %v6020_v9, %v1708_v41  ;;  %v6022_v2 = vrot.slane %v4702_v36, 1  ;;  %v1035_v43 = vadd.f32 %v4442_v25, %v523_v60  ;;  %v524_v9 = vmul.f32 %v6019_v38, %v4556_v56 }
 0x11e   : > { %6021 = vst [vmem:[#allocation5_spill] sm:$0xff] %v4737_v8  ;;  %v1710_v14 = vrot.slane %v1606_v34, 7  ;;  %v4745_v7 = vadd.f32 %v974_v49, %v4290_v58  ;;  %v1322_v47 = vpop.f32.mrf.mxu1  ;;  %1868 = vrot.lane.b32.xlu0 %v1606_v34, %s3640_s9  ;;  %v2168_v19 = vsel %vm1706_vm2, %v2166_v18, %v2167_v21  ;;  %2197 = vrot.lane.b32.xlu1 %v2166_v18, %s3640_s9 }
 0x11f   : > { %v4742_v28 = vsel %vm2021_vm3, %v6022_v2, %v2023_v11  ;;  %v1607_v10 = vadd.f32 %v1322_v47, %v1031_v42  ;;  %v3461_v39 = vpop.f32.mrf.mxu0  ;;  %v6024_v2 = vld [vmem:[#allocation4_spill] sm:$0xff]  ;;  %v1036_v25 = vadd.f32 %v4452_v0, %v524_v9 }
 0x120   : > { %6023 = vst [vmem:[#allocation106_spill] sm:$0xff] %v4742_v28  ;;  %v528_v8 = vmul.f32 %v6024_v2, %v4564_v23  ;;  %v4756_v58 = vadd.f32 %v3461_v39, %v4294_v53  ;;  %v1324_v49 = vpop.f32.mrf.mxu1  ;;  %v4758_v36 = vpop.permute.xlu1 %2291  ;;  %v4761_v34 = vsel %vm1706_vm2, %v1708_v41, %v1710_v14  ;;  %v529_v53 = vmul.f32 %v6024_v2, %v4556_v56  ;;  %v6028_v39 = vld [vmem:[#allocation24_spill] sm:$0xff] }
 0x121   : > { %6025 = vst [vmem:[#allocation4_spill] sm:$0xff] %v4758_v36  ;;  %6026 = vst [vmem:[#allocation107_spill] sm:$0xff] %v4761_v34  ;;  %v2025_v60 = vrot.slane %v1607_v10, 1  ;;  %v2169_v38 = vrot.slane %v1607_v10, 7  ;;  %v1611_v42 = vadd.f32 %v1324_v49, %v1035_v43  ;;  %v4764_v47 = vpop.permute.xlu0 %2435  ;;  %v977_v18 = vpop.f32.mrf.mxu0  ;;  %v6031_v49 = vld [vmem:[#allocation25_spill] sm:$0xff] }
 0x122   : > { %6027 = vst [vmem:[#allocation108_spill] sm:$0xff] %v4764_v47  ;;  %v1040_v28 = vadd.f32 %v4459_v52, %v528_v8  ;;  %v4770_v16 = vadd.f32 %v977_v18, %v6028_v39  ;;  %v1326_v36 = vpop.f32.mrf.mxu1  ;;  %2199 = vrot.lane.b32.xlu0 %v2168_v19, %s3640_s9  ;;  %v1041_v52 = vadd.f32 %v4468_v45, %v529_v53  ;;  %v6030_v8 = vld [vmem:[#allocation7_spill] sm:$0xff]  ;;  %v6035_v53 = vld [vmem:[#allocation26_spill] sm:$0xff] }
 0x123   : > { %v4774_v41 = vsel %vm2021_vm3, %v2023_v11, %v2025_v60  ;;  %v1712_v0 = vrot.slane %v1611_v42, 7  ;;  %v1612_v10 = vadd.f32 %v1326_v36, %v1036_v25  ;;  %1870 = vrot.lane.b32.xlu1 %v1611_v42, %s3640_s9  ;;  %v3464_v43 = vpop.f32.mrf.mxu0  ;;  %v2170_v9 = vsel %vm1706_vm2, %v2167_v21, %v2169_v38  ;;  %v6052_v47 = vld [vmem:[#allocation31_spill] sm:$0xff] }
 0x124   : > { %6029 = vst [vmem:[#allocation24_spill] sm:$0xff] %v4774_v41  ;;  %v533_v2 = vmul.f32 %v6030_v8, %v4564_v23  ;;  %v4782_v18 = vadd.f32 %v3464_v43, %v6031_v49  ;;  %v1330_v39 = vpop.f32.mrf.mxu1  ;;  %v4784_v19 = vpop.permute.xlu1 %2299  ;;  %v534_v21 = vmul.f32 %v6030_v8, %v4556_v56  ;;  %v6037_v8 = vld [vmem:[#allocation8_spill] sm:$0xff] }
 0x125   : > { %6032 = vst [vmem:[#allocation7_spill] sm:$0xff] %v4784_v19  ;;  %v2027_v11 = vrot.slane %v1612_v10, 1  ;;  %v2171_v41 = vrot.slane %v1612_v10, 7  ;;  %v1616_v34 = vadd.f32 %v1330_v39, %v1040_v28  ;;  %v4786_v36 = vpop.permute.xlu0 %2443  ;;  %v990_v25 = vpop.f32.mrf.mxu0  ;;  %v4789_v42 = vsel %vm1706_vm2, %v1710_v14, %v1712_v0 }
 0x126   : > { %6033 = vst [vmem:[#allocation25_spill] sm:$0xff] %v4786_v36  ;;  %6034 = vst [vmem:[#allocation109_spill] sm:$0xff] %v4789_v42  ;;  %v1045_v45 = vadd.f32 %v4473_v3, %v533_v2  ;;  %v4795_v43 = vadd.f32 %v990_v25, %v6035_v53  ;;  %v1332_v49 = vpop.f32.mrf.mxu1  ;;  %v1046_v3 = vadd.f32 %v4484_v48, %v534_v21  ;;  %v6038_v25 = vld [vmem:[#allocation27_spill] sm:$0xff]  ;;  %v6042_v21 = vld [vmem:[#allocation28_spill] sm:$0xff] }
 0x127   : > { %v4798_v19 = vsel %vm2021_vm3, %v2025_v60, %v2027_v11  ;;  %v1714_v10 = vrot.slane %v1616_v34, 7  ;;  %v1617_v28 = vadd.f32 %v1332_v49, %v1041_v52  ;;  %2201 = vrot.lane.b32.xlu1 %v2170_v9, %s3640_s9  ;;  %1872 = vrot.lane.b32.xlu0 %v1616_v34, %s3640_s9  ;;  %v3465_v14 = vpop.f32.mrf.mxu0  ;;  %v2172_v39 = vsel %vm1706_vm2, %v2169_v38, %v2171_v41 }
 0x128   : > { %6036 = vst [vmem:[#allocation26_spill] sm:$0xff] %v4798_v19  ;;  %v538_v2 = vmul.f32 %v6037_v8, %v4564_v23  ;;  %v4807_v53 = vadd.f32 %v3465_v14, %v6038_v25  ;;  %v1334_v42 = vpop.f32.mrf.mxu1  ;;  %v4809_v60 = vpop.permute.xlu1 %2307  ;;  %v539_v38 = vmul.f32 %v6037_v8, %v4556_v56  ;;  %v6044_v8 = vld [vmem:[#allocation9_spill] sm:$0xff] }
 0x129   : > { %6039 = vst [vmem:[#allocation8_spill] sm:$0xff] %v4809_v60  ;;  %v2029_v36 = vrot.slane %v1617_v28, 1  ;;  %v2173_v52 = vrot.slane %v1617_v28, 7  ;;  %v1621_v49 = vadd.f32 %v1334_v42, %v1045_v45  ;;  %v4811_v9 = vpop.permute.xlu0 %2451  ;;  %v993_v34 = vpop.f32.mrf.mxu0  ;;  %v4814_v19 = vsel %vm1706_vm2, %v1712_v0, %v1714_v10 }
 0x12a   : > { %6040 = vst [vmem:[#allocation27_spill] sm:$0xff] %v4811_v9  ;;  %6041 = vst [vmem:[#allocation110_spill] sm:$0xff] %v4814_v19  ;;  %v1050_v48 = vadd.f32 %v4489_v27, %v538_v2  ;;  %v4820_v14 = vadd.f32 %v993_v34, %v6042_v21  ;;  %v1336_v25 = vpop.f32.mrf.mxu1  ;;  %v1051_v27 = vadd.f32 %v4500_v54, %v539_v38  ;;  %v6045_v34 = vld [vmem:[#allocation29_spill] sm:$0xff] }
 0x12b   : > { %v4823_v60 = vsel %vm2021_vm3, %v2027_v11, %v2029_v36  ;;  %v1716_v28 = vrot.slane %v1621_v49, 7  ;;  %v1622_v42 = vadd.f32 %v1336_v25, %v1046_v3  ;;  %1874 = vrot.lane.b32.xlu1 %v1621_v49, %s3640_s9  ;;  %2203 = vrot.lane.b32.xlu0 %v2172_v39, %s3640_s9  ;;  %v3468_v0 = vpop.f32.mrf.mxu0  ;;  %v2174_v45 = vsel %vm1706_vm2, %v2171_v41, %v2173_v52 }
 0x12c   : > { %6043 = vst [vmem:[#allocation28_spill] sm:$0xff] %v4823_v60  ;;  %v543_v2 = vmul.f32 %v6044_v8, %v4564_v23  ;;  %v4832_v21 = vadd.f32 %v3468_v0, %v6045_v34  ;;  %v1340_v9 = vpop.f32.mrf.mxu1  ;;  %v544_v54 = vmul.f32 %v6044_v8, %v4556_v56 }
 0x12d   : > { %v2031_v11 = vrot.slane %v1622_v42, 1  ;;  %v2175_v60 = vrot.slane %v1622_v42, 7  ;;  %v1626_v19 = vadd.f32 %v1340_v9, %v1050_v48  ;;  %v4834_v3 = vpop.permute.xlu1 %2427  ;;  %v4836_v49 = vpop.permute.xlu0 %2459  ;;  %v4839_v39 = vsel %vm1706_vm2, %v1714_v10, %v1716_v28  ;;  %v6050_v42 = vld [vmem:[#allocation30_spill] sm:$0xff] }
 0x12e   : > { %6046 = vst [vmem:[#allocation9_spill] sm:$0xff] %v4834_v3  ;;  %6047 = vst [vmem:[#allocation29_spill] sm:$0xff] %v4836_v49  ;;  %v1055_v41 = vadd.f32 %v4505_v61, %v543_v2  ;;  %v1006_v38 = vpop.f32.mrf.mxu0  ;;  %v1342_v25 = vpop.f32.mrf.mxu1  ;;  %v1056_v10 = vadd.f32 %v4516_v57, %v544_v54  ;;  %v6051_v61 = vld [vmem:[#allocation10_spill] sm:$0xff] }
 0x12f   : > { %6048 = vst [vmem:[#allocation111_spill] sm:$0xff] %v4839_v39  ;;  %v4845_v0 = vsel %vm2021_vm3, %v2029_v36, %v2031_v11  ;;  %v1718_v34 = vrot.slane %v1626_v19, 7  ;;  %v4848_v9 = vadd.f32 %v1006_v38, %v6050_v42  ;;  %v1627_v48 = vadd.f32 %v1342_v25, %v1051_v27  ;;  %2205 = vrot.lane.b32.xlu1 %v2174_v45, %s3640_s9 }
 0x130   : > { %6049 = vst [vmem:[#allocation112_spill] sm:$0xff] %v4845_v0  ;;  %1876 = vrot.lane.b32.xlu0 %v1626_v19, %s3640_s9  ;;  %v548_v2 = vmul.f32 %v6051_v61, %v4564_v23  ;;  %v3469_v8 = vpop.f32.mrf.mxu0  ;;  %v1344_v49 = vpop.f32.mrf.mxu1  ;;  %v2176_v39 = vsel %vm1706_vm2, %v2173_v52, %v2175_v60  ;;  %v549_v57 = vmul.f32 %v6051_v61, %v4556_v56 }
 0x131   : > { %v2033_v36 = vrot.slane %v1627_v48, 1  ;;  %v2177_v0 = vrot.slane %v1627_v48, 7  ;;  %v4857_v3 = vadd.f32 %v3469_v8, %v6052_v47  ;;  %v1631_v38 = vadd.f32 %v1344_v49, %v1055_v41  ;;  %v4859_v27 = vpop.permute.xlu1 %2431  ;;  %v4861_v45 = vpop.permute.xlu0 %2467  ;;  %v6057_v48 = vld [vmem:[#allocation32_spill] sm:$0xff] }
 0x132   : > { %6053 = vst [vmem:[#allocation30_spill] sm:$0xff] %v4859_v27  ;;  %6054 = vst [vmem:[#allocation10_spill] sm:$0xff] %v4861_v45  ;;  %v1060_v19 = vadd.f32 %v4522_v26, %v548_v2  ;;  %v1009_v54 = vpop.f32.mrf.mxu0  ;;  %v1346_v25 = vpop.f32.mrf.mxu1  ;;  %v4867_v42 = vsel %vm1706_vm2, %v1716_v28, %v1718_v34  ;;  %v6058_v26 = vld [vmem:[#allocation11_spill] sm:$0xff] }
 0x133   : > { %6055 = vst [vmem:[#allocation31_spill] sm:$0xff] %v4867_v42  ;;  %v4870_v52 = vsel %vm2021_vm3, %v2031_v11, %v2033_v36  ;;  %v1720_v47 = vrot.slane %v1631_v38, 7  ;;  %v4873_v49 = vadd.f32 %v1009_v54, %v6057_v48  ;;  %v1632_v41 = vadd.f32 %v1346_v25, %v1056_v10  ;;  %1878 = vrot.lane.b32.xlu1 %v1631_v38, %s3640_s9 }
 0x134   : > { %6056 = vst [vmem:[#allocation113_spill] sm:$0xff] %v4870_v52  ;;  %2207 = vrot.lane.b32.xlu0 %v2176_v39, %s3640_s9  ;;  %v553_v61 = vmul.f32 %v6058_v26, %v4564_v23  ;;  %v1350_v2 = vpop.f32.mrf.mxu1  ;;  %v4879_v8 = vpop.f32.mrf.mxu0  ;;  %v2178_v28 = vsel %vm1706_vm2, %v2175_v60, %v2177_v0  ;;  %v1061_v11 = vadd.f32 %v4533_v4, %v549_v57 }
 0x135   : > { %v2035_v45 = vrot.slane %v1632_v41, 1  ;;  %v2179_v52 = vrot.slane %v1632_v41, 7  ;;  %v1636_v42 = vadd.f32 %v1350_v2, %v1060_v19  ;;  %v4883_v54 = vpop.permute.xlu1 %2439  ;;  %v4885_v10 = vpop.permute.xlu0 %2475  ;;  %v554_v39 = vmul.f32 %v6058_v26, %v4556_v56  ;;  %v6062_v56 = vld [vmem:[#allocation54_spill] sm:$0xff] }
 0x136   : > { %6059 = vst [vmem:[#allocation32_spill] sm:$0xff] %v4885_v10  ;;  %v1352_v38 = vpop.f32.mrf.mxu1  ;;  %v1424_v25 = vpop.f32.mrf.mxu0  ;;  %v4890_v48 = vsel %vm1706_vm2, %v1718_v34, %v1720_v47  ;;  %v1065_v27 = vadd.f32 %v4539_v51, %v553_v61  ;;  %v558_v19 = vmul.f32 %v4187_v30, %v4564_v23  ;;  %v3641_v51 = vmov 8  }
 0x137   : > { %6060 = vst [vmem:[#allocation11_spill] sm:$0xff] %v4890_v48  ;;  %v4894_v60 = vsel %vm2021_vm3, %v2033_v36, %v2035_v45  ;;  %v1722_v4 = vrot.slane %v1636_v42, 7  ;;  %v1637_v57 = vadd.f32 %v1352_v38, %v1061_v11  ;;  %2209 = vrot.lane.b32.xlu1 %v2178_v28, %s3640_s9  ;;  %v1600_v41 = vadd.f32 %v1424_v25, %v6062_v56 }
 0x138   : > { %6061 = vst [vmem:[#allocation114_spill] sm:$0xff] %v4894_v60  ;;  %1880 = vrot.lane.b32.xlu0 %v1636_v42, %s3640_s9  ;;  %v1354_v26 = vpop.f32.mrf.mxu1  ;;  %v4901_v2 = vpop.f32.mrf.mxu0  ;;  %v2180_v34 = vsel %vm1706_vm2, %v2177_v0, %v2179_v52  ;;  %3563 = vset.pattern.permute.xlu1 %v3641_v51  ;;  %v1066_v36 = vadd.f32 %v4553_v37, %v554_v39 }
 0x139   : > { %v2037_v61 = vrot.slane %v1637_v57, 1  ;;  %v2181_v11 = vrot.slane %v1637_v57, 7  ;;  %v1641_v38 = vadd.f32 %v1354_v26, %v1065_v27  ;;  %v4905_v28 = vpop.permute.xlu1 %2447  ;;  %v4907_v42 = vpop.permute.xlu0 %2483  ;;  %3564 = vset.pattern.permute.xlu0 %v3641_v51  ;;  %v4910_v25 = vsel %vm1706_vm2, %v1720_v47, %v1722_v4  ;;  %v6067_v27 = vld [vmem:[#allocation58_spill] sm:$0xff] }
 0x13a   : > { %6063 = vst [vmem:[#allocation54_spill] sm:$0xff] %v4905_v28  ;;  %6064 = vst [vmem:[#allocation115_spill] sm:$0xff] %v4907_v42  ;;  %v1356_v30 = vpop.f32.mrf.mxu1  ;;  %v1428_v23 = vpop.f32.mrf.mxu0  ;;  %v1070_v56 = vadd.f32 %v4561_v15, %v558_v19 }
 0x13b   : > { %6065 = vst [vmem:[#allocation116_spill] sm:$0xff] %v4910_v25  ;;  %v4914_v0 = vsel %vm2021_vm3, %v2035_v45, %v2037_v61  ;;  %v1724_v10 = vrot.slane %v1641_v38, 7  ;;  %v1642_v37 = vadd.f32 %v1356_v30, %v1066_v36  ;;  %1882 = vrot.lane.b32.xlu1 %v1641_v38, %s3640_s9  ;;  %v4919_v39 = vadd.f32 %v1428_v23, %v6067_v27 }
 0x13c   : > { %6066 = vst [vmem:[#allocation117_spill] sm:$0xff] %v4914_v0  ;;  %2211 = vrot.lane.b32.xlu0 %v2180_v34, %s3640_s9  ;;  %v1360_v57 = vpop.f32.mrf.mxu1  ;;  %v4921_v26 = vpop.f32.mrf.mxu0  ;;  %v2182_v47 = vsel %vm1706_vm2, %v2179_v52, %v2181_v11  ;;  %v2598_v45 = vrot.slane %v1600_v41, 7  ;;  %v6071_v52 = vld [vmem:[#allocation62_spill] sm:$0xff] }
 0x13d   : > { %v2039_v51 = vrot.slane %v1642_v37, 1  ;;  %v2183_v42 = vrot.slane %v1642_v37, 7  ;;  %v1646_v15 = vadd.f32 %v1360_v57, %v1070_v56  ;;  %v4924_v19 = vpop.permute.xlu1 %2455  ;;  %v2599_v36 = vrot.slane %v4919_v39, 7 }
 0x13e   : > { %6068 = vst [vmem:[#allocation58_spill] sm:$0xff] %v4924_v19  ;;  %v1362_v30 = vpop.f32.mrf.mxu1  ;;  %v1434_v38 = vpop.f32.mrf.mxu0  ;;  %v4928_v34 = vsel %vm1706_vm2, %v1722_v4, %v1724_v10 }
 0x13f   : > { %6069 = vst [vmem:[#allocation118_spill] sm:$0xff] %v4928_v34  ;;  %v4931_v23 = vsel %vm2021_vm3, %v2037_v61, %v2039_v51  ;;  %v1726_v27 = vrot.slane %v1646_v15, 7  ;;  %v1647_v0 = vadd.f32 %v1362_v30, %v4577_v31  ;;  %v4935_v48 = vadd.f32 %v1434_v38, %v6071_v52  ;;  %v4937_v56 = vpop.permute.xlu0 %2651  ;;  %2213 = vrot.lane.b32.xlu1 %v2182_v47, %s3640_s9 }
 0x140   : > { %6070 = vst [vmem:[#allocation119_spill] sm:$0xff] %v4931_v23  ;;  %6072 = vst [vmem:[#allocation62_spill] sm:$0xff] %v4937_v56  ;;  %1884 = vrot.lane.b32.xlu0 %v1646_v15, %s3640_s9  ;;  %v1364_v41 = vpop.f32.mrf.mxu1  ;;  %v4941_v37 = vpop.f32.mrf.mxu0  ;;  %v2184_v4 = vsel %vm1706_vm2, %v2181_v11, %v2183_v42  ;;  %v4945_v61 = vsel %vm1706_vm2, %v2598_v45, %v2599_v36 }
 0x141   : > { %6073 = vst [vmem:[#allocation120_spill] sm:$0xff] %v4945_v61  ;;  %v2041_v57 = vrot.slane %v1647_v0, 1  ;;  %v2185_v34 = vrot.slane %v1647_v0, 7  ;;  %v2601_v31 = vrot.slane %v4935_v48, 7  ;;  %v4948_v30 = vpop.permute.xlu1 %2463  ;;  %v4951_v38 = vadd.f32 %v1364_v41, %v4588_v50 }
 0x142   : > { %6074 = vst [vmem:[#allocation121_spill] sm:$0xff] %v4948_v30  ;;  %v1366_v47 = vpop.f32.mrf.mxu1  ;;  %v1438_v52 = vpop.f32.mrf.mxu0  ;;  %v4954_v15 = vsel %vm1706_vm2, %v1724_v10, %v1726_v27 }
 0x143   : > { %6075 = vst [vmem:[#allocation122_spill] sm:$0xff] %v4954_v15  ;;  %v4957_v56 = vsel %vm2021_vm3, %v2039_v51, %v2041_v57  ;;  %v4960_v11 = vsel %vm1706_vm2, %v2599_v36, %v2601_v31  ;;  %v1652_v0 = vadd.f32 %v1366_v47, %v4597_v1  ;;  %v4963_v45 = vpop.permute.xlu0 %2663  ;;  %v4967_v50 = vadd.f32 %v1438_v52, %v4455_v46 }
 0x144   : > { %6076 = vst [vmem:[#allocation123_spill] sm:$0xff] %v4957_v56  ;;  %6077 = vst [vmem:[#allocation124_spill] sm:$0xff] %v4960_v11  ;;  %2215 = vrot.lane.b32.xlu0 %v2184_v4, %s3640_s9  ;;  %v1370_v41 = vpop.f32.mrf.mxu1  ;;  %v4969_v61 = vpop.f32.mrf.mxu0  ;;  %v4972_v10 = vsel %vm1706_vm2, %v2183_v42, %v2185_v34  ;;  %v1728_v36 = vrot.slane %v4951_v38, 7 }
 0x145   : > { %6078 = vst [vmem:[#allocation125_spill] sm:$0xff] %v4963_v45  ;;  %v2043_v51 = vrot.slane %v1652_v0, 1  ;;  %v2187_v56 = vrot.slane %v1652_v0, 7  ;;  %v4974_v15 = vpop.permute.xlu1 %2471  ;;  %v2603_v1 = vrot.slane %v4967_v50, 7  ;;  %v4979_v47 = vadd.f32 %v1370_v41, %v4608_v33 }
 0x146   : > { %6079 = vst [vmem:[#allocation126_spill] sm:$0xff] %v4974_v15  ;;  %v1372_v4 = vpop.f32.mrf.mxu1  ;;  %v1444_v46 = vpop.f32.mrf.mxu0 }
 0x147   : > { %v4982_v52 = vsel %vm2021_vm3, %v2041_v57, %v2043_v51  ;;  %v1657_v45 = vadd.f32 %v1372_v4, %v4619_v40  ;;  %v4985_v42 = vpop.permute.xlu0 %2671  ;;  %v4988_v0 = vadd.f32 %v1444_v46, %v4471_v20  ;;  %v4993_v25 = vsel %vm1706_vm2, %v2601_v31, %v2603_v1 }
 0x148   : > { %6080 = vst [vmem:[#allocation127_spill] sm:$0xff] %v4982_v52  ;;  %6081 = vst [vmem:[#allocation128_spill] sm:$0xff] %v4985_v42  ;;  %v1374_v11 = vpop.f32.mrf.mxu1  ;;  %v4990_v23 = vpop.f32.mrf.mxu0  ;;  %v4996_v33 = vsel %vm1706_vm2, %v2185_v34, %v2187_v56  ;;  %v1730_v40 = vrot.slane %v4979_v47, 7  ;;  %v5006_v52 = vsel %vm1706_vm2, %v1726_v27, %v1728_v36 }
 0x149   : > { %6082 = vst [vmem:[#allocation129_spill] sm:$0xff] %v4993_v25  ;;  %v2045_v41 = vrot.slane %v1657_v45, 1  ;;  %v2189_v15 = vrot.slane %v1657_v45, 7  ;;  %v4998_v57 = vpop.permute.xlu1 %2479  ;;  %v5884_v4 = vrot.slane %v4988_v0, 7  ;;  %v5003_v20 = vadd.f32 %v1374_v11, %v4627_v55  ;;  %6084 = vst [vmem:[#allocation131_spill] sm:$0xff] %v5006_v52 }
 0x14a   : > { %6083 = vst [vmem:[#allocation130_spill] sm:$0xff] %v4998_v57  ;;  %v1376_v46 = vpop.f32.mrf.mxu1  ;;  %v1448_v42 = vpop.f32.mrf.mxu0 }
 0x14b   : > { %v5009_v31 = vsel %vm2021_vm3, %v2043_v51, %v2045_v41  ;;  %v1662_v34 = vadd.f32 %v1376_v46, %v4638_v63  ;;  %v5012_v45 = vpop.permute.xlu0 %2679  ;;  %v5019_v55 = vsel %vm1706_vm2, %v2603_v1, %v5884_v4  ;;  %v5022_v11 = vsel %vm1706_vm2, %v2187_v56, %v2189_v15 }
 0x14c   : > { %6085 = vst [vmem:[#allocation132_spill] sm:$0xff] %v5009_v31  ;;  %6086 = vst [vmem:[#allocation133_spill] sm:$0xff] %v5012_v45  ;;  %v1380_v25 = vpop.f32.mrf.mxu1  ;;  %v5014_v57 = vpop.f32.mrf.mxu0  ;;  %v1732_v51 = vrot.slane %v5003_v20, 7  ;;  %v5026_v31 = vadd.f32 %v1448_v42, %v4487_v22  ;;  %v5029_v45 = vsel %vm1706_vm2, %v1728_v36, %v1730_v40 }
 0x14d   : > { %6087 = vst [vmem:[#allocation134_spill] sm:$0xff] %v5019_v55  ;;  %v2047_v27 = vrot.slane %v1662_v34, 1  ;;  %v2191_v52 = vrot.slane %v1662_v34, 7  ;;  %6089 = vst [vmem:[#allocation136_spill] sm:$0xff] %v5029_v45  ;;  %v5048_v36 = vadd.f32 %v1380_v25, %v4647_v59 }
 0x14e   : > { %6088 = vst [vmem:[#allocation135_spill] sm:$0xff] %v5026_v31  ;;  %v1382_v63 = vpop.f32.mrf.mxu1  ;;  %v1454_v46 = vpop.f32.mrf.mxu0  ;;  %v5053_v45 = vsel %vm1706_vm2, %v1730_v40, %v1732_v51  ;;  %v6099_v40 = vld [vmem:[#allocation57_spill] sm:$0xff] }
 0x14f   : > { %v5032_v60 = vsel %vm2021_vm3, %v2045_v41, %v2047_v27  ;;  %v1667_v1 = vadd.f32 %v1382_v63, %v4658_v29  ;;  %v5036_v56 = vadd.f32 %v1454_v46, %v4503_v5  ;;  %v5038_v4 = vpop.permute.xlu1 %2647  ;;  %v5040_v34 = vpop.permute.xlu0 %2687  ;;  %v5045_v42 = vsel %vm1706_vm2, %v2189_v15, %v2191_v52  ;;  %6095 = vst [vmem:[#allocation142_spill] sm:$0xff] %v5053_v45 }
 0x150   : > { %6090 = vst [vmem:[#allocation137_spill] sm:$0xff] %v5032_v60  ;;  %6092 = vst [vmem:[#allocation139_spill] sm:$0xff] %v5038_v4  ;;  %v1384_v55 = vpop.f32.mrf.mxu1  ;;  %v5042_v22 = vpop.f32.mrf.mxu0  ;;  %v2607_v5 = vrot.slane %v5026_v31, 7  ;;  %v5073_v45 = vadd.f32 %v4901_v2, %v6099_v40  ;;  %v6105_v2 = vld [vmem:[#allocation82_spill] sm:$0xff] }
 0x151   : > { %6091 = vst [vmem:[#allocation138_spill] sm:$0xff] %v5036_v56  ;;  %6093 = vst [vmem:[#allocation140_spill] sm:$0xff] %v5040_v34  ;;  %v2049_v41 = vrot.slane %v1667_v1, 1  ;;  %v2193_v60 = vrot.slane %v1667_v1, 7  ;;  %v2609_v29 = vrot.slane %v5036_v56, 7 }
 0x152   : > { %6094 = vst [vmem:[#allocation141_spill] sm:$0xff] %v5045_v42  ;;  %v1385_v63 = vpop.f32.mrf.mxu1  ;;  %v1458_v46 = vpop.f32.mrf.mxu0 }
 0x153   : > { %v5056_v55 = vsel %vm2021_vm3, %v2047_v27, %v2049_v41  ;;  %v1671_v15 = vadd.f32 %v1385_v63, %v4677_v12  ;;  %v5059_v34 = vpop.permute.xlu1 %2655  ;;  %v5061_v59 = vpop.permute.xlu0 %2695  ;;  %v5066_v4 = vsel %vm1706_vm2, %v2607_v5, %v2609_v29  ;;  %v5069_v30 = vsel %vm1706_vm2, %v2191_v52, %v2193_v60 }
 0x154   : > { %6096 = vst [vmem:[#allocation143_spill] sm:$0xff] %v5056_v55  ;;  %6097 = vst [vmem:[#allocation144_spill] sm:$0xff] %v5059_v34  ;;  %v5063_v25 = vpop.f32.mrf.mxu0  ;;  %v3478_v1 = vpop.f32.mrf.mxu1  ;;  %v1734_v27 = vrot.slane %v5048_v36, 7  ;;  %v6100_v55 = vld [vmem:[#allocation78_spill] sm:$0xff] }
 0x155   : > { %6098 = vst [vmem:[#allocation145_spill] sm:$0xff] %v5066_v4  ;;  %v2051_v12 = vrot.slane %v1671_v15, 1  ;;  %v2195_v63 = vrot.slane %v1671_v15, 7  ;;  %v5077_v34 = vadd.f32 %v1458_v46, %v6100_v55  ;;  %v5080_v56 = vadd.f32 %v3478_v1, %v4685_v35  ;;  %v6102_v4 = vld [vmem:[#allocation53_spill] sm:$0xff] }
 0x156   : > { %v1464_v19 = vpop.f32.mrf.mxu0  ;;  %v1535_v31 = vpop.f32.mrf.mxu1  ;;  %v5084_v52 = vadd.f32 %v4879_v8, %v6102_v4  ;;  %v5104_v4 = vsel %vm1706_vm2, %v1732_v51, %v1734_v27 }
 0x157   : > { %6101 = vst [vmem:[#allocation57_spill] sm:$0xff] %v5077_v34  ;;  %v5087_v42 = vsel %vm2021_vm3, %v2049_v41, %v2051_v12  ;;  %v5090_v40 = vadd.f32 %v1464_v19, %v6105_v2  ;;  %v5092_v28 = vpop.permute.xlu1 %2659  ;;  %v5094_v15 = vpop.permute.xlu0 %2703  ;;  %v5097_v46 = vsel %vm1706_vm2, %v2193_v60, %v2195_v63  ;;  %6109 = vst [vmem:[#allocation148_spill] sm:$0xff] %v5104_v4  ;;  %v2611_v19 = vrot.slane %v5077_v34, 7  ;;  %v6112_v63 = vld [vmem:[#allocation15_spill] sm:$0xff] }
 0x158   : > { %6103 = vst [vmem:[#allocation78_spill] sm:$0xff] %v5084_v52  ;;  %6104 = vst [vmem:[#allocation53_spill] sm:$0xff] %v5087_v42  ;;  %v5099_v35 = vpop.f32.mrf.mxu0  ;;  %v3479_v31 = vpop.f32.mrf.mxu1  ;;  %v6110_v12 = vrot.slane %v4988_v0, 7  ;;  %v2374_v60 = vrot.slane %v5084_v52, 1 }
 0x159   : > { %6106 = vst [vmem:[#allocation82_spill] sm:$0xff] %v5090_v40  ;;  %6107 = vst [vmem:[#allocation146_spill] sm:$0xff] %v5092_v28  ;;  %v2613_v8 = vrot.slane %v5090_v40, 7 }
 0x15a   : > { %6108 = vst [vmem:[#allocation147_spill] sm:$0xff] %v5097_v46  ;;  %v1468_v41 = vpop.f32.mrf.mxu0  ;;  %v1537_v1 = vpop.f32.mrf.mxu1  ;;  %v5110_v2 = vsel %vm1706_vm2, %v6110_v12, %v2607_v5  ;;  %v6116_v5 = vrot.slane %v5073_v45, 1 }
 0x15b   : > { %6111 = vst [vmem:[#allocation149_spill] sm:$0xff] %v5110_v2  ;;  %v5114_v42 = vadd.f32 %v1468_v41, %v6112_v63  ;;  %v1605_v55 = vadd.f32 %v1537_v1, %v4718_v24  ;;  %v5117_v28 = vpop.permute.xlu1 %2667  ;;  %v2744_v51 = vpop.permute.xlu0 %2743  ;;  %v5123_v34 = vsel %vm1706_vm2, %v2611_v19, %v2613_v8  ;;  %v6117_v1 = vld [vmem:[#allocation87_spill] sm:$0xff] }
 0x15c   : > { %6114 = vst [vmem:[#allocation150_spill] sm:$0xff] %v5117_v28  ;;  %v2806_v27 = vmul.f32 %v2744_v51, %v4919_v39  ;;  %v5120_v4 = vpop.f32.mrf.mxu0  ;;  %v3482_v40 = vpop.f32.mrf.mxu1  ;;  %6115 = vst [vmem:[#allocation151_spill] sm:$0xff] %v5123_v34  ;;  %v2376_v12 = vsel %vm2021_vm3, %v2374_v60, %v6116_v5  ;;  %v5139_v34 = vsel %vm1706_vm2, %v2609_v29, %v2611_v19  ;;  %v2918_v60 = vrot.slane %v5080_v56, 1 }
 0x15d   : > { %6113 = vst [vmem:[#allocation15_spill] sm:$0xff] %v5114_v42  ;;  %v2615_v41 = vrot.slane %v5114_v42, 7  ;;  %v2917_v63 = vrot.slane %v1605_v55, 1  ;;  %v1615_v55 = vadd.f32 %v3479_v31, %v4708_v44  ;;  %v1630_v5 = vadd.f32 %v3482_v40, %v4725_v17 }
 0x15e   : > { %v1474_v2 = vpop.f32.mrf.mxu0  ;;  %v1550_v24 = vpop.f32.mrf.mxu1  ;;  %2838 = vrot.lane.b32.xlu1 %v2806_v27, %s3640_s9 }
 0x15f   : > { %v5131_v28 = vadd.f32 %v1474_v2, %v6117_v1  ;;  %v1620_v39 = vadd.f32 %v1550_v24, %v4745_v7  ;;  %v5134_v51 = vpop.permute.xlu1 %2675  ;;  %v5136_v52 = vpop.permute.xlu0 %2755  ;;  %v2486_v2 = vmul.f32 %v4732_v32, %v2376_v12  ;;  %v5151_v56 = vsel %vm1706_vm2, %v2613_v8, %v2615_v41 }
 0x160   : > { %6118 = vst [vmem:[#allocation87_spill] sm:$0xff] %v5134_v51  ;;  %v5144_v42 = vpop.f32.mrf.mxu0  ;;  %v3483_v27 = vpop.f32.mrf.mxu1  ;;  %v5154_v44 = vsel %vm2021_vm3, %v2917_v63, %v2918_v60  ;;  %v2926_v31 = vrot.slane %v1630_v5, 1 }
 0x161   : > { %v2617_v7 = vrot.slane %v5131_v28, 7  ;;  %v2922_v24 = vrot.slane %v1620_v39, 1  ;;  %v1635_v1 = vadd.f32 %v3483_v27, %v4756_v58  ;;  %6119 = vst [vmem:[#allocation152_spill] sm:$0xff] %v5154_v44  ;;  %v2920_v58 = vrot.slane %v1615_v55, 1 }
 0x162   : > { %v1478_v51 = vpop.f32.mrf.mxu0  ;;  %v1553_v46 = vpop.f32.mrf.mxu1  ;;  %2518 = vrot.lane.b32.xlu1 %v2486_v2, %s3640_s9 }
 0x163   : > { %v5157_v17 = vadd.f32 %v1478_v51, %v4602_v13  ;;  %v1625_v32 = vadd.f32 %v1553_v46, %v4770_v16  ;;  %v5160_v29 = vpop.permute.xlu1 %2683  ;;  %v5163_v40 = vsel %vm1706_vm2, %v2615_v41, %v2617_v7  ;;  %v2928_v19 = vrot.slane %v1635_v1, 1  ;;  %v5168_v27 = vpop.permute.xlu0 %2763  ;;  %v6123_v41 = vld [vmem:[#allocation92_spill] sm:$0xff] }
 0x164   : > { %6120 = vst [vmem:[#allocation153_spill] sm:$0xff] %v5160_v29  ;;  %v5165_v12 = vpop.f32.mrf.mxu0  ;;  %v3486_v8 = vpop.f32.mrf.mxu1  ;;  %v5173_v16 = vsel %vm2021_vm3, %v2920_v58, %v2922_v24 }
 0x165   : > { %v2619_v39 = vrot.slane %v5157_v17, 7  ;;  %v2924_v63 = vrot.slane %v1625_v32, 1  ;;  %6121 = vst [vmem:[#allocation154_spill] sm:$0xff] %v5173_v16  ;;  %v5176_v46 = vsel %vm2021_vm3, %v2926_v31, %v2928_v19  ;;  %v1650_v32 = vadd.f32 %v3486_v8, %v4782_v18 }
 0x166   : > { %v1484_v13 = vpop.f32.mrf.mxu0  ;;  %v1566_v51 = vpop.f32.mrf.mxu1  ;;  %1886 = vrot.lane.b32.xlu1 %v4951_v38, %s3640_s9  ;;  %6122 = vst [vmem:[#allocation155_spill] sm:$0xff] %v5176_v46 }
 0x167   : > { %v5179_v55 = vadd.f32 %v1484_v13, %v6123_v41  ;;  %v1640_v5 = vadd.f32 %v1566_v51, %v4795_v43  ;;  %v5182_v2 = vpop.permute.xlu1 %2691  ;;  %v5185_v1 = vsel %vm1706_vm2, %v2617_v7, %v2619_v39  ;;  %v5191_v16 = vsel %vm2021_vm3, %v2922_v24, %v2924_v63  ;;  %v5206_v24 = vpop.permute.xlu0 %2771  ;;  %v6129_v51 = vld [vmem:[#allocation20_spill] sm:$0xff] }
 0x168   : > { %6124 = vst [vmem:[#allocation92_spill] sm:$0xff] %v5182_v2  ;;  %v5188_v44 = vpop.f32.mrf.mxu0  ;;  %v3487_v38 = vpop.f32.mrf.mxu1  ;;  %6125 = vst [vmem:[#allocation156_spill] sm:$0xff] %v5191_v16  ;;  %v5198_v7 = vsel %vm2021_vm3, %v2918_v60, %v2920_v58  ;;  %v5201_v18 = vsel %vm2021_vm3, %v2924_v63, %v2926_v31  ;;  %v2934_v16 = vrot.slane %v1650_v32, 1  ;;  %v6132_v31 = vld [vmem:[#allocation61_spill] sm:$0xff] }
 0x169   : > { %v2621_v46 = vrot.slane %v5179_v55, 7  ;;  %v2930_v29 = vrot.slane %v1640_v5, 1  ;;  %v1655_v13 = vadd.f32 %v3487_v38, %v4807_v53  ;;  %6126 = vst [vmem:[#allocation157_spill] sm:$0xff] %v5198_v7  ;;  %6127 = vst [vmem:[#allocation158_spill] sm:$0xff] %v5201_v18 }
 0x16a   : > { %v1488_v41 = vpop.f32.mrf.mxu0  ;;  %v1569_v43 = vpop.f32.mrf.mxu1  ;;  %2217 = vrot.lane.b32.xlu1 %v4972_v10, %s3640_s9 }
 0x16b   : > { %v5204_v8 = vsel %vm1706_vm2, %v2619_v39, %v2621_v46  ;;  %v5209_v5 = vadd.f32 %v1488_v41, %v6129_v51  ;;  %v1645_v53 = vadd.f32 %v1569_v43, %v4820_v14  ;;  %v5212_v38 = vpop.permute.xlu1 %2699  ;;  %v2936_v10 = vrot.slane %v1655_v13, 1 }
 0x16c   : > { %6128 = vst [vmem:[#allocation159_spill] sm:$0xff] %v5204_v8  ;;  %6130 = vst [vmem:[#allocation20_spill] sm:$0xff] %v5212_v38  ;;  %v5214_v2 = vpop.f32.mrf.mxu0  ;;  %v3490_v60 = vpop.f32.mrf.mxu1  ;;  %v5217_v58 = vsel %vm2021_vm3, %v2928_v19, %v2930_v29  ;;  %v5221_v39 = vadd.f32 %v4921_v26, %v6132_v31  ;;  %v6173_v38 = vld [vmem:[#allocation67_spill] sm:$0xff]  ;;  %v6178_v8 = vld [vmem:[#allocation25_spill] sm:$0xff] }
 0x16d   : > { %6131 = vst [vmem:[#allocation160_spill] sm:$0xff] %v5217_v58  ;;  %v2623_v63 = vrot.slane %v5209_v5, 7  ;;  %v2932_v41 = vrot.slane %v1645_v53, 1  ;;  %v5225_v14 = vsel %vm2021_vm3, %v2934_v16, %v2936_v10  ;;  %v1670_v26 = vadd.f32 %v3490_v60, %v4832_v21 }
 0x16e   : > { %v1494_v51 = vpop.f32.mrf.mxu0  ;;  %v1582_v18 = vpop.f32.mrf.mxu1  ;;  %6133 = vst [vmem:[#allocation61_spill] sm:$0xff] %v5225_v14  ;;  %v2377_v14 = vrot.slane %v5221_v39, 1 }
 0x16f   : > { %v5228_v32 = vadd.f32 %v1494_v51, %v4661_v62  ;;  %v1660_v13 = vadd.f32 %v1582_v18, %v4848_v9  ;;  %v2708_v43 = vpop.permute.xlu1 %2707  ;;  %v5232_v19 = vsel %vm2021_vm3, %v2930_v29, %v2932_v41  ;;  %v5238_v53 = vsel %vm2021_vm3, %v2932_v41, %v2934_v16  ;;  %v6136_v62 = vld [vmem:[#allocation65_spill] sm:$0xff]  ;;  %v5246_v9 = vpop.permute.xlu0 %2779 }
 0x170   : > { %6134 = vst [vmem:[#allocation161_spill] sm:$0xff] %v5232_v19  ;;  %v5235_v31 = vpop.f32.mrf.mxu0  ;;  %v3491_v58 = vpop.f32.mrf.mxu1  ;;  %6135 = vst [vmem:[#allocation162_spill] sm:$0xff] %v5238_v53  ;;  %v2624_v7 = vsel %vm1706_vm2, %v2621_v46, %v2623_v63  ;;  %v5244_v51 = vadd.f32 %v4941_v37, %v6136_v62  ;;  %v2942_v53 = vrot.slane %v1670_v26, 1 }
 0x171   : > { %v2625_v29 = vrot.slane %v5228_v32, 7  ;;  %v2938_v18 = vrot.slane %v1660_v13, 1  ;;  %v5250_v21 = vadd.f32 %v3491_v58, %v4857_v3  ;;  %v5253_v16 = vmul.f32 %v5061_v59, %v2624_v7 }
 0x172   : > { %v1498_v60 = vpop.f32.mrf.mxu0  ;;  %v1585_v19 = vpop.f32.mrf.mxu1  ;;  %v6141_v59 = vrot.slane %v5073_v45, 1 }
 0x173   : > { %6137 = vst [vmem:[#allocation65_spill] sm:$0xff] %v5250_v21  ;;  %6138 = vst [vmem:[#allocation163_spill] sm:$0xff] %v5253_v16  ;;  %v5256_v46 = vadd.f32 %v1498_v60, %v4680_v6  ;;  %v1665_v41 = vadd.f32 %v1585_v19, %v4873_v49  ;;  %v2748_v37 = vpop.permute.xlu1 %2747  ;;  %v5260_v62 = vsel %vm2021_vm3, %v2936_v10, %v2938_v18  ;;  %v5891_v13 = vrot.slane %v5250_v21, 1 }
 0x174   : > { %6139 = vst [vmem:[#allocation164_spill] sm:$0xff] %v5260_v62  ;;  %v2807_v3 = vmul.f32 %v2748_v37, %v4935_v48  ;;  %v5265_v58 = vsel %vm1706_vm2, %v2623_v63, %v2625_v29  ;;  %v2378_v7 = vsel %vm2021_vm3, %v6141_v59, %v2377_v14  ;;  %v2379_v6 = vrot.slane %v5244_v51, 1  ;;  %v5285_v37 = vpop.permute.xlu0 %2787  ;;  %v6145_v59 = vld [vmem:[#allocation9_spill] sm:$0xff] }
 0x175   : > { %6140 = vst [vmem:[#allocation165_spill] sm:$0xff] %v5265_v58  ;;  %v2627_v49 = vrot.slane %v5256_v46, 7  ;;  %v2940_v19 = vrot.slane %v1665_v41, 1  ;;  %v5276_v10 = vsel %vm2021_vm3, %v2942_v53, %v5891_v13 }
 0x176   : > { %2840 = vrot.lane.b32.xlu0 %v2807_v3, %s3640_s9  ;;  %6142 = vst [vmem:[#allocation166_spill] sm:$0xff] %v5276_v10  ;;  %v2487_v3 = vmul.f32 %v6145_v59, %v2378_v7  ;;  %v2380_v21 = vsel %vm2021_vm3, %v2377_v14, %v2379_v6 }
 0x177   : > { %v2645_v48 = vsel %vm1706_vm2, %v2627_v49, 0.0  ;;  %v2752_v63 = vpop.permute.xlu1 %2751  ;;  %v5280_v26 = vsel %vm2021_vm3, %v2938_v18, %v2940_v19  ;;  %v5283_v60 = vsel %vm2021_vm3, %v2940_v19, %v2942_v53  ;;  %v2628_v13 = vsel %vm1706_vm2, %v2625_v29, %v2627_v49  ;;  %v6148_v18 = vld [vmem:[#allocation30_spill] sm:$0xff] }
 0x178   : > { %6143 = vst [vmem:[#allocation167_spill] sm:$0xff] %v5280_v26  ;;  %6144 = vst [vmem:[#allocation168_spill] sm:$0xff] %v5283_v60  ;;  %v2808_v41 = vmul.f32 %v2752_v63, %v4967_v50  ;;  %v5289_v62 = vmul.f32 %v2708_v43, %v2645_v48  ;;  %v5294_v10 = vmul.f32 %v5094_v15, %v2628_v13  ;;  %v6149_v60 = vld [vmem:[#allocation68_spill] sm:$0xff]  ;;  %v6150_v43 = vld [vmem:[#allocation71_spill] sm:$0xff]  ;;  %v5307_v29 = vpop.permute.xlu0 %2795 }
 0x179   : > { %v2488_v19 = vmul.f32 %v6148_v18, %v2380_v21  ;;  %v5301_v50 = vadd.f32 %v4969_v61, %v6149_v60  ;;  %v5305_v7 = vadd.f32 %v4990_v23, %v6150_v43  ;;  %v2809_v61 = vmul.f32 %v5136_v52, %v4988_v0  ;;  %v6151_v48 = vld [vmem:[#allocation77_spill] sm:$0xff]  ;;  %v6152_v60 = vld [vmem:[#allocation100_spill] sm:$0xff]  ;;  %v6154_v0 = vld [vmem:[#allocation74_spill] sm:$0xff] }
 0x17a   : > { %6146 = vst [vmem:[#allocation9_spill] sm:$0xff] %v5289_v62  ;;  %6147 = vst [vmem:[#allocation169_spill] sm:$0xff] %v5294_v10  ;;  %2842 = vrot.lane.b32.xlu1 %v2808_v41, %s3640_s9  ;;  %2520 = vrot.lane.b32.xlu0 %v2487_v3, %s3640_s9  ;;  %v5330_v63 = vadd.f32 %v5042_v22, %v6151_v48  ;;  %v6155_v22 = vld [vmem:[#allocation108_spill] sm:$0xff]  ;;  %v6169_v26 = vld [vmem:[#allocation43_spill] sm:$0xff] }
 0x17b   : > { %v2760_v53 = vpop.permute.xlu1 %2759  ;;  %v2381_v14 = vrot.slane %v5301_v50, 1  ;;  %v2383_v21 = vrot.slane %v5305_v7, 1  ;;  %v1973_v62 = vmul.f32 0.0, %v6169_v26  ;;  %v6177_v26 = vld [vmem:[#allocation45_spill] sm:$0xff] }
 0x17c   : > { %v5324_v13 = vpop.permute.xlu0 %2803  ;;  %v2387_v18 = vrot.slane %v5330_v63, 1 }
 0x17d   : > { %v2384_v49 = vsel %vm2021_vm3, %v2381_v14, %v2383_v21 }
 0x17e   : > { %2522 = vrot.lane.b32.xlu1 %v2488_v19, %s3640_s9  ;;  %1888 = vrot.lane.b32.xlu0 %v4979_v47, %s3640_s9  ;;  %v2382_v47 = vsel %vm2021_vm3, %v2379_v6, %v2381_v14  ;;  %v2490_v59 = vmul.f32 %v4883_v54, %v2384_v49  ;;  %v6156_v19 = vld [vmem:[#allocation12_spill] sm:$0xff]  ;;  %v6160_v49 = vld [vmem:[#allocation14_spill] sm:$0xff] }
 0x17f   : > { %v5312_v15 = vpop.permute.xlu1 %2767  ;;  %v2489_v3 = vmul.f32 %v6155_v22, %v2382_v47  ;;  %v6157_v14 = vld [vmem:[#allocation44_spill] sm:$0xff] }
 0x182   : > { %1890 = vrot.lane.b32.xlu1 %v5003_v20, %s3640_s9  ;;  %2219 = vrot.lane.b32.xlu0 %v4996_v33, %s3640_s9  ;;  %v6153_v20 = vrot.slane %v6152_v60, 7  ;;  %v5340_v33 = vadd.f32 %v5014_v57, %v6154_v0  ;;  %v6158_v60 = vld [vmem:[#allocation106_spill] sm:$0xff]  ;;  %v5359_v0 = vadd.f32 %v5099_v35, %v6160_v49 }
 0x183   : > { %v5320_v23 = vpop.permute.xlu1 %2775  ;;  %v6164_v35 = vld [vmem:[#allocation54_spill] sm:$0xff] }
 0x184   : > { %v1751_v41 = vsel %vm1706_vm2, 0.0, %v6153_v20  ;;  %v2385_v57 = vrot.slane %v5340_v33, 1  ;;  %v6159_v20 = vld [vmem:[#allocation69_spill] sm:$0xff] }
 0x185   : > { %v1833_v43 = vmul.f32 %v6156_v19, %v1751_v41  ;;  %v2135_v54 = vmul.f32 %v6159_v20, %v6158_v60  ;;  %v6165_v60 = vld [vmem:[#allocation107_spill] sm:$0xff]  ;;  %v6166_v20 = vld [vmem:[#allocation18_spill] sm:$0xff] }
 0x186   : > { %2221 = vrot.lane.b32.xlu1 %v5022_v11, %s3640_s9  ;;  %2844 = vrot.lane.b32.xlu0 %v2809_v61, %s3640_s9  ;;  %v2388_v47 = vsel %vm2021_vm3, %v2385_v57, %v2387_v18 }
 0x187   : > { %v5342_v52 = vpop.permute.xlu1 %2783 }
 0x188   : > { %v1865_v6 = vpop.permute.xlu0 %1864 }
 0x189   : > { %v1974_v48 = vmul.f32 %v6157_v14, %v1865_v6  ;;  %v6161_v6 = vld [vmem:[#allocation81_spill] sm:$0xff] }
 0x18a   : > { %2526 = vrot.lane.b32.xlu1 %v2490_v59, %s3640_s9  ;;  %2524 = vrot.lane.b32.xlu0 %v2489_v3, %s3640_s9  ;;  %v5367_v59 = vadd.f32 %v5063_v25, %v6161_v6  ;;  %v6162_v3 = vld [vmem:[#allocation103_spill] sm:$0xff]  ;;  %v6168_v25 = vld [vmem:[#allocation13_spill] sm:$0xff] }
 0x18b   : > { %v1990_v11 = vadd.f32 %v1974_v48, %v1833_v43  ;;  %v5352_v61 = vpop.permute.xlu1 %2791  ;;  %v6163_v19 = vrot.slane %v6162_v3, 1  ;;  %v2492_v48 = vmul.f32 %v6164_v35, %v2388_v47  ;;  %v1832_v6 = vmul.f32 0.0, %v6168_v25  ;;  %v6170_v3 = vld [vmem:[#allocation141_spill] sm:$0xff]  ;;  %v6176_v25 = vld [vmem:[#allocation19_spill] sm:$0xff] }
 0x18d   : > { %v2151_v41 = vadd.f32 %v2135_v54, %v1990_v11  ;;  %v2069_v43 = vsel %vm2021_vm3, 0.0, %v6163_v19  ;;  %v2386_v11 = vsel %vm2021_vm3, %v2383_v21, %v2385_v57  ;;  %v6167_v54 = vld [vmem:[#allocation47_spill] sm:$0xff]  ;;  %v6171_v19 = vld [vmem:[#allocation64_spill] sm:$0xff]  ;;  %v2389_v21 = vrot.slane %v5367_v59, 1 }
 0x18e   : > { %2225 = vrot.lane.b32.xlu1 %v5069_v30, %s3640_s9  ;;  %1892 = vrot.lane.b32.xlu0 %v5048_v36, %s3640_s9  ;;  %v1835_v36 = vmul.f32 %v6166_v20, %v6165_v60  ;;  %v2134_v47 = vmul.f32 %v6171_v19, %v2069_v43  ;;  %v6172_v30 = vld [vmem:[#allocation26_spill] sm:$0xff]  ;;  %v6174_v20 = vld [vmem:[#allocation135_spill] sm:$0xff]  ;;  %v2491_v16 = vmul.f32 %v6178_v8, %v2386_v11  ;;  %v6180_v19 = vld [vmem:[#allocation88_spill] sm:$0xff] }
 0x18f   : > { %v5369_v22 = vpop.permute.xlu1 %2799  ;;  %v2137_v60 = vmul.f32 %v6173_v38, %v6172_v30  ;;  %v1989_v8 = vadd.f32 %v1973_v62, %v1832_v6  ;;  %v6184_v11 = vld [vmem:[#allocation16_spill] sm:$0xff]  ;;  %v6187_v6 = vld [vmem:[#allocation110_spill] sm:$0xff] }
 0x190   : > { %v1869_v14 = vpop.permute.xlu0 %1868 }
 0x191   : > { %v1976_v49 = vmul.f32 %v6167_v54, %v1869_v14  ;;  %v2810_v14 = vmul.f32 %v2760_v53, %v6174_v20  ;;  %v6175_v54 = vld [vmem:[#allocation5_spill] sm:$0xff]  ;;  %v6183_v20 = vld [vmem:[#allocation72_spill] sm:$0xff] }
 0x192   : > { %2530 = vrot.lane.b32.xlu1 %v2492_v48, %s3640_s9  ;;  %2223 = vrot.lane.b32.xlu0 %v6170_v3, %s3640_s9  ;;  %v1834_v58 = vmul.f32 %v6176_v25, %v6175_v54  ;;  %v6179_v3 = vrot.slane %v5359_v0, 1  ;;  %v5408_v25 = vadd.f32 %v5120_v4, %v6184_v11 }
 0x193   : > { %v1992_v57 = vadd.f32 %v1976_v49, %v1835_v36  ;;  %v1867_v35 = vpop.permute.xlu1 %1866  ;;  %v5399_v36 = vadd.f32 %v5144_v42, %v6180_v19  ;;  %v6181_v49 = vld [vmem:[#allocation89_spill] sm:$0xff] }
 0x194   : > { %v1975_v10 = vmul.f32 %v6177_v26, %v1867_v35  ;;  %v2200_v48 = vpop.permute.xlu0 %2199  ;;  %v2392_v43 = vsel %vm2021_vm3, %v2389_v21, %v6179_v3  ;;  %v6182_v35 = vld [vmem:[#allocation24_spill] sm:$0xff] }
 0x195   : > { %v2311_v38 = vmul.f32 %v6181_v49, %v2200_v48  ;;  %v2153_v30 = vadd.f32 %v2137_v60, %v1992_v57  ;;  %v2136_v54 = vmul.f32 %v6183_v20, %v6182_v35  ;;  %v6185_v48 = vld [vmem:[#allocation58_spill] sm:$0xff]  ;;  %v2150_v60 = vadd.f32 %v2134_v47, %v1989_v8  ;;  %v6189_v35 = vld [vmem:[#allocation49_spill] sm:$0xff] }
 0x196   : > { %v1991_v53 = vadd.f32 %v1975_v10, %v1834_v58  ;;  %2846 = vrot.lane.b32.xlu1 %v2810_v14, %s3640_s9  ;;  %2528 = vrot.lane.b32.xlu0 %v2491_v16, %s3640_s9  ;;  %v2494_v57 = vmul.f32 %v6185_v48, %v2392_v43  ;;  %v2390_v10 = vsel %vm2021_vm3, %v2387_v18, %v2389_v21  ;;  %v5893_v16 = vrot.slane %v5399_v36, 1  ;;  %v6186_v14 = vld [vmem:[#allocation94_spill] sm:$0xff]  ;;  %v6191_v18 = vld [vmem:[#allocation109_spill] sm:$0xff]  ;;  %v6192_v21 = vld [vmem:[#allocation23_spill] sm:$0xff] }
 0x197   : > { %v5410_v26 = vadd.f32 %v2311_v38, %v2151_v41  ;;  %v2198_v42 = vpop.permute.xlu1 %2197  ;;  %v6188_v49 = vld [vmem:[#allocation22_spill] sm:$0xff]  ;;  %v6190_v38 = vld [vmem:[#allocation147_spill] sm:$0xff]  ;;  %v2393_v43 = vrot.slane %v5408_v25, 1  ;;  %v1836_v47 = vmul.f32 %v6192_v21, %v6191_v18 }
 0x198   : > { %v2245_v3 = vsel %vm1706_vm2, 0.0, %v2198_v42  ;;  %v2152_v58 = vadd.f32 %v2136_v54, %v1991_v53  ;;  %v1837_v4 = vmul.f32 %v6188_v49, %v6187_v6  ;;  %v6193_v54 = vld [vmem:[#allocation112_spill] sm:$0xff]  ;;  %v6194_v8 = vld [vmem:[#allocation70_spill] sm:$0xff]  ;;  %v6195_v42 = vld [vmem:[#allocation57_spill] sm:$0xff] }
 0x199   : > { %v2310_v19 = vmul.f32 %v6186_v14, %v2245_v3  ;;  %v1873_v62 = vpop.permute.xlu0 %1872  ;;  %v2139_v11 = vmul.f32 %v6194_v8, %v6193_v54  ;;  %v2812_v3 = vmul.f32 %v5312_v15, %v6195_v42  ;;  %v6196_v14 = vld [vmem:[#allocation46_spill] sm:$0xff]  ;;  %v6201_v18 = vld [vmem:[#allocation75_spill] sm:$0xff] }
 0x19a   : > { %v1978_v41 = vmul.f32 %v6189_v35, %v1873_v62  ;;  %2534 = vrot.lane.b32.xlu1 %v2494_v57, %s3640_s9  ;;  %2227 = vrot.lane.b32.xlu0 %v6190_v38, %s3640_s9  ;;  %v6197_v62 = vld [vmem:[#allocation27_spill] sm:$0xff]  ;;  %v6200_v38 = vld [vmem:[#allocation28_spill] sm:$0xff] }
 0x19b   : > { %v5424_v53 = vadd.f32 %v2310_v19, %v2150_v60  ;;  %v1871_v20 = vpop.permute.xlu1 %1870  ;;  %v2493_v6 = vmul.f32 %v6197_v62, %v2390_v10  ;;  %v2396_v60 = vsel %vm2021_vm3, %v2393_v43, %v5893_v16  ;;  %v6198_v19 = vld [vmem:[#allocation93_spill] sm:$0xff]  ;;  %v2138_v21 = vmul.f32 %v6201_v18, %v6200_v38  ;;  %v6202_v8 = vld [vmem:[#allocation3_spill] sm:$0xff] }
 0x19c   : > { %v1994_v48 = vadd.f32 %v1978_v41, %v1837_v4  ;;  %v1977_v57 = vmul.f32 %v6196_v14, %v1871_v20  ;;  %v5439_v49 = vadd.f32 %v5188_v44, %v6198_v19  ;;  %v6203_v4 = vld [vmem:[#allocation138_spill] sm:$0xff]  ;;  %v6205_v62 = vld [vmem:[#allocation97_spill] sm:$0xff]  ;;  %v6208_v38 = vld [vmem:[#allocation31_spill] sm:$0xff] }
 0x19d   : > { %v2204_v35 = vpop.permute.xlu0 %2203  ;;  %v2811_v41 = vmul.f32 %v5168_v27, %v6203_v4  ;;  %v6204_v20 = vld [vmem:[#allocation90_spill] sm:$0xff] }
 0x19e   : > { %6199 = vst [vmem:[#allocation30_spill] sm:$0xff] %v5439_v49  ;;  %v1993_v54 = vadd.f32 %v1977_v57, %v1836_v47  ;;  %v2313_v15 = vmul.f32 %v6202_v8, %v2204_v35  ;;  %2850 = vrot.lane.b32.xlu1 %v2812_v3, %s3640_s9  ;;  %2532 = vrot.lane.b32.xlu0 %v2493_v6, %s3640_s9  ;;  %v6206_v47 = vld [vmem:[#allocation121_spill] sm:$0xff]  ;;  %v6207_v3 = vrot.slane %v5359_v0, 1  ;;  %v6210_v8 = vld [vmem:[#allocation51_spill] sm:$0xff]  ;;  %v6213_v4 = vld [vmem:[#allocation114_spill] sm:$0xff] }
 0x19f   : > { %v2155_v10 = vadd.f32 %v2139_v11, %v1994_v48  ;;  %v5450_v42 = vadd.f32 %v5165_v12, %v6204_v20  ;;  %v2202_v44 = vpop.permute.xlu1 %2201  ;;  %v2496_v57 = vmul.f32 %v6206_v47, %v2396_v60  ;;  %v2399_v11 = vrot.slane %v5439_v49, 1  ;;  %v6209_v12 = vld [vmem:[#allocation33_spill] sm:$0xff]  ;;  %v6216_v47 = vld [vmem:[#allocation48_spill] sm:$0xff] }
 0x1a0   : > { %v5452_v14 = vadd.f32 %v2313_v15, %v2153_v30  ;;  %v2312_v19 = vmul.f32 %v6205_v62, %v2202_v44  ;;  %v2154_v35 = vadd.f32 %v2138_v21, %v1993_v54  ;;  %v2394_v6 = vsel %vm2021_vm3, %v6207_v3, %v2393_v43  ;;  %v6211_v21 = vld [vmem:[#allocation111_spill] sm:$0xff]  ;;  %v6212_v54 = vld [vmem:[#allocation34_spill] sm:$0xff]  ;;  %v6214_v20 = vld [vmem:[#allocation73_spill] sm:$0xff] }
 0x1a1   : > { %v1839_v18 = vmul.f32 %v6209_v12, %v6208_v38  ;;  %v2397_v60 = vrot.slane %v5450_v42, 1  ;;  %v1838_v15 = vmul.f32 %v6212_v54, %v6211_v21  ;;  %v2141_v44 = vmul.f32 %v6214_v20, %v6213_v4  ;;  %v6219_v21 = vld [vmem:[#allocation113_spill] sm:$0xff]  ;;  %v6220_v54 = vld [vmem:[#allocation79_spill] sm:$0xff] }
 0x1a2   : > { %v1877_v48 = vpop.permute.xlu0 %1876  ;;  %v5460_v27 = vadd.f32 %v2312_v19, %v2152_v58  ;;  %2538 = vrot.lane.b32.xlu1 %v2496_v57, %s3640_s9  ;;  %2848 = vrot.lane.b32.xlu0 %v2811_v41, %s3640_s9  ;;  %v6215_v58 = vld [vmem:[#allocation15_spill] sm:$0xff]  ;;  %v6218_v41 = vld [vmem:[#allocation21_spill] sm:$0xff]  ;;  %v2140_v16 = vmul.f32 %v6220_v54, %v6219_v21 }
 0x1a3   : > { %v1980_v30 = vmul.f32 %v6210_v8, %v1877_v48  ;;  %v1875_v43 = vpop.permute.xlu1 %1874  ;;  %v2814_v62 = vmul.f32 %v5320_v23, %v6215_v58  ;;  %v6217_v48 = vld [vmem:[#allocation29_spill] sm:$0xff]  ;;  %v2400_v57 = vsel %vm2021_vm3, %v2397_v60, %v2399_v11  ;;  %v5479_v12 = vadd.f32 %v5235_v31, %v6218_v41  ;;  %v6229_v54 = vld [vmem:[#allocation55_spill] sm:$0xff] }
 0x1a4   : > { %v1979_v3 = vmul.f32 %v6216_v47, %v1875_v43  ;;  %v2495_v38 = vmul.f32 %v6217_v48, %v2394_v6  ;;  %v6221_v4 = vld [vmem:[#allocation101_spill] sm:$0xff]  ;;  %v6224_v47 = vld [vmem:[#allocation91_spill] sm:$0xff] }
 0x1a5   : > { %v1996_v19 = vadd.f32 %v1980_v30, %v1839_v18  ;;  %v6222_v18 = vld [vmem:[#allocation82_spill] sm:$0xff]  ;;  %v6223_v30 = vld [vmem:[#allocation96_spill] sm:$0xff] }
 0x1a6   : > { %v2208_v8 = vpop.permute.xlu0 %2207  ;;  %v1995_v49 = vadd.f32 %v1979_v3, %v1838_v15  ;;  %2854 = vrot.lane.b32.xlu1 %v2814_v62, %s3640_s9  ;;  %2536 = vrot.lane.b32.xlu0 %v2495_v38, %s3640_s9  ;;  %v2813_v6 = vmul.f32 %v5206_v24, %v6222_v18  ;;  %v5490_v43 = vadd.f32 %v5214_v2, %v6223_v30  ;;  %v6225_v15 = vld [vmem:[#allocation126_spill] sm:$0xff]  ;;  %v6226_v62 = vrot.slane %v5399_v36, 1  ;;  %v6228_v2 = vld [vmem:[#allocation35_spill] sm:$0xff]  ;;  %v6233_v18 = vld [vmem:[#allocation76_spill] sm:$0xff] }
 0x1a7   : > { %v2315_v20 = vmul.f32 %v6221_v4, %v2208_v8  ;;  %v2157_v23 = vadd.f32 %v2141_v44, %v1996_v19  ;;  %v2206_v31 = vpop.permute.xlu1 %2205  ;;  %v2498_v3 = vmul.f32 %v6225_v15, %v2400_v57  ;;  %v2403_v44 = vrot.slane %v5479_v12, 1  ;;  %v6227_v8 = vld [vmem:[#allocation116_spill] sm:$0xff]  ;;  %v6235_v15 = vld [vmem:[#allocation10_spill] sm:$0xff] }
 0x1a8   : > { %v2314_v48 = vmul.f32 %v6224_v47, %v2206_v31  ;;  %v2156_v41 = vadd.f32 %v2140_v16, %v1995_v49  ;;  %v2398_v38 = vsel %vm2021_vm3, %v6226_v62, %v2397_v60  ;;  %v1841_v21 = vmul.f32 %v6228_v2, %v6227_v8  ;;  %v6230_v49 = vld [vmem:[#allocation11_spill] sm:$0xff]  ;;  %v6231_v57 = vld [vmem:[#allocation36_spill] sm:$0xff]  ;;  %v6234_v47 = vld [vmem:[#allocation50_spill] sm:$0xff] }
 0x1a9   : > { %v5492_v58 = vadd.f32 %v2315_v20, %v2155_v10  ;;  %v2401_v16 = vrot.slane %v5490_v43, 1  ;;  %v1840_v4 = vmul.f32 %v6231_v57, %v6230_v49  ;;  %v6232_v20 = vld [vmem:[#allocation119_spill] sm:$0xff]  ;;  %v2497_v62 = vmul.f32 %v6235_v15, %v2398_v38  ;;  %v6238_v49 = vld [vmem:[#allocation6_spill] sm:$0xff] }
 0x1aa   : > { %v1881_v19 = vpop.permute.xlu0 %1880  ;;  %v5500_v24 = vadd.f32 %v2314_v48, %v2154_v35  ;;  %2542 = vrot.lane.b32.xlu1 %v2498_v3, %s3640_s9  ;;  %2852 = vrot.lane.b32.xlu0 %v2813_v6, %s3640_s9  ;;  %v2143_v30 = vmul.f32 %v6233_v18, %v6232_v20  ;;  %v2816_v35 = vmul.f32 %v5342_v52, %v5157_v17  ;;  %v6237_v8 = vld [vmem:[#allocation83_spill] sm:$0xff] }
 0x1ab   : > { %v1982_v10 = vmul.f32 %v6229_v54, %v1881_v19  ;;  %v1879_v60 = vpop.permute.xlu1 %1878  ;;  %v2404_v3 = vsel %vm2021_vm3, %v2401_v16, %v2403_v44  ;;  %v6236_v19 = vld [vmem:[#allocation117_spill] sm:$0xff]  ;;  %v2815_v17 = vmul.f32 %v5246_v9, %v5131_v28  ;;  %v6239_v38 = vld [vmem:[#allocation95_spill] sm:$0xff]  ;;  %v6244_v28 = vld [vmem:[#allocation118_spill] sm:$0xff] }
 0x1ac   : > { %v1981_v48 = vmul.f32 %v6234_v47, %v1879_v60  ;;  %v2142_v2 = vmul.f32 %v6237_v8, %v6236_v19  ;;  %v6240_v60 = vld [vmem:[#allocation130_spill] sm:$0xff]  ;;  %v6246_v8 = vld [vmem:[#allocation52_spill] sm:$0xff] }
 0x1ad   : > { %v1998_v31 = vadd.f32 %v1982_v10, %v1841_v21  ;;  %v2500_v18 = vmul.f32 %v6240_v60, %v2404_v3  ;;  %v6245_v9 = vld [vmem:[#allocation38_spill] sm:$0xff] }
 0x1ae   : > { %v2212_v6 = vpop.permute.xlu0 %2211  ;;  %v1997_v54 = vadd.f32 %v1981_v48, %v1840_v4  ;;  %2858 = vrot.lane.b32.xlu1 %v2816_v35, %s3640_s9  ;;  %2540 = vrot.lane.b32.xlu0 %v2497_v62, %s3640_s9  ;;  %v2402_v4 = vsel %vm2021_vm3, %v2399_v11, %v2401_v16  ;;  %v6241_v35 = vld [vmem:[#allocation122_spill] sm:$0xff]  ;;  %v6247_v11 = vld [vmem:[#allocation32_spill] sm:$0xff] }
 0x1af   : > { %v2317_v57 = vmul.f32 %v6238_v49, %v2212_v6  ;;  %v2159_v20 = vadd.f32 %v2143_v30, %v1998_v31  ;;  %v2210_v52 = vpop.permute.xlu1 %2209  ;;  %v6242_v6 = vld [vmem:[#allocation37_spill] sm:$0xff]  ;;  %v6243_v30 = vld [vmem:[#allocation59_spill] sm:$0xff]  ;;  %v2499_v16 = vmul.f32 %v6247_v11, %v2402_v4  ;;  %v3617_v11 = vld [vmem:[%s5857_s6 + $0x30] sm:$0xff] }
 0x1b0   : > { %v2316_v10 = vmul.f32 %v6239_v38, %v2210_v52  ;;  %v2158_v47 = vadd.f32 %v2142_v2, %v1997_v54  ;;  %v1843_v62 = vmul.f32 %v6242_v6, %v6241_v35  ;;  %v6249_v54 = vld [vmem:[#allocation80_spill] sm:$0xff]  ;;  %v6250_v38 = vld [vmem:[#allocation123_spill] sm:$0xff]  ;;  %v3609_v35 = vld [vmem:[%s5857_s6] sm:$0xff] }
 0x1b1   : > { %v5524_v21 = vadd.f32 %v2317_v57, %v2157_v23  ;;  %v1842_v23 = vmul.f32 %v6245_v9, %v6244_v28  ;;  %v2421_v57 = vsel %vm2021_vm3, %v2403_v44, 0.0 }
 0x1b2   : > { %v1885_v48 = vpop.permute.xlu0 %1884  ;;  %v5529_v15 = vadd.f32 %v2316_v10, %v2156_v41  ;;  %2546 = vrot.lane.b32.xlu1 %v2500_v18, %s3640_s9  ;;  %2856 = vrot.lane.b32.xlu0 %v2815_v17, %s3640_s9  ;;  %v6248_v41 = vld [vmem:[#allocation127_spill] sm:$0xff]  ;;  %v6251_v10 = vld [vmem:[#allocation85_spill] sm:$0xff] }
 0x1b3   : > { %v1984_v31 = vmul.f32 %v6243_v30, %v1885_v48  ;;  %v1883_v19 = vpop.permute.xlu1 %1882  ;;  %v2145_v49 = vmul.f32 %v6249_v54, %v6248_v41  ;;  %v2144_v60 = vmul.f32 %v6251_v10, %v6250_v38  ;;  %v6252_v17 = vld [vmem:[#allocation105_spill] sm:$0xff]  ;;  %v3619_v41 = vld [vmem:[%s5857_s6 + $0x40] sm:$0xff] }
 0x1b4   : > { %v1983_v2 = vmul.f32 %v6246_v8, %v1883_v19  ;;  %v3610_v19 = vld [vmem:[%s5857_s6 + $0x10] sm:$0xff]  ;;  %v3613_v8 = vld [vmem:[%s5857_s6 + $0x8] sm:$0xff] }
 0x1b5   : > { %v2000_v3 = vadd.f32 %v1984_v31, %v1843_v62  ;;  %v6253_v62 = vld [vmem:[#allocation115_spill] sm:$0xff]  ;;  %v6254_v31 = vld [vmem:[#allocation98_spill] sm:$0xff] }
 0x1b6   : > { %v2216_v52 = vpop.permute.xlu0 %2215  ;;  %v1999_v18 = vadd.f32 %v1983_v2, %v1842_v23  ;;  %2963 = vperm.xlu1 %3563, %v3609_v35   ;;  %2544 = vrot.lane.b32.xlu0 %v2499_v16, %s3640_s9  ;;  %v2501_v30 = vmul.f32 %v6253_v62, %v2421_v57  ;;  %v3616_v2 = vld [vmem:[%s5857_s6 + $0x48] sm:$0xff]  ;;  %v3618_v16 = vld [vmem:[%s5857_s6 + $0x58] sm:$0xff]  ;;  %v3621_v57 = vld [vmem:[%s5857_s6 + $0x50] sm:$0xff] }
 0x1b7   : > { %v2319_v48 = vmul.f32 %v6252_v17, %v2216_v52  ;;  %v5550_v4 = vadd.f32 %v2145_v49, %v2000_v3  ;;  %v2214_v6 = vpop.permute.xlu1 %2213  ;;  %v2817_v3 = vmul.f32 %v5285_v37, %v5179_v55  ;;  %v3614_v55 = vld [vmem:[%s5857_s6 + $0x38] sm:$0xff]  ;;  %v3615_v37 = vld [vmem:[%s5857_s6 + $0x20] sm:$0xff]  ;;  %v3620_v49 = vld [vmem:[%s5857_s6 + $0x68] sm:$0xff] }
 0x1b8   : > { %v2318_v28 = vmul.f32 %v6254_v31, %v2214_v6  ;;  %v2160_v9 = vadd.f32 %v2144_v60, %v1999_v18  ;;  %v6255_v52 = vld [vmem:[#allocation78_spill] sm:$0xff]  ;;  %v6256_v60 = vld [vmem:[#allocation120_spill] sm:$0xff]  ;;  %v6257_v18 = vld [vmem:[#allocation139_spill] sm:$0xff] }
 0x1b9   : > { %v5553_v44 = vadd.f32 %v2319_v48, %v2159_v20  ;;  %v3611_v20 = vld [vmem:[%s5857_s6 + $0x18] sm:$0xff]  ;;  %v2342_v38 = vadd.f32 %v5424_v53, %v6255_v52  ;;  %v2710_v17 = vmul.f32 %v6257_v18, %v6256_v60  ;;  %v3623_v6 = vld [vmem:[%s5857_s6 + $0x60] sm:$0xff]  ;;  %v6258_v31 = vld [vmem:[#allocation131_spill] sm:$0xff]  ;;  %v2820_v52 = vmul.f32 %v5369_v22, %v5256_v46 }
 0x1ba   : > { %v5556_v23 = vadd.f32 %v2318_v28, %v2158_v47  ;;  %2971 = vperm.xlu1 %3563, %v3610_v19   ;;  %2548 = vrot.lane.b32.xlu0 %v2501_v30, %s3640_s9  ;;  %v3612_v47 = vld [vmem:[%s5857_s6 + $0x28] sm:$0xff]  ;;  %v3622_v35 = vld [vmem:[%s5857_s6 + $0x78] sm:$0xff]  ;;  %v2819_v30 = vmul.f32 %v5307_v29, %v5228_v32  ;;  %v6259_v28 = vld [vmem:[#allocation40_spill] sm:$0xff]  ;;  %v2821_v32 = vmul.f32 0.0, %v5324_v13  ;;  %v2818_v29 = vmul.f32 %v5352_v61, %v5209_v5 }
 0x1bb   : > { %v1844_v19 = vmul.f32 %v6259_v28, %v6258_v31  ;;  %v2343_v13 = vadd.f32 %v5410_v26, %v5073_v45  ;;  %v6265_v60 = vld [vmem:[#allocation62_spill] sm:$0xff]  ;;  %v6270_v45 = vld [vmem:[#allocation63_spill] sm:$0xff] }
 0x1be   : > { %2975 = vperm.xlu1 %3563, %v3611_v20   ;;  %2860 = vrot.lane.b32.xlu0 %v2817_v3, %s3640_s9  ;;  %v6260_v3 = vld [vmem:[#allocation56_spill] sm:$0xff] }
 0x1c2   : > { %2983 = vperm.xlu1 %3563, %v3612_v47   ;;  %2967 = vperm.xlu0 %3564, %v3613_v8   ;;  %v3624_v8 = vld [vmem:[%s5857_s6 + $0x70] sm:$0xff] }
 0x1c6   : > { %2991 = vperm.xlu1 %3563, %v3614_v55   ;;  %2979 = vperm.xlu0 %3564, %v3615_v37   ;;  %v6261_v37 = vld [vmem:[#allocation132_spill] sm:$0xff] }
 0x1ca   : > { %2999 = vperm.xlu1 %3563, %v3616_v2   ;;  %2987 = vperm.xlu0 %3564, %v3617_v11   ;;  %v6262_v2 = vld [vmem:[#allocation2_spill] sm:$0xff] }
 0x1cb   : > { %v2146_v11 = vmul.f32 %v6262_v2, %v6261_v37  ;;  %v6273_v2 = vld [vmem:[#allocation142_spill] sm:$0xff] }
 0x1ce   : > { %3007 = vperm.xlu1 %3563, %v3618_v16   ;;  %2995 = vperm.xlu0 %3564, %v3619_v41   ;;  %v6263_v41 = vld [vmem:[#allocation99_spill] sm:$0xff] }
 0x1d0   : > { %v2839_v54 = vpop.permute.xlu1 %2838 }
 0x1d2   : > { %3015 = vperm.xlu1 %3563, %v3620_v49   ;;  %3003 = vperm.xlu0 %3564, %v3621_v57  }
 0x1d4   : > { %v2519_v10 = vpop.permute.xlu1 %2518 }
 0x1d5   : > { %v2566_v48 = vadd.f32 %v2519_v10, %v2342_v38  ;;  %v6264_v10 = vld [vmem:[#allocation124_spill] sm:$0xff] }
 0x1d6   : > { %3023 = vperm.xlu1 %3563, %v3622_v35   ;;  %3011 = vperm.xlu0 %3564, %v3623_v6   ;;  %v2711_v18 = vmul.f32 %v6265_v60, %v6264_v10  ;;  %v6266_v6 = vld [vmem:[#allocation136_spill] sm:$0xff]  ;;  %v6277_v10 = vld [vmem:[#allocation143_spill] sm:$0xff]  ;;  %v6278_v60 = vld [vmem:[#allocation17_spill] sm:$0xff] }
 0x1d7   : > { %v2726_v62 = vadd.f32 %v2710_v17, %v2566_v48 }
 0x1d8   : > { %v1887_v53 = vpop.permute.xlu1 %1886 }
 0x1d9   : > { %v1985_v20 = vmul.f32 %v6260_v3, %v1887_v53  ;;  %v5613_v47 = vadd.f32 %v2839_v54, %v2726_v62  ;;  %v6267_v62 = vld [vmem:[#allocation39_spill] sm:$0xff]  ;;  %v6269_v53 = vld [vmem:[#allocation144_spill] sm:$0xff] }
 0x1da   : > { %2864 = vrot.lane.b32.xlu1 %v2819_v30, %s3640_s9  ;;  %3019 = vperm.xlu0 %3564, %v3624_v8   ;;  %v1845_v46 = vmul.f32 %v6267_v62, %v6266_v6  ;;  %v6268_v30 = vld [vmem:[#allocation129_spill] sm:$0xff] }
 0x1db   : > { %v2001_v55 = vadd.f32 %v1985_v20, %v1844_v19  ;;  %v2712_v31 = vmul.f32 %v6269_v53, %v6268_v30  ;;  %v6271_v8 = vld [vmem:[#allocation137_spill] sm:$0xff]  ;;  %v6281_v53 = vld [vmem:[#allocation146_spill] sm:$0xff] }
 0x1dc   : > { %v2218_v16 = vpop.permute.xlu1 %2217 }
 0x1dd   : > { %v2320_v54 = vmul.f32 %v6263_v41, %v2218_v16  ;;  %v2162_v49 = vadd.f32 %v2146_v11, %v2001_v55  ;;  %v6272_v55 = vld [vmem:[#allocation84_spill] sm:$0xff] }
 0x1de   : > { %2868 = vrot.lane.b32.xlu1 %v2821_v32, %s3640_s9  ;;  %2862 = vrot.lane.b32.xlu0 %v2818_v29, %s3640_s9  ;;  %v2147_v37 = vmul.f32 %v6272_v55, %v6271_v8  ;;  %v6275_v29 = vld [vmem:[#allocation60_spill] sm:$0xff] }
 0x1df   : > { %v5627_v57 = vadd.f32 %v2320_v54, %v2160_v9  ;;  %v2344_v9 = vadd.f32 %v5460_v27, %v5221_v39  ;;  %v6274_v39 = vld [vmem:[#allocation42_spill] sm:$0xff]  ;;  %v6276_v41 = vld [vmem:[#allocation4_spill] sm:$0xff] }
 0x1e0   : > { %v1846_v27 = vmul.f32 %v6274_v39, %v6273_v2  ;;  %v6285_v2 = vld [vmem:[#allocation148_spill] sm:$0xff]  ;;  %v6287_v39 = vld [vmem:[#allocation66_spill] sm:$0xff] }
 0x1e2   : > { %2866 = vrot.lane.b32.xlu0 %v2820_v52, %s3640_s9 }
 0x1e8   : > { %v2841_v38 = vpop.permute.xlu0 %2840 }
 0x1ec   : > { %v2843_v5 = vpop.permute.xlu1 %2842  ;;  %v2521_v61 = vpop.permute.xlu0 %2520 }
 0x1ed   : > { %v2567_v17 = vadd.f32 %v2521_v61, %v2343_v13 }
 0x1ef   : > { %v2727_v48 = vadd.f32 %v2711_v18, %v2567_v17  ;;  %v2148_v18 = vmul.f32 %v6278_v60, %v6277_v10 }
 0x1f0   : > { %v2523_v35 = vpop.permute.xlu1 %2522  ;;  %v1889_v22 = vpop.permute.xlu0 %1888 }
 0x1f1   : > { %v2568_v28 = vadd.f32 %v2523_v35, %v2344_v9  ;;  %v1986_v26 = vmul.f32 %v6270_v45, %v1889_v22  ;;  %v5643_v19 = vadd.f32 %v2841_v38, %v2727_v48  ;;  %v6279_v9 = vld [vmem:[#allocation102_spill] sm:$0xff] }
 0x1f3   : > { %v2728_v3 = vadd.f32 %v2712_v31, %v2568_v28  ;;  %v2002_v20 = vadd.f32 %v1986_v26, %v1845_v46  ;;  %v2346_v46 = vadd.f32 %v5500_v24, %v5301_v50  ;;  %v6282_v26 = vld [vmem:[#allocation149_spill] sm:$0xff]  ;;  %v6284_v50 = vld [vmem:[#allocation104_spill] sm:$0xff] }
 0x1f4   : > { %v1891_v11 = vpop.permute.xlu1 %1890  ;;  %v2220_v32 = vpop.permute.xlu0 %2219 }
 0x1f5   : > { %v1987_v16 = vmul.f32 %v6275_v29, %v1891_v11  ;;  %v2321_v54 = vmul.f32 %v6276_v41, %v2220_v32  ;;  %v5651_v52 = vadd.f32 %v2147_v37, %v2002_v20  ;;  %v5653_v13 = vadd.f32 %v2843_v5, %v2728_v3  ;;  %v6283_v3 = vld [vmem:[#allocation125_spill] sm:$0xff]  ;;  %v6289_v41 = vld [vmem:[#allocation86_spill] sm:$0xff] }
 0x1f6   : > { %v2345_v5 = vadd.f32 %v5452_v14, %v5244_v51  ;;  %v2714_v20 = vmul.f32 %v6283_v3, %v6282_v26  ;;  %v6286_v51 = vld [vmem:[#allocation41_spill] sm:$0xff]  ;;  %v2348_v29 = vadd.f32 %v5529_v15, %v5340_v33  ;;  %v6292_v33 = vld [vmem:[#allocation150_spill] sm:$0xff] }
 0x1f7   : > { %v2003_v38 = vadd.f32 %v1987_v16, %v1846_v27  ;;  %v5656_v61 = vadd.f32 %v2321_v54, %v5550_v4  ;;  %v6280_v4 = vld [vmem:[#allocation134_spill] sm:$0xff]  ;;  %v1847_v14 = vmul.f32 %v6286_v51, %v6285_v2  ;;  %v6288_v16 = vld [vmem:[#allocation53_spill] sm:$0xff] }
 0x1f8   : > { %v2222_v17 = vpop.permute.xlu1 %2221  ;;  %v5660_v48 = vpop.permute.xlu0 %2844  ;;  %v2713_v31 = vmul.f32 %v6281_v53, %v6280_v4  ;;  %v2149_v54 = vmul.f32 %v6289_v41, %v6288_v16  ;;  %v2350_v4 = vadd.f32 %v5556_v23, %v5367_v59  ;;  %v2352_v23 = vadd.f32 %v5627_v57, %v5408_v25 }
 0x1f9   : > { %v2322_v35 = vmul.f32 %v6279_v9, %v2222_v17  ;;  %v2164_v6 = vadd.f32 %v2148_v18, %v2003_v38  ;;  %v6290_v17 = vld [vmem:[#allocation128_spill] sm:$0xff] }
 0x1fa   : > { %v2716_v9 = vmul.f32 %v6290_v17, %v5139_v34 }
 0x1fb   : > { %v2338_v62 = vadd.f32 %v2322_v35, %v2162_v49  ;;  %v2347_v35 = vadd.f32 %v5492_v58, %v5305_v7  ;;  %v2349_v58 = vadd.f32 %v5524_v21, %v5330_v63  ;;  %v2351_v21 = vadd.f32 %v5553_v44, %v5359_v0  ;;  %v6299_v44 = vld [vmem:[#allocation163_spill] sm:$0xff] }
 0x1fc   : > { %v2527_v22 = vpop.permute.xlu1 %2526  ;;  %v2525_v30 = vpop.permute.xlu0 %2524  ;;  %v2353_v0 = vadd.f32 %v5656_v61, %v5399_v36 }
 0x1fd   : > { %v2570_v28 = vadd.f32 %v2527_v22, %v2346_v46  ;;  %v2569_v45 = vadd.f32 %v2525_v30, %v2345_v5  ;;  %v6291_v22 = vld [vmem:[#allocation145_spill] sm:$0xff]  ;;  %v2354_v57 = vadd.f32 %v2338_v62, %v5450_v42 }
 0x1fe   : > { %v2715_v15 = vmul.f32 %v6292_v33, %v6291_v22  ;;  %v6301_v22 = vld [vmem:[#allocation92_spill] sm:$0xff] }
 0x1ff   : > { %v5671_v8 = vadd.f32 %v2713_v31, %v2569_v45  ;;  %v5673_v55 = vadd.f32 %v2714_v20, %v2570_v28  ;;  %v6293_v45 = vld [vmem:[#allocation133_spill] sm:$0xff] }
 0x200   : > { %v2226_v49 = vpop.permute.xlu1 %2225  ;;  %v1893_v37 = vpop.permute.xlu0 %1892  ;;  %v2718_v7 = vmul.f32 %v6293_v45, %v5151_v56  ;;  %v6303_v45 = vld [vmem:[#allocation30_spill] sm:$0xff] }
 0x201   : > { %v2324_v24 = vmul.f32 %v6284_v50, %v2226_v49  ;;  %v1988_v27 = vmul.f32 %v6287_v39, %v1893_v37  ;;  %v6294_v49 = vld [vmem:[#allocation151_spill] sm:$0xff] }
 0x202   : > { %v6295_v37 = vld [vmem:[#allocation87_spill] sm:$0xff] }
 0x203   : > { %v2340_v11 = vadd.f32 %v2324_v24, %v2164_v6  ;;  %v2004_v32 = vadd.f32 %v1988_v27, %v1847_v14  ;;  %v2717_v50 = vmul.f32 %v6295_v37, %v6294_v49  ;;  %v6296_v14 = vld [vmem:[#allocation140_spill] sm:$0xff] }
 0x204   : > { %v2531_v38 = vpop.permute.xlu1 %2530  ;;  %v2224_v10 = vpop.permute.xlu0 %2223  ;;  %v2720_v63 = vmul.f32 %v6296_v14, %v5185_v1  ;;  %v6298_v1 = vld [vmem:[#allocation7_spill] sm:$0xff]  ;;  %v6308_v14 = vld [vmem:[#allocation152_spill] sm:$0xff] }
 0x205   : > { %v2572_v60 = vadd.f32 %v2531_v38, %v2348_v29  ;;  %v2165_v18 = vadd.f32 %v2149_v54, %v2004_v32  ;;  %v6297_v29 = vld [vmem:[#allocation153_spill] sm:$0xff]  ;;  %v2323_v17 = vmul.f32 %v6298_v1, %v2224_v10 }
 0x206   : > { %v2719_v16 = vmul.f32 %v6297_v29, %v5163_v40  ;;  %v6300_v40 = vld [vmem:[#allocation159_spill] sm:$0xff] }
 0x207   : > { %v5687_v46 = vadd.f32 %v2716_v9, %v2572_v60  ;;  %v2721_v33 = vmul.f32 %v6301_v22, %v6300_v40  ;;  %v2339_v62 = vadd.f32 %v2323_v17, %v5651_v52 }
 0x208   : > { %v5689_v6 = vpop.permute.xlu1 %2846  ;;  %v2529_v5 = vpop.permute.xlu0 %2528 }
 0x209   : > { %v2571_v30 = vadd.f32 %v2529_v5, %v2347_v35 }
 0x20b   : > { %v5695_v53 = vadd.f32 %v2715_v15, %v2571_v30  ;;  %v6302_v15 = vld [vmem:[#allocation8_spill] sm:$0xff] }
 0x20c   : > { %v2535_v31 = vpop.permute.xlu1 %2534  ;;  %v2228_v28 = vpop.permute.xlu0 %2227 }
 0x20d   : > { %v2574_v34 = vadd.f32 %v2535_v31, %v2350_v4  ;;  %v2325_v30 = vmul.f32 %v6302_v15, %v2228_v28  ;;  %v2356_v4 = vadd.f32 %v2340_v11, %v5490_v43 }
 0x20f   : > { %v5701_v26 = vadd.f32 %v2718_v7, %v2574_v34  ;;  %v2341_v34 = vadd.f32 %v2325_v30, %v2165_v18  ;;  %v2355_v7 = vadd.f32 %v2339_v62, %v6303_v45  ;;  %v6311_v30 = vld [vmem:[#allocation155_spill] sm:$0xff] }
 0x210   : > { %v5703_v3 = vpop.permute.xlu1 %2850  ;;  %v2533_v20 = vpop.permute.xlu0 %2532 }
 0x211   : > { %v2573_v59 = vadd.f32 %v2533_v20, %v2349_v58  ;;  %v6304_v58 = vld [vmem:[#allocation169_spill] sm:$0xff]  ;;  %v2357_v28 = vadd.f32 %v2341_v34, %v5479_v12 }
 0x213   : > { %v5709_v24 = vadd.f32 %v2717_v50, %v2573_v59  ;;  %v6305_v50 = vld [vmem:[#allocation165_spill] sm:$0xff]  ;;  %v6306_v59 = vld [vmem:[#allocation20_spill] sm:$0xff] }
 0x214   : > { %v2539_v2 = vpop.permute.xlu1 %2538  ;;  %v2849_v51 = vpop.permute.xlu0 %2848  ;;  %v2723_v52 = vmul.f32 %v6306_v59, %v6305_v50  ;;  %v2890_v59 = vadd.f32 %v5689_v6, %v5673_v55  ;;  %v2892_v6 = vadd.f32 %v5703_v3, %v5687_v46 }
 0x215   : > { %v2576_v56 = vadd.f32 %v2539_v2, %v2352_v23  ;;  %v6307_v2 = vld [vmem:[#allocation9_spill] sm:$0xff]  ;;  %v2891_v22 = vadd.f32 %v2849_v51, %v5695_v53 }
 0x217   : > { %v5715_v39 = vadd.f32 %v2720_v63, %v2576_v56 }
 0x218   : > { %v5717_v27 = vpop.permute.xlu1 %2854  ;;  %v2537_v32 = vpop.permute.xlu0 %2536 }
 0x219   : > { %v2575_v25 = vadd.f32 %v2537_v32, %v2351_v21  ;;  %v5755_v21 = vld [vmem:[%s5858_s7] ss:$0 sm:$0xff] }
 0x21b   : > { %v5722_v41 = vadd.f32 %v2719_v16, %v2575_v25  ;;  %v6309_v16 = vld [vmem:[#allocation154_spill] sm:$0xff] }
 0x21c   : > { %v2543_v54 = vpop.permute.xlu1 %2542  ;;  %v2853_v38 = vpop.permute.xlu0 %2852 }
 0x21d   : > { %v2578_v60 = vadd.f32 %v2543_v54, %v2354_v57  ;;  %v2893_v45 = vadd.f32 %v2853_v38, %v5709_v24 }
 0x21f   : > { %v5728_v9 = vadd.f32 %v6299_v44, %v2578_v60  ;;  %v6310_v44 = vld [vmem:[#allocation156_spill] sm:$0xff] }
 0x220   : > { %v5730_v35 = vpop.permute.xlu1 %2858  ;;  %v2541_v5 = vpop.permute.xlu0 %2540 }
 0x221   : > { %v2577_v42 = vadd.f32 %v2541_v5, %v2353_v0  ;;  %v2889_v0 = vadd.f32 %v5660_v48, %v5671_v8 }
 0x223   : > { %v5737_v10 = vadd.f32 %v2721_v33, %v2577_v42 }
 0x224   : > { %v2547_v31 = vpop.permute.xlu1 %2546  ;;  %v2857_v36 = vpop.permute.xlu0 %2856 }
 0x225   : > { %v2580_v61 = vadd.f32 %v2547_v31, %v2356_v4  ;;  %v6312_v31 = vld [vmem:[#allocation157_spill] sm:$0xff] }
 0x227   : > { %v5741_v20 = vadd.f32 %v6304_v58, %v2580_v61 }
 0x228   : > { %v2545_v49 = vpop.permute.xlu0 %2544 }
 0x229   : > { %v2579_v37 = vadd.f32 %v2545_v49, %v2355_v7 }
 0x22b   : > { %v5746_v43 = vadd.f32 %v2723_v52, %v2579_v37  ;;  %v6313_v37 = vld [vmem:[#allocation161_spill] sm:$0xff]  ;;  %v6314_v52 = vld [vmem:[#allocation158_spill] sm:$0xff] }
 0x22c   : > { %v2549_v11 = vpop.permute.xlu0 %2548 }
 0x22d   : > { %v2581_v23 = vadd.f32 %v2549_v11, %v2357_v28  ;;  %v2895_v11 = vadd.f32 %v2857_v36, %v5722_v41 }
 0x22f   : > { %v5749_v56 = vadd.f32 %v6307_v2, %v2581_v23 }
 0x230   : > { %v2861_v60 = vpop.permute.xlu0 %2860 }
 0x231   : > { %v2964_v18 = vpop.permute.xlu1 %2963 }
 0x232   : > { %v3026_v63 = vmul.f32 %v2964_v18, %v6308_v14 }
 0x234   : > { %v3042_v32 = vadd.f32 %v3026_v63, %v5613_v47 }
 0x235   : > { %v2972_v29 = vpop.permute.xlu1 %2971 }
 0x236   : > { %v3065_v12 = vadd.f32 %v5755_v21, %v3042_v32  ;;  %v3028_v25 = vmul.f32 %v2972_v29, %v6309_v16  ;;  %v6315_v29 = vld [vmem:[#allocation61_spill] sm:$0xff]  ;;  %v6316_v16 = vld [vmem:[#allocation160_spill] sm:$0xff] }
 0x238   : > { %v3081_v57 = vmax.f32 %v3065_v12, 0.0  ;;  %v3044_v54 = vadd.f32 %v3028_v25, %v5653_v13 }
 0x239   : > { %v2976_v1 = vpop.permute.xlu1 %2975 }
 0x23a   : > { %v3377_v17 = vpack.c.bf16 %v3081_v57, %v3081_v57  ;;  %v3067_v47 = vadd.f32 %v5755_v21, %v3044_v54  ;;  %v3029_v5 = vmul.f32 %v2976_v1, %v6310_v44  ;;  %v2894_v57 = vadd.f32 %v5717_v27, %v5701_v26  ;;  %v6317_v44 = vld [vmem:[#allocation167_spill] sm:$0xff] }
 0x23b   : > { %v2897_v54 = vadd.f32 %v2861_v60, %v5737_v10 }
 0x23c   : > { %3162 = vst.msk [vmem:[%s5765_s12] sm:$0xf] %vm3161_vm4, %v3377_v17  ;;  %v3083_v13 = vmax.f32 %v3067_v47, 0.0  ;;  %v3045_v40 = vadd.f32 %v3029_v5, %v2889_v0 }
 0x23d   : > { %v2984_v33 = vpop.permute.xlu1 %2983  ;;  %v2968_v42 = vpop.permute.xlu0 %2967 }
 0x23e   : > { %v3379_v62 = vpack.c.bf16 %v3083_v13, %v3083_v13  ;;  %v3068_v15 = vadd.f32 %v5755_v21, %v3045_v40  ;;  %v3031_v4 = vmul.f32 %v2984_v33, %v6311_v30  ;;  %v3027_v61 = vmul.f32 %v2968_v42, %v6312_v31  ;;  %v6318_v13 = vld [vmem:[#allocation162_spill] sm:$0xff] }
 0x23f   : > { %v2896_v31 = vadd.f32 %v5730_v35, %v5715_v39 }
 0x240   : > { %3164 = vst.msk [vmem:[%s5765_s12 + $0x8] sm:$0xf] %vm3161_vm4, %v3379_v62  ;;  %v3084_v48 = vmax.f32 %v3068_v15, 0.0  ;;  %v3047_v8 = vadd.f32 %v3031_v4, %v2891_v22  ;;  %v3043_v34 = vadd.f32 %v3027_v61, %v5643_v19 }
 0x241   : > { %v2992_v7 = vpop.permute.xlu1 %2991  ;;  %v2980_v53 = vpop.permute.xlu0 %2979 }
 0x242   : > { %v3380_v51 = vpack.c.bf16 %v3084_v48, %v3084_v48  ;;  %v3070_v58 = vadd.f32 %v5755_v21, %v3047_v8  ;;  %v3066_v49 = vadd.f32 %v5755_v21, %v3043_v34  ;;  %v3033_v50 = vmul.f32 %v2992_v7, %v6313_v37  ;;  %v6319_v48 = vld [vmem:[#allocation164_spill] sm:$0xff] }
 0x243   : > { %v3030_v28 = vmul.f32 %v2980_v53, %v6314_v52 }
 0x244   : > { %3165 = vst.msk [vmem:[%s5765_s12 + $0xc] sm:$0xf] %vm3161_vm4, %v3380_v51  ;;  %v3086_v19 = vmax.f32 %v3070_v58, 0.0  ;;  %v3082_v24 = vmax.f32 %v3066_v49, 0.0  ;;  %v3049_v38 = vadd.f32 %v3033_v50, %v2893_v45 }
 0x245   : > { %v3046_v23 = vadd.f32 %v3030_v28, %v2890_v59  ;;  %v3000_v2 = vpop.permute.xlu1 %2999  ;;  %v2988_v18 = vpop.permute.xlu0 %2987  ;;  %v6320_v59 = vld [vmem:[#allocation166_spill] sm:$0xff] }
 0x246   : > { %v3382_v14 = vpack.c.bf16 %v3086_v19, %v3086_v19  ;;  %v3378_v63 = vpack.c.bf16 %v3082_v24, %v3082_v24  ;;  %v3072_v32 = vadd.f32 %v5755_v21, %v3049_v38  ;;  %v3035_v55 = vmul.f32 %v3000_v2, %v6315_v29  ;;  %v6321_v2 = vld [vmem:[#allocation168_spill] sm:$0xff] }
 0x247   : > { %v3069_v12 = vadd.f32 %v5755_v21, %v3046_v23  ;;  %v3032_v25 = vmul.f32 %v2988_v18, %v6316_v16 }
 0x248   : > { %3167 = vst.msk [vmem:[%s5765_s12 + $0x14] sm:$0xf] %vm3161_vm4, %v3382_v14  ;;  %3163 = vst.msk [vmem:[%s5765_s12 + $0x4] sm:$0xf] %vm3161_vm4, %v3378_v63  ;;  %v3088_v41 = vmax.f32 %v3072_v32, 0.0  ;;  %v3051_v36 = vadd.f32 %v3035_v55, %v2895_v11  ;;  %v6322_v55 = vld [vmem:[#allocation65_spill] sm:$0xff] }
 0x249   : > { %v3085_v1 = vmax.f32 %v3069_v12, 0.0  ;;  %v3048_v17 = vadd.f32 %v3032_v25, %v2892_v6  ;;  %v3008_v46 = vpop.permute.xlu1 %3007  ;;  %v2996_v3 = vpop.permute.xlu0 %2995  ;;  %v6323_v6 = vrot.slane %v6322_v55, 1 }
 0x24a   : > { %v3384_v47 = vpack.c.bf16 %v3088_v41, %v3088_v41  ;;  %v3074_v0 = vadd.f32 %v5755_v21, %v3051_v36  ;;  %v3037_v5 = vmul.f32 %v3008_v46, %v6317_v44  ;;  %v3034_v40 = vmul.f32 %v2996_v3, %v6318_v13 }
 0x24b   : > { %v3381_v22 = vpack.c.bf16 %v3085_v1, %v3085_v1  ;;  %v3071_v33 = vadd.f32 %v5755_v21, %v3048_v17 }
 0x24c   : > { %3169 = vst.msk [vmem:[%s5765_s12 + $0x1c] sm:$0xf] %vm3161_vm4, %v3384_v47  ;;  %v3090_v26 = vmax.f32 %v3074_v0, 0.0  ;;  %v3053_v27 = vadd.f32 %v3037_v5, %v2897_v54  ;;  %v3050_v10 = vadd.f32 %v3034_v40, %v2894_v57 }
 0x24d   : > { %3166 = vst.msk [vmem:[%s5765_s12 + $0x10] sm:$0xf] %vm3161_vm4, %v3381_v22  ;;  %v3087_v60 = vmax.f32 %v3071_v33, 0.0  ;;  %v3016_v42 = vpop.permute.xlu1 %3015  ;;  %v3004_v62 = vpop.permute.xlu0 %3003 }
 0x24e   : > { %v3386_v15 = vpack.c.bf16 %v3090_v26, %v3090_v26  ;;  %v3076_v30 = vadd.f32 %v5755_v21, %v3053_v27  ;;  %v3073_v4 = vadd.f32 %v5755_v21, %v3050_v10  ;;  %v3036_v8 = vmul.f32 %v3004_v62, %v6319_v48 }
 0x24f   : > { %v3383_v61 = vpack.c.bf16 %v3087_v60, %v3087_v60  ;;  %v3039_v52 = vmul.f32 %v3016_v42, %v6320_v59 }
 0x250   : > { %3171 = vst.msk [vmem:[%s5765_s12 + $0x24] sm:$0xf] %vm3161_vm4, %v3386_v15  ;;  %v3092_v34 = vmax.f32 %v3076_v30, 0.0  ;;  %v3089_v45 = vmax.f32 %v3073_v4, 0.0  ;;  %v3052_v7 = vadd.f32 %v3036_v8, %v2896_v31 }
 0x251   : > { %3168 = vst.msk [vmem:[%s5765_s12 + $0x18] sm:$0xf] %vm3161_vm4, %v3383_v61  ;;  %v3024_v53 = vpop.permute.xlu1 %3023  ;;  %v3012_v51 = vpop.permute.xlu0 %3011 }
 0x252   : > { %v3388_v58 = vpack.c.bf16 %v3092_v34, %v3092_v34  ;;  %v3385_v49 = vpack.c.bf16 %v3089_v45, %v3089_v45  ;;  %v3075_v37 = vadd.f32 %v5755_v21, %v3052_v7  ;;  %v3041_v38 = vmul.f32 0.0, %v3024_v53 }
 0x253   : > { %v3038_v18 = vmul.f32 %v3012_v51, %v6321_v2 }
 0x254   : > { %3173 = vst.msk [vmem:[%s5765_s12 + $0x2c] sm:$0xf] %vm3161_vm4, %v3388_v58  ;;  %3170 = vst.msk [vmem:[%s5765_s12 + $0x20] sm:$0xf] %vm3161_vm4, %v3385_v49  ;;  %v3091_v39 = vmax.f32 %v3075_v37, 0.0 }
 0x255   : > { %v2865_v35 = vpop.permute.xlu1 %2864  ;;  %v3020_v50 = vpop.permute.xlu0 %3019 }
 0x256   : > { %v2899_v28 = vadd.f32 %v2865_v35, %v5746_v43  ;;  %v3387_v19 = vpack.c.bf16 %v3091_v39, %v3091_v39  ;;  %v2961_v43 = vsel %vm2021_vm3, %v6323_v6, 0.0 }
 0x257   : > { %v3040_v25 = vmul.f32 %v3020_v50, %v2961_v43 }
 0x258   : > { %v3055_v24 = vadd.f32 %v3039_v52, %v2899_v28  ;;  %3172 = vst.msk [vmem:[%s5765_s12 + $0x28] sm:$0xf] %vm3161_vm4, %v3387_v19 }
 0x259   : > { %v2869_v11 = vpop.permute.xlu1 %2868  ;;  %v2863_v23 = vpop.permute.xlu0 %2862 }
 0x25a   : > { %v3078_v14 = vadd.f32 %v5755_v21, %v3055_v24  ;;  %v2901_v63 = vadd.f32 %v2869_v11, %v5749_v56  ;;  %v2898_v32 = vadd.f32 %v2863_v23, %v5728_v9 }
 0x25c   : > { %v3094_v29 = vmax.f32 %v3078_v14, 0.0  ;;  %v3057_v12 = vadd.f32 %v3041_v38, %v2901_v63  ;;  %v3054_v16 = vadd.f32 %v3038_v18, %v2898_v32 }
 0x25d   : > { %v2867_v41 = vpop.permute.xlu0 %2866 }
 0x25e   : > { %v3390_v36 = vpack.c.bf16 %v3094_v29, %v3094_v29  ;;  %v3080_v57 = vadd.f32 %v5755_v21, %v3057_v12  ;;  %v3077_v54 = vadd.f32 %v5755_v21, %v3054_v16  ;;  %v2900_v56 = vadd.f32 %v2867_v41, %v5741_v20 }
 0x260   : > { %3175 = vst.msk [vmem:[%s5765_s12 + $0x34] sm:$0xf] %vm3161_vm4, %v3390_v36  ;;  %v3096_v9 = vmax.f32 %v3080_v57, 0.0  ;;  %v3093_v1 = vmax.f32 %v3077_v54, 0.0  ;;  %v3056_v17 = vadd.f32 %v3040_v25, %v2900_v56 }
 0x262   : > { %v3392_v46 = vpack.c.bf16 %v3096_v9, %v3096_v9  ;;  %v3389_v3 = vpack.c.bf16 %v3093_v1, %v3093_v1  ;;  %v3079_v47 = vadd.f32 %v5755_v21, %v3056_v17 }
 0x264   : > { %3177 = vst.msk [vmem:[%s5765_s12 + $0x3c] sm:$0xf] %vm3161_vm4, %v3392_v46  ;;  %3174 = vst.msk [vmem:[%s5765_s12 + $0x30] sm:$0xf] %vm3161_vm4, %v3389_v3  ;;  %v3095_v0 = vmax.f32 %v3079_v47, 0.0 }
 0x266   : > { %v3391_v44 = vpack.c.bf16 %v3095_v0, %v3095_v0 }
 0x268   : > { %3176 = vst.msk [vmem:[%s5765_s12 + $0x38] sm:$0xf] %vm3161_vm4, %v3391_v44 }
 0x269 PF: > { %s18_s27 = sadd.s32 1, %s3631_s27  }
 0x26a   : > { %p15_p4 = scmp.ge.s32.totalorder %s18_s27, 4  }
 0x26c   :  { %17 = sbr.rel (!%p15_p4) target bundleno = 1 (0x1), region = 88 }

</bundles_post_ra>
